<compile_context>
chip_gen: v5e
topology: v5e:2x2
jax: 0.10.0
libtpu: 0.0.40
codegen_flags: <defaults>
</compile_context>

<pallas_src>
import functools

import jax
import jax.numpy as jnp
from jax import lax
from jax.experimental import pallas as pl
from jax.experimental.pallas import tpu as pltpu


def _pick_channel_block(oc, cin, mult, step_bytes, lane_rules,
                        vmem_budget=8 * 1024 * 1024):
    """Pick an output-channel block size CB.

    Constraints: CB divides OC, CB % mult == 0, and (for the lane-dense flat
    layout) the blocked second-to-last dims satisfy the (8,128) tiling rule.
    Prefers the largest CB that fits the VMEM budget while still giving >= 2
    grid steps (keeps both v7x TensorCores busy when OC allows it).
    CB == OC always satisfies the lane rules, so `valid` is never empty.
    """
    valid = []
    for cb in range(mult, oc + 1, mult):
        if oc % cb:
            continue
        if lane_rules:
            cbi = cb // mult
            if not (cb % 8 == 0 or cb == oc):
                continue
            if not (cbi % 8 == 0 or cbi == cin):
                continue
        valid.append(cb)
    fitting = [cb for cb in valid if step_bytes(cb) <= vmem_budget]
    pool = fitting if fitting else [min(valid)]
    multi = [cb for cb in pool if oc // cb >= 2]
    return max(multi) if multi else max(pool)


def _sepconv_flat_kernel(x_ref, w_ref, g_ref, b_ref, o_ref, xp_ref, *,
                         width, k, pad, mult, cb, left, eps):
    """Fused depthwise conv + training-mode BN, flattened-spatial (stride=1).

    x_ref : (N, CB_in, H*W)   VMEM input block (unpadded, spatial flattened)
    w_ref : (OC*k*k,)         SMEM depthwise filter taps
    g_ref : (OC,)             SMEM BN gamma
    b_ref : (OC,)             SMEM BN beta
    o_ref : (N, CB, H*W)      VMEM output block (lane-dense last dim)
    xp_ref: (N, CB_in, L)     VMEM f32 scratch: zero margins + input copy
    """
    j = pl.program_id(0)
    n, cb_in, hw = x_ref.shape
    k2 = k * k

    # Zero the margins only once: the scratch persists across grid steps and
    # the margins never change; the middle is overwritten every step.
    @pl.when(j == 0)
    def _():
        xp_ref[...] = jnp.zeros_like(xp_ref)
    xp_ref[:, :, left:left + hw] = x_ref[...].astype(jnp.float32)

    # Column-validity masks: they depend only on kw (row out-of-range taps are
    # covered by the zero margins).  Broadcast once, outside all loops.
    col = lax.broadcasted_iota(jnp.int32, (1, hw), 1) % width
    col_ok = [
        jnp.broadcast_to((col + (kw - pad) >= 0) & (col + (kw - pad) < width),
                         (n, hw))
        for kw in range(k)
    ]

    inv_cnt = 1.0 / (n * hw)
    for ic in range(cb_in):
        xc = xp_ref[:, ic, :]                        # (N, L) padded flat row
        accs = [None] * mult
        for kw in range(k):
            # Sum over kh first (mask independent of kh), mask once per kw.
            partials = [None] * mult
            for kh in range(k):
                start = left + (kh - pad) * width + (kw - pad)
                tap = lax.slice(xc, (0, start), (n, start + hw))
                for m in range(mult):
                    oc_g = j * cb + ic * mult + m
                    term = tap * w_ref[oc_g * k2 + kh * k + kw]
                    partials[m] = term if partials[m] is None else partials[m] + term
            for m in range(mult):
                masked = jnp.where(col_ok[kw], partials[m], 0.0)
                accs[m] = masked if accs[m] is None else accs[m] + masked
        for m in range(mult):
            oc_l = ic * mult + m
            oc_g = j * cb + oc_l
            acc = accs[m]
            # Single-pass batch statistics (biased variance, as torch training BN).
            s1 = jnp.sum(acc)
            s2 = jnp.sum(acc * acc)
            mean = s1 * inv_cnt
            var = s2 * inv_cnt - mean * mean
            scale = lax.rsqrt(var + eps) * g_ref[oc_g]
            shift = b_ref[oc_g] - mean * scale
            o_ref[:, oc_l, :] = (acc * scale + shift).astype(o_ref.dtype)


def _sepconv2d_kernel(xp_ref, w_ref, g_ref, b_ref, o_ref, *,
                      k, stride, mult, cb, oh, ow, eps):
    """Fused depthwise conv + BN, 2-D layout (general stride / even kernels).

    xp_ref: (N, CB_in, Hp, Wp) padded input block, o_ref: (N, CB, OH, OW).
    Not exercised by the stride==1 test; kept for module generality.
    """
    j = pl.program_id(0)
    n, cb_in = xp_ref.shape[0], xp_ref.shape[1]
    k2 = k * k
    inv_cnt = 1.0 / (n * oh * ow)
    for ic in range(cb_in):
        xc = xp_ref[:, ic, :, :].astype(jnp.float32)       # (N, Hp, Wp)
        accs = [None] * mult
        for kh in range(k):
            for kw in range(k):
                patch = lax.slice(
                    xc, (0, kh, kw),
                    (n, kh + (oh - 1) * stride + 1, kw + (ow - 1) * stride + 1),
                    (1, stride, stride))
                for m in range(mult):
                    oc_g = j * cb + ic * mult + m
                    term = patch * w_ref[oc_g * k2 + kh * k + kw]
                    accs[m] = term if accs[m] is None else accs[m] + term
        for m in range(mult):
            oc_l = ic * mult + m
            oc_g = j * cb + oc_l
            acc = accs[m]
            s1 = jnp.sum(acc)
            s2 = jnp.sum(acc * acc)
            mean = s1 * inv_cnt
            var = s2 * inv_cnt - mean * mean
            scale = lax.rsqrt(var + eps) * g_ref[oc_g]
            shift = b_ref[oc_g] - mean * scale
            o_ref[:, oc_l, :, :] = (acc * scale + shift).astype(o_ref.dtype)


def sep_conv(x, w, gamma, beta, *, kernel_size, stride, eps=1e-5):
    """SepConv forward: grouped conv (groups=in_planes, no bias) + BatchNorm2d."""
    n, cin, h, wd = x.shape
    oc = w.shape[0]
    assert oc % cin == 0
    mult = oc // cin
    k = kernel_size
    pad = (k - 1) // 2
    oh = (h + 2 * pad - k) // stride + 1
    ow = (wd + 2 * pad - k) // stride + 1
    k2 = k * k

    # Scalar operands live in SMEM (cheap scalar path, no per-step VMEM DMAs).
    w_taps = w.reshape(oc * k2).astype(jnp.float32)     # (OC, 1, k, k) -> (OC*k*k,)
    gamma_f = gamma.astype(jnp.float32)
    beta_f = beta.astype(jnp.float32)
    itemsize = x.dtype.itemsize

    if stride == 1 and k % 2 == 1:
        # ---- Hot path: fused, lane-dense, flattened-spatial (OH==H, OW==W) ----
        hw = h * wd
        margin = pad * wd + pad                 # max |flat tap offset|
        left = ((margin + 127) // 128) * 128    # lane-aligned start of the copy
        pad_len = hw + 2 * left                 # scratch row length

        def step_bytes(cb_):
            cbi = cb_ // mult
            return (2 * n * (cbi + cb_) * hw * itemsize      # double-buffered I/O
                    + n * cbi * pad_len * 4)                 # f32 pad scratch

        cb = _pick_channel_block(oc, cin, mult, step_bytes, lane_rules=True)
        cb_in = cb // mult
        x_flat = x.reshape(n, cin, hw)          # free metadata reshape

        kern = functools.partial(_sepconv_flat_kernel, width=wd, k=k, pad=pad,
                                 mult=mult, cb=cb, left=left, eps=eps)
        out_flat = pl.pallas_call(
            kern,
            out_shape=jax.ShapeDtypeStruct((n, oc, hw), x.dtype),
            grid=(oc // cb,),
            in_specs=[
                pl.BlockSpec((n, cb_in, hw), lambda j: (0, j, 0)),
                pl.BlockSpec(memory_space=pltpu.SMEM),
                pl.BlockSpec(memory_space=pltpu.SMEM),
                pl.BlockSpec(memory_space=pltpu.SMEM),
            ],
            out_specs=pl.BlockSpec((n, cb, hw), lambda j: (0, j, 0)),
            scratch_shapes=[pltpu.VMEM((n, cb_in, pad_len), jnp.float32)],
            compiler_params=pltpu.CompilerParams(
                dimension_semantics=("parallel",)),
        )(x_flat, w_taps, gamma_f, beta_f)
        return out_flat.reshape(n, oc, oh, ow)

    # ---- Fallback: general stride / even kernel, fused 2-D kernel ----
    hp, wp = h + 2 * pad, wd + 2 * pad
    xpad = jnp.pad(x, ((0, 0), (0, 0), (pad, pad), (pad, pad)))

    def step_bytes2d(cb_):
        cbi = cb_ // mult
        return 2 * n * (cbi * hp * wp + cb_ * oh * ow) * itemsize

    cb = _pick_channel_block(oc, cin, mult, step_bytes2d, lane_rules=False)
    cb_in = cb // mult
    kern = functools.partial(_sepconv2d_kernel, k=k, stride=stride, mult=mult,
                             cb=cb, oh=oh, ow=ow, eps=eps)
    return pl.pallas_call(
        kern,
        out_shape=jax.ShapeDtypeStruct((n, oc, oh, ow), x.dtype),
        grid=(oc // cb,),
        in_specs=[
            pl.BlockSpec((n, cb_in, hp, wp), lambda j: (0, j, 0, 0)),
            pl.BlockSpec(memory_space=pltpu.SMEM),
            pl.BlockSpec(memory_space=pltpu.SMEM),
            pl.BlockSpec(memory_space=pltpu.SMEM),
        ],
        out_specs=pl.BlockSpec((n, cb, oh, ow), lambda j: (0, j, 0, 0)),
        compiler_params=pltpu.CompilerParams(dimension_semantics=("parallel",)),
    )(xpad, w_taps, gamma_f, beta_f)


def _reference(x, w, gamma, beta, *, kernel_size, stride, eps=1e-5):
    """Plain-JAX reference matching PyTorch semantics (training-mode BN)."""
    cin = x.shape[1]
    pad = (kernel_size - 1) // 2
    y = lax.conv_general_dilated(
        x, w,
        window_strides=(stride, stride),
        padding=((pad, pad), (pad, pad)),
        dimension_numbers=("NCHW", "OIHW", "NCHW"),
        feature_group_count=cin,
    )
    mean = y.mean(axis=(0, 2, 3), keepdims=True)
    var = y.var(axis=(0, 2, 3), keepdims=True)  # biased
    yn = (y - mean) / jnp.sqrt(var + eps)
    return yn * gamma.reshape(1, -1, 1, 1) + beta.reshape(1, -1, 1, 1)


if __name__ == "__main__":
    # SepConv(in_planes=4, out_planes=8, kernel_size=3, stride=1)
    in_planes, out_planes, kernel_size, stride = 4, 8, 3, 1
    N, H, W = 2, 16, 16

    key = jax.random.PRNGKey(0)
    kx, kw, kg, kb = jax.random.split(key, 4)

    x = jax.random.normal(kx, (N, in_planes, H, W), dtype=jnp.float32)
    # Conv2d weight: (out_planes, in_planes // groups = 1, k, k), bias=False
    w = 0.1 * jax.random.normal(
        kw, (out_planes, 1, kernel_size, kernel_size), dtype=jnp.float32)
    # BatchNorm2d affine params (deterministic, non-trivial)
    gamma = 1.0 + 0.1 * jax.random.normal(kg, (out_planes,), dtype=jnp.float32)
    beta = 0.1 * jax.random.normal(kb, (out_planes,), dtype=jnp.float32)

    out = sep_conv(x, w, gamma, beta, kernel_size=kernel_size, stride=stride)
    out = jax.block_until_ready(out)

    ref = _reference(x, w, gamma, beta, kernel_size=kernel_size, stride=stride)
    assert out.shape == ref.shape == (N, out_planes, H // stride, W // stride)
    assert jnp.allclose(out, ref, atol=1e-4, rtol=1e-4), "mismatch vs reference"

    print("KERNEL_OK")
</pallas_src>

<mosaic_0001>
module attributes {stable_mosaic.version = 11 : i64} {
  func.func @_sepconv_flat_kernel(%arg0: i32, %arg1: memref<2x4x256xf32, #tpu.memory_space<vmem>>, %arg2: memref<72xf32, #tpu.memory_space<smem>>, %arg3: memref<8xf32, #tpu.memory_space<smem>>, %arg4: memref<8xf32, #tpu.memory_space<smem>>, %arg5: memref<2x8x256xf32, #tpu.memory_space<vmem>>, %arg6: memref<2x4x512xf32, #tpu.memory_space<vmem>>) attributes {dimension_semantics = [#tpu.dimension_semantics<parallel>], iteration_bounds = array<i64: 1>, scalar_prefetch = 0 : i64, scratch_operands = 1 : i64, tpu.core_type = #tpu.core_type<tc>, window_params = [{transform_indices = @transform_0, window_bounds = array<i64: 2, 4, 256>}, {transform_indices = @transform_1, window_bounds = array<i64: 72>}, {transform_indices = @transform_2, window_bounds = array<i64: 8>}, {transform_indices = @transform_3, window_bounds = array<i64: 8>}, {transform_indices = @transform_4, window_bounds = array<i64: 2, 8, 256>}]} {
    %c0_i32 = arith.constant 0 : i32
    %0 = arith.cmpi eq, %arg0, %c0_i32 : i32
    %1 = arith.extui %0 : i1 to i32
    %c0_i32_0 = arith.constant 0 : i32
    %2 = arith.cmpi ne, %1, %c0_i32_0 : i32
    scf.if %2 {
      %cst_552 = arith.constant 0.000000e+00 : f32
      %1179 = vector.broadcast %cst_552 : f32 to vector<2x4x512xf32>
      %c0_553 = arith.constant 0 : index
      %c0_554 = arith.constant 0 : index
      %c0_555 = arith.constant 0 : index
      %1180 = vector.load %arg6[%c0_553, %c0_554, %c0_555] : memref<2x4x512xf32, #tpu.memory_space<vmem>>, vector<2x4x512xf32>
      tpu.vector_store %arg6[%c0_553, %c0_554, %c0_555], %1179 {strides = array<i32>} : memref<2x4x512xf32, #tpu.memory_space<vmem>>, vector<2x4x512xf32>,
    } else {
    }
    %c0 = arith.constant 0 : index
    %c0_1 = arith.constant 0 : index
    %c0_2 = arith.constant 0 : index
    %3 = vector.load %arg1[%c0, %c0_1, %c0_2] : memref<2x4x256xf32, #tpu.memory_space<vmem>>, vector<2x4x256xf32>
    %c0_3 = arith.constant 0 : index
    %c0_4 = arith.constant 0 : index
    %c128 = arith.constant 128 : index
    %4 = vector.load %arg6[%c0_3, %c0_4, %c128] : memref<2x4x512xf32, #tpu.memory_space<vmem>>, vector<2x4x256xf32>
    tpu.vector_store %arg6[%c0_3, %c0_4, %c128], %3 {strides = array<i32>} : memref<2x4x512xf32, #tpu.memory_space<vmem>>, vector<2x4x256xf32>,
    %5 = tpu.iota {dimensions = array<i32: 1>} : vector<1x256xi32>
    %c16_i32 = arith.constant 16 : i32
    %c0_i32_5 = arith.constant 0 : i32
    %6 = arith.cmpi eq, %c16_i32, %c0_i32_5 : i32
    %c1_i32 = arith.constant 1 : i32
    %7 = arith.select %6, %c1_i32, %c16_i32 : i32
    %8 = vector.broadcast %7 : i32 to vector<1x256xi32>
    %9 = arith.remsi %5, %8 : vector<1x256xi32>
    %c0_i32_6 = arith.constant 0 : i32
    %10 = vector.broadcast %c0_i32_6 : i32 to vector<1x256xi32>
    %11 = arith.cmpi ne, %9, %10 : vector<1x256xi32>
    %c0_i32_7 = arith.constant 0 : i32
    %12 = vector.broadcast %c0_i32_7 : i32 to vector<1x256xi32>
    %13 = arith.cmpi slt, %9, %12 : vector<1x256xi32>
    %c0_i32_8 = arith.constant 0 : i32
    %14 = arith.cmpi slt, %7, %c0_i32_8 : i32
    %15 = vector.broadcast %14 : i1 to vector<1x256xi1>
    %16 = vector.broadcast %15 : vector<1x256xi1> to vector<1x256xi1>
    %17 = arith.xori %13, %16 : vector<1x256xi1>
    %18 = arith.andi %17, %11 : vector<1x256xi1>
    %19 = vector.broadcast %7 : i32 to vector<1x256xi32>
    %20 = arith.addi %9, %19 : vector<1x256xi32>
    %21 = arith.select %18, %20, %9 : vector<1x256xi1>, vector<1x256xi32>
    %c-1_i32 = arith.constant -1 : i32
    %22 = vector.broadcast %c-1_i32 : i32 to vector<1x256xi32>
    %23 = arith.addi %21, %22 : vector<1x256xi32>
    %c0_i32_9 = arith.constant 0 : i32
    %24 = vector.broadcast %c0_i32_9 : i32 to vector<1x256xi32>
    %25 = arith.cmpi sge, %23, %24 : vector<1x256xi32>
    %c-1_i32_10 = arith.constant -1 : i32
    %26 = vector.broadcast %c-1_i32_10 : i32 to vector<1x256xi32>
    %27 = arith.addi %21, %26 : vector<1x256xi32>
    %c16_i32_11 = arith.constant 16 : i32
    %28 = vector.broadcast %c16_i32_11 : i32 to vector<1x256xi32>
    %29 = arith.cmpi slt, %27, %28 : vector<1x256xi32>
    %30 = arith.andi %25, %29 : vector<1x256xi1>
    %31 = vector.shape_cast %30 : vector<1x256xi1> to vector<1x256xi1>
    %32 = vector.broadcast %31 : vector<1x256xi1> to vector<2x256xi1>
    %c0_i32_12 = arith.constant 0 : i32
    %33 = vector.broadcast %c0_i32_12 : i32 to vector<1x256xi32>
    %34 = arith.addi %21, %33 : vector<1x256xi32>
    %c0_i32_13 = arith.constant 0 : i32
    %35 = vector.broadcast %c0_i32_13 : i32 to vector<1x256xi32>
    %36 = arith.cmpi sge, %34, %35 : vector<1x256xi32>
    %c0_i32_14 = arith.constant 0 : i32
    %37 = vector.broadcast %c0_i32_14 : i32 to vector<1x256xi32>
    %38 = arith.addi %21, %37 : vector<1x256xi32>
    %c16_i32_15 = arith.constant 16 : i32
    %39 = vector.broadcast %c16_i32_15 : i32 to vector<1x256xi32>
    %40 = arith.cmpi slt, %38, %39 : vector<1x256xi32>
    %41 = arith.andi %36, %40 : vector<1x256xi1>
    %42 = vector.shape_cast %41 : vector<1x256xi1> to vector<1x256xi1>
    %43 = vector.broadcast %42 : vector<1x256xi1> to vector<2x256xi1>
    %c1_i32_16 = arith.constant 1 : i32
    %44 = vector.broadcast %c1_i32_16 : i32 to vector<1x256xi32>
    %45 = arith.addi %21, %44 : vector<1x256xi32>
    %c0_i32_17 = arith.constant 0 : i32
    %46 = vector.broadcast %c0_i32_17 : i32 to vector<1x256xi32>
    %47 = arith.cmpi sge, %45, %46 : vector<1x256xi32>
    %c1_i32_18 = arith.constant 1 : i32
    %48 = vector.broadcast %c1_i32_18 : i32 to vector<1x256xi32>
    %49 = arith.addi %21, %48 : vector<1x256xi32>
    %c16_i32_19 = arith.constant 16 : i32
    %50 = vector.broadcast %c16_i32_19 : i32 to vector<1x256xi32>
    %51 = arith.cmpi slt, %49, %50 : vector<1x256xi32>
    %52 = arith.andi %47, %51 : vector<1x256xi1>
    %53 = vector.shape_cast %52 : vector<1x256xi1> to vector<1x256xi1>
    %54 = vector.broadcast %53 : vector<1x256xi1> to vector<2x256xi1>
    %c0_20 = arith.constant 0 : index
    %c0_21 = arith.constant 0 : index
    %c0_22 = arith.constant 0 : index
    %55 = vector.load %arg6[%c0_20, %c0_21, %c0_22] : memref<2x4x512xf32, #tpu.memory_space<vmem>>, vector<2x1x512xf32>
    %56 = vector.shape_cast %55 : vector<2x1x512xf32> to vector<2x512xf32>
    %57 = vector.extract_strided_slice %56 {offsets = [0, 111], sizes = [2, 256], strides = [1, 1]} : vector<2x512xf32> to vector<2x256xf32>
    %c8_i32 = arith.constant 8 : i32
    %58 = arith.muli %arg0, %c8_i32 : i32
    %c0_i32_23 = arith.constant 0 : i32
    %59 = arith.addi %58, %c0_i32_23 : i32
    %c0_i32_24 = arith.constant 0 : i32
    %60 = arith.addi %59, %c0_i32_24 : i32
    %c9_i32 = arith.constant 9 : i32
    %61 = arith.muli %60, %c9_i32 : i32
    %c0_i32_25 = arith.constant 0 : i32
    %62 = arith.addi %61, %c0_i32_25 : i32
    %c0_i32_26 = arith.constant 0 : i32
    %63 = arith.addi %62, %c0_i32_26 : i32
    %64 = arith.index_cast %63 : i32 to index
    %65 = memref.load %arg2[%64] : memref<72xf32, #tpu.memory_space<smem>>
    %66 = vector.broadcast %65 : f32 to vector<2x256xf32>
    %67 = arith.mulf %57, %66 : vector<2x256xf32>
    %c8_i32_27 = arith.constant 8 : i32
    %68 = arith.muli %arg0, %c8_i32_27 : i32
    %c0_i32_28 = arith.constant 0 : i32
    %69 = arith.addi %68, %c0_i32_28 : i32
    %c1_i32_29 = arith.constant 1 : i32
    %70 = arith.addi %69, %c1_i32_29 : i32
    %c9_i32_30 = arith.constant 9 : i32
    %71 = arith.muli %70, %c9_i32_30 : i32
    %c0_i32_31 = arith.constant 0 : i32
    %72 = arith.addi %71, %c0_i32_31 : i32
    %c0_i32_32 = arith.constant 0 : i32
    %73 = arith.addi %72, %c0_i32_32 : i32
    %74 = arith.index_cast %73 : i32 to index
    %75 = memref.load %arg2[%74] : memref<72xf32, #tpu.memory_space<smem>>
    %76 = vector.broadcast %75 : f32 to vector<2x256xf32>
    %77 = arith.mulf %57, %76 : vector<2x256xf32>
    %78 = vector.extract_strided_slice %56 {offsets = [0, 127], sizes = [2, 256], strides = [1, 1]} : vector<2x512xf32> to vector<2x256xf32>
    %c8_i32_33 = arith.constant 8 : i32
    %79 = arith.muli %arg0, %c8_i32_33 : i32
    %c0_i32_34 = arith.constant 0 : i32
    %80 = arith.addi %79, %c0_i32_34 : i32
    %c0_i32_35 = arith.constant 0 : i32
    %81 = arith.addi %80, %c0_i32_35 : i32
    %c9_i32_36 = arith.constant 9 : i32
    %82 = arith.muli %81, %c9_i32_36 : i32
    %c3_i32 = arith.constant 3 : i32
    %83 = arith.addi %82, %c3_i32 : i32
    %c0_i32_37 = arith.constant 0 : i32
    %84 = arith.addi %83, %c0_i32_37 : i32
    %85 = arith.index_cast %84 : i32 to index
    %86 = memref.load %arg2[%85] : memref<72xf32, #tpu.memory_space<smem>>
    %87 = vector.broadcast %86 : f32 to vector<2x256xf32>
    %88 = arith.mulf %78, %87 : vector<2x256xf32>
    %89 = arith.addf %67, %88 : vector<2x256xf32>
    %c8_i32_38 = arith.constant 8 : i32
    %90 = arith.muli %arg0, %c8_i32_38 : i32
    %c0_i32_39 = arith.constant 0 : i32
    %91 = arith.addi %90, %c0_i32_39 : i32
    %c1_i32_40 = arith.constant 1 : i32
    %92 = arith.addi %91, %c1_i32_40 : i32
    %c9_i32_41 = arith.constant 9 : i32
    %93 = arith.muli %92, %c9_i32_41 : i32
    %c3_i32_42 = arith.constant 3 : i32
    %94 = arith.addi %93, %c3_i32_42 : i32
    %c0_i32_43 = arith.constant 0 : i32
    %95 = arith.addi %94, %c0_i32_43 : i32
    %96 = arith.index_cast %95 : i32 to index
    %97 = memref.load %arg2[%96] : memref<72xf32, #tpu.memory_space<smem>>
    %98 = vector.broadcast %97 : f32 to vector<2x256xf32>
    %99 = arith.mulf %78, %98 : vector<2x256xf32>
    %100 = arith.addf %77, %99 : vector<2x256xf32>
    %101 = vector.extract_strided_slice %56 {offsets = [0, 143], sizes = [2, 256], strides = [1, 1]} : vector<2x512xf32> to vector<2x256xf32>
    %c8_i32_44 = arith.constant 8 : i32
    %102 = arith.muli %arg0, %c8_i32_44 : i32
    %c0_i32_45 = arith.constant 0 : i32
    %103 = arith.addi %102, %c0_i32_45 : i32
    %c0_i32_46 = arith.constant 0 : i32
    %104 = arith.addi %103, %c0_i32_46 : i32
    %c9_i32_47 = arith.constant 9 : i32
    %105 = arith.muli %104, %c9_i32_47 : i32
    %c6_i32 = arith.constant 6 : i32
    %106 = arith.addi %105, %c6_i32 : i32
    %c0_i32_48 = arith.constant 0 : i32
    %107 = arith.addi %106, %c0_i32_48 : i32
    %108 = arith.index_cast %107 : i32 to index
    %109 = memref.load %arg2[%108] : memref<72xf32, #tpu.memory_space<smem>>
    %110 = vector.broadcast %109 : f32 to vector<2x256xf32>
    %111 = arith.mulf %101, %110 : vector<2x256xf32>
    %112 = arith.addf %89, %111 : vector<2x256xf32>
    %c8_i32_49 = arith.constant 8 : i32
    %113 = arith.muli %arg0, %c8_i32_49 : i32
    %c0_i32_50 = arith.constant 0 : i32
    %114 = arith.addi %113, %c0_i32_50 : i32
    %c1_i32_51 = arith.constant 1 : i32
    %115 = arith.addi %114, %c1_i32_51 : i32
    %c9_i32_52 = arith.constant 9 : i32
    %116 = arith.muli %115, %c9_i32_52 : i32
    %c6_i32_53 = arith.constant 6 : i32
    %117 = arith.addi %116, %c6_i32_53 : i32
    %c0_i32_54 = arith.constant 0 : i32
    %118 = arith.addi %117, %c0_i32_54 : i32
    %119 = arith.index_cast %118 : i32 to index
    %120 = memref.load %arg2[%119] : memref<72xf32, #tpu.memory_space<smem>>
    %121 = vector.broadcast %120 : f32 to vector<2x256xf32>
    %122 = arith.mulf %101, %121 : vector<2x256xf32>
    %123 = arith.addf %100, %122 : vector<2x256xf32>
    %cst = arith.constant 0.000000e+00 : f32
    %124 = vector.broadcast %cst : f32 to vector<2x256xf32>
    %125 = arith.select %32, %112, %124 : vector<2x256xi1>, vector<2x256xf32>
    %cst_55 = arith.constant 0.000000e+00 : f32
    %126 = vector.broadcast %cst_55 : f32 to vector<2x256xf32>
    %127 = arith.select %32, %123, %126 : vector<2x256xi1>, vector<2x256xf32>
    %128 = vector.extract_strided_slice %56 {offsets = [0, 112], sizes = [2, 256], strides = [1, 1]} : vector<2x512xf32> to vector<2x256xf32>
    %c8_i32_56 = arith.constant 8 : i32
    %129 = arith.muli %arg0, %c8_i32_56 : i32
    %c0_i32_57 = arith.constant 0 : i32
    %130 = arith.addi %129, %c0_i32_57 : i32
    %c0_i32_58 = arith.constant 0 : i32
    %131 = arith.addi %130, %c0_i32_58 : i32
    %c9_i32_59 = arith.constant 9 : i32
    %132 = arith.muli %131, %c9_i32_59 : i32
    %c0_i32_60 = arith.constant 0 : i32
    %133 = arith.addi %132, %c0_i32_60 : i32
    %c1_i32_61 = arith.constant 1 : i32
    %134 = arith.addi %133, %c1_i32_61 : i32
    %135 = arith.index_cast %134 : i32 to index
    %136 = memref.load %arg2[%135] : memref<72xf32, #tpu.memory_space<smem>>
    %137 = vector.broadcast %136 : f32 to vector<2x256xf32>
    %138 = arith.mulf %128, %137 : vector<2x256xf32>
    %c8_i32_62 = arith.constant 8 : i32
    %139 = arith.muli %arg0, %c8_i32_62 : i32
    %c0_i32_63 = arith.constant 0 : i32
    %140 = arith.addi %139, %c0_i32_63 : i32
    %c1_i32_64 = arith.constant 1 : i32
    %141 = arith.addi %140, %c1_i32_64 : i32
    %c9_i32_65 = arith.constant 9 : i32
    %142 = arith.muli %141, %c9_i32_65 : i32
    %c0_i32_66 = arith.constant 0 : i32
    %143 = arith.addi %142, %c0_i32_66 : i32
    %c1_i32_67 = arith.constant 1 : i32
    %144 = arith.addi %143, %c1_i32_67 : i32
    %145 = arith.index_cast %144 : i32 to index
    %146 = memref.load %arg2[%145] : memref<72xf32, #tpu.memory_space<smem>>
    %147 = vector.broadcast %146 : f32 to vector<2x256xf32>
    %148 = arith.mulf %128, %147 : vector<2x256xf32>
    %149 = vector.extract_strided_slice %56 {offsets = [0, 128], sizes = [2, 256], strides = [1, 1]} : vector<2x512xf32> to vector<2x256xf32>
    %c8_i32_68 = arith.constant 8 : i32
    %150 = arith.muli %arg0, %c8_i32_68 : i32
    %c0_i32_69 = arith.constant 0 : i32
    %151 = arith.addi %150, %c0_i32_69 : i32
    %c0_i32_70 = arith.constant 0 : i32
    %152 = arith.addi %151, %c0_i32_70 : i32
    %c9_i32_71 = arith.constant 9 : i32
    %153 = arith.muli %152, %c9_i32_71 : i32
    %c3_i32_72 = arith.constant 3 : i32
    %154 = arith.addi %153, %c3_i32_72 : i32
    %c1_i32_73 = arith.constant 1 : i32
    %155 = arith.addi %154, %c1_i32_73 : i32
    %156 = arith.index_cast %155 : i32 to index
    %157 = memref.load %arg2[%156] : memref<72xf32, #tpu.memory_space<smem>>
    %158 = vector.broadcast %157 : f32 to vector<2x256xf32>
    %159 = arith.mulf %149, %158 : vector<2x256xf32>
    %160 = arith.addf %138, %159 : vector<2x256xf32>
    %c8_i32_74 = arith.constant 8 : i32
    %161 = arith.muli %arg0, %c8_i32_74 : i32
    %c0_i32_75 = arith.constant 0 : i32
    %162 = arith.addi %161, %c0_i32_75 : i32
    %c1_i32_76 = arith.constant 1 : i32
    %163 = arith.addi %162, %c1_i32_76 : i32
    %c9_i32_77 = arith.constant 9 : i32
    %164 = arith.muli %163, %c9_i32_77 : i32
    %c3_i32_78 = arith.constant 3 : i32
    %165 = arith.addi %164, %c3_i32_78 : i32
    %c1_i32_79 = arith.constant 1 : i32
    %166 = arith.addi %165, %c1_i32_79 : i32
    %167 = arith.index_cast %166 : i32 to index
    %168 = memref.load %arg2[%167] : memref<72xf32, #tpu.memory_space<smem>>
    %169 = vector.broadcast %168 : f32 to vector<2x256xf32>
    %170 = arith.mulf %149, %169 : vector<2x256xf32>
    %171 = arith.addf %148, %170 : vector<2x256xf32>
    %172 = vector.extract_strided_slice %56 {offsets = [0, 144], sizes = [2, 256], strides = [1, 1]} : vector<2x512xf32> to vector<2x256xf32>
    %c8_i32_80 = arith.constant 8 : i32
    %173 = arith.muli %arg0, %c8_i32_80 : i32
    %c0_i32_81 = arith.constant 0 : i32
    %174 = arith.addi %173, %c0_i32_81 : i32
    %c0_i32_82 = arith.constant 0 : i32
    %175 = arith.addi %174, %c0_i32_82 : i32
    %c9_i32_83 = arith.constant 9 : i32
    %176 = arith.muli %175, %c9_i32_83 : i32
    %c6_i32_84 = arith.constant 6 : i32
    %177 = arith.addi %176, %c6_i32_84 : i32
    %c1_i32_85 = arith.constant 1 : i32
    %178 = arith.addi %177, %c1_i32_85 : i32
    %179 = arith.index_cast %178 : i32 to index
    %180 = memref.load %arg2[%179] : memref<72xf32, #tpu.memory_space<smem>>
    %181 = vector.broadcast %180 : f32 to vector<2x256xf32>
    %182 = arith.mulf %172, %181 : vector<2x256xf32>
    %183 = arith.addf %160, %182 : vector<2x256xf32>
    %c8_i32_86 = arith.constant 8 : i32
    %184 = arith.muli %arg0, %c8_i32_86 : i32
    %c0_i32_87 = arith.constant 0 : i32
    %185 = arith.addi %184, %c0_i32_87 : i32
    %c1_i32_88 = arith.constant 1 : i32
    %186 = arith.addi %185, %c1_i32_88 : i32
    %c9_i32_89 = arith.constant 9 : i32
    %187 = arith.muli %186, %c9_i32_89 : i32
    %c6_i32_90 = arith.constant 6 : i32
    %188 = arith.addi %187, %c6_i32_90 : i32
    %c1_i32_91 = arith.constant 1 : i32
    %189 = arith.addi %188, %c1_i32_91 : i32
    %190 = arith.index_cast %189 : i32 to index
    %191 = memref.load %arg2[%190] : memref<72xf32, #tpu.memory_space<smem>>
    %192 = vector.broadcast %191 : f32 to vector<2x256xf32>
    %193 = arith.mulf %172, %192 : vector<2x256xf32>
    %194 = arith.addf %171, %193 : vector<2x256xf32>
    %cst_92 = arith.constant 0.000000e+00 : f32
    %195 = vector.broadcast %cst_92 : f32 to vector<2x256xf32>
    %196 = arith.select %43, %183, %195 : vector<2x256xi1>, vector<2x256xf32>
    %197 = arith.addf %125, %196 : vector<2x256xf32>
    %cst_93 = arith.constant 0.000000e+00 : f32
    %198 = vector.broadcast %cst_93 : f32 to vector<2x256xf32>
    %199 = arith.select %43, %194, %198 : vector<2x256xi1>, vector<2x256xf32>
    %200 = arith.addf %127, %199 : vector<2x256xf32>
    %201 = vector.extract_strided_slice %56 {offsets = [0, 113], sizes = [2, 256], strides = [1, 1]} : vector<2x512xf32> to vector<2x256xf32>
    %c8_i32_94 = arith.constant 8 : i32
    %202 = arith.muli %arg0, %c8_i32_94 : i32
    %c0_i32_95 = arith.constant 0 : i32
    %203 = arith.addi %202, %c0_i32_95 : i32
    %c0_i32_96 = arith.constant 0 : i32
    %204 = arith.addi %203, %c0_i32_96 : i32
    %c9_i32_97 = arith.constant 9 : i32
    %205 = arith.muli %204, %c9_i32_97 : i32
    %c0_i32_98 = arith.constant 0 : i32
    %206 = arith.addi %205, %c0_i32_98 : i32
    %c2_i32 = arith.constant 2 : i32
    %207 = arith.addi %206, %c2_i32 : i32
    %208 = arith.index_cast %207 : i32 to index
    %209 = memref.load %arg2[%208] : memref<72xf32, #tpu.memory_space<smem>>
    %210 = vector.broadcast %209 : f32 to vector<2x256xf32>
    %211 = arith.mulf %201, %210 : vector<2x256xf32>
    %c8_i32_99 = arith.constant 8 : i32
    %212 = arith.muli %arg0, %c8_i32_99 : i32
    %c0_i32_100 = arith.constant 0 : i32
    %213 = arith.addi %212, %c0_i32_100 : i32
    %c1_i32_101 = arith.constant 1 : i32
    %214 = arith.addi %213, %c1_i32_101 : i32
    %c9_i32_102 = arith.constant 9 : i32
    %215 = arith.muli %214, %c9_i32_102 : i32
    %c0_i32_103 = arith.constant 0 : i32
    %216 = arith.addi %215, %c0_i32_103 : i32
    %c2_i32_104 = arith.constant 2 : i32
    %217 = arith.addi %216, %c2_i32_104 : i32
    %218 = arith.index_cast %217 : i32 to index
    %219 = memref.load %arg2[%218] : memref<72xf32, #tpu.memory_space<smem>>
    %220 = vector.broadcast %219 : f32 to vector<2x256xf32>
    %221 = arith.mulf %201, %220 : vector<2x256xf32>
    %222 = vector.extract_strided_slice %56 {offsets = [0, 129], sizes = [2, 256], strides = [1, 1]} : vector<2x512xf32> to vector<2x256xf32>
    %c8_i32_105 = arith.constant 8 : i32
    %223 = arith.muli %arg0, %c8_i32_105 : i32
    %c0_i32_106 = arith.constant 0 : i32
    %224 = arith.addi %223, %c0_i32_106 : i32
    %c0_i32_107 = arith.constant 0 : i32
    %225 = arith.addi %224, %c0_i32_107 : i32
    %c9_i32_108 = arith.constant 9 : i32
    %226 = arith.muli %225, %c9_i32_108 : i32
    %c3_i32_109 = arith.constant 3 : i32
    %227 = arith.addi %226, %c3_i32_109 : i32
    %c2_i32_110 = arith.constant 2 : i32
    %228 = arith.addi %227, %c2_i32_110 : i32
    %229 = arith.index_cast %228 : i32 to index
    %230 = memref.load %arg2[%229] : memref<72xf32, #tpu.memory_space<smem>>
    %231 = vector.broadcast %230 : f32 to vector<2x256xf32>
    %232 = arith.mulf %222, %231 : vector<2x256xf32>
    %233 = arith.addf %211, %232 : vector<2x256xf32>
    %c8_i32_111 = arith.constant 8 : i32
    %234 = arith.muli %arg0, %c8_i32_111 : i32
    %c0_i32_112 = arith.constant 0 : i32
    %235 = arith.addi %234, %c0_i32_112 : i32
    %c1_i32_113 = arith.constant 1 : i32
    %236 = arith.addi %235, %c1_i32_113 : i32
    %c9_i32_114 = arith.constant 9 : i32
    %237 = arith.muli %236, %c9_i32_114 : i32
    %c3_i32_115 = arith.constant 3 : i32
    %238 = arith.addi %237, %c3_i32_115 : i32
    %c2_i32_116 = arith.constant 2 : i32
    %239 = arith.addi %238, %c2_i32_116 : i32
    %240 = arith.index_cast %239 : i32 to index
    %241 = memref.load %arg2[%240] : memref<72xf32, #tpu.memory_space<smem>>
    %242 = vector.broadcast %241 : f32 to vector<2x256xf32>
    %243 = arith.mulf %222, %242 : vector<2x256xf32>
    %244 = arith.addf %221, %243 : vector<2x256xf32>
    %245 = vector.extract_strided_slice %56 {offsets = [0, 145], sizes = [2, 256], strides = [1, 1]} : vector<2x512xf32> to vector<2x256xf32>
    %c8_i32_117 = arith.constant 8 : i32
    %246 = arith.muli %arg0, %c8_i32_117 : i32
    %c0_i32_118 = arith.constant 0 : i32
    %247 = arith.addi %246, %c0_i32_118 : i32
    %c0_i32_119 = arith.constant 0 : i32
    %248 = arith.addi %247, %c0_i32_119 : i32
    %c9_i32_120 = arith.constant 9 : i32
    %249 = arith.muli %248, %c9_i32_120 : i32
    %c6_i32_121 = arith.constant 6 : i32
    %250 = arith.addi %249, %c6_i32_121 : i32
    %c2_i32_122 = arith.constant 2 : i32
    %251 = arith.addi %250, %c2_i32_122 : i32
    %252 = arith.index_cast %251 : i32 to index
    %253 = memref.load %arg2[%252] : memref<72xf32, #tpu.memory_space<smem>>
    %254 = vector.broadcast %253 : f32 to vector<2x256xf32>
    %255 = arith.mulf %245, %254 : vector<2x256xf32>
    %256 = arith.addf %233, %255 : vector<2x256xf32>
    %c8_i32_123 = arith.constant 8 : i32
    %257 = arith.muli %arg0, %c8_i32_123 : i32
    %c0_i32_124 = arith.constant 0 : i32
    %258 = arith.addi %257, %c0_i32_124 : i32
    %c1_i32_125 = arith.constant 1 : i32
    %259 = arith.addi %258, %c1_i32_125 : i32
    %c9_i32_126 = arith.constant 9 : i32
    %260 = arith.muli %259, %c9_i32_126 : i32
    %c6_i32_127 = arith.constant 6 : i32
    %261 = arith.addi %260, %c6_i32_127 : i32
    %c2_i32_128 = arith.constant 2 : i32
    %262 = arith.addi %261, %c2_i32_128 : i32
    %263 = arith.index_cast %262 : i32 to index
    %264 = memref.load %arg2[%263] : memref<72xf32, #tpu.memory_space<smem>>
    %265 = vector.broadcast %264 : f32 to vector<2x256xf32>
    %266 = arith.mulf %245, %265 : vector<2x256xf32>
    %267 = arith.addf %244, %266 : vector<2x256xf32>
    %cst_129 = arith.constant 0.000000e+00 : f32
    %268 = vector.broadcast %cst_129 : f32 to vector<2x256xf32>
    %269 = arith.select %54, %256, %268 : vector<2x256xi1>, vector<2x256xf32>
    %270 = arith.addf %197, %269 : vector<2x256xf32>
    %cst_130 = arith.constant 0.000000e+00 : f32
    %271 = vector.broadcast %cst_130 : f32 to vector<2x256xf32>
    %272 = arith.select %54, %267, %271 : vector<2x256xi1>, vector<2x256xf32>
    %273 = arith.addf %200, %272 : vector<2x256xf32>
    %c8_i32_131 = arith.constant 8 : i32
    %274 = arith.muli %arg0, %c8_i32_131 : i32
    %c0_i32_132 = arith.constant 0 : i32
    %275 = arith.addi %274, %c0_i32_132 : i32
    %276 = vector.shape_cast %270 : vector<2x256xf32> to vector<1x2x256xf32>
    %cst_133 = arith.constant dense<0.000000e+00> : vector<1xf32>
    %277 = vector.multi_reduction <add>, %276, %cst_133 [1, 2] : vector<1x2x256xf32> to vector<1xf32>
    %278 = vector.shape_cast %277 : vector<1xf32> to vector<1x1x1xf32>
    %279 = vector.extract %278[0, 0, 0] : f32 from vector<1x1x1xf32>
    %280 = arith.mulf %270, %270 : vector<2x256xf32>
    %281 = vector.shape_cast %280 : vector<2x256xf32> to vector<1x2x256xf32>
    %cst_134 = arith.constant dense<0.000000e+00> : vector<1xf32>
    %282 = vector.multi_reduction <add>, %281, %cst_134 [1, 2] : vector<1x2x256xf32> to vector<1xf32>
    %283 = vector.shape_cast %282 : vector<1xf32> to vector<1x1x1xf32>
    %284 = vector.extract %283[0, 0, 0] : f32 from vector<1x1x1xf32>
    %cst_135 = arith.constant 0.001953125 : f32
    %285 = arith.mulf %279, %cst_135 : f32
    %cst_136 = arith.constant 0.001953125 : f32
    %286 = arith.mulf %284, %cst_136 : f32
    %287 = arith.mulf %285, %285 : f32
    %288 = arith.subf %286, %287 : f32
    %cst_137 = arith.constant 9.99999974E-6 : f32
    %289 = arith.addf %288, %cst_137 : f32
    %290 = math.rsqrt %289 : f32
    %291 = arith.index_cast %275 : i32 to index
    %292 = memref.load %arg3[%291] : memref<8xf32, #tpu.memory_space<smem>>
    %293 = arith.mulf %290, %292 : f32
    %294 = arith.index_cast %275 : i32 to index
    %295 = memref.load %arg4[%294] : memref<8xf32, #tpu.memory_space<smem>>
    %296 = arith.mulf %285, %293 : f32
    %297 = arith.subf %295, %296 : f32
    %298 = vector.broadcast %293 : f32 to vector<2x256xf32>
    %299 = arith.mulf %270, %298 : vector<2x256xf32>
    %300 = vector.broadcast %297 : f32 to vector<2x256xf32>
    %301 = arith.addf %299, %300 : vector<2x256xf32>
    %c0_138 = arith.constant 0 : index
    %c0_139 = arith.constant 0 : index
    %c0_140 = arith.constant 0 : index
    %302 = vector.load %arg5[%c0_138, %c0_139, %c0_140] : memref<2x8x256xf32, #tpu.memory_space<vmem>>, vector<2x1x256xf32>
    %303 = vector.shape_cast %302 : vector<2x1x256xf32> to vector<2x256xf32>
    %304 = vector.shape_cast %301 : vector<2x256xf32> to vector<2x1x256xf32>
    tpu.vector_store %arg5[%c0_138, %c0_139, %c0_140], %304 {strides = array<i32>} : memref<2x8x256xf32, #tpu.memory_space<vmem>>, vector<2x1x256xf32>,
    %c8_i32_141 = arith.constant 8 : i32
    %305 = arith.muli %arg0, %c8_i32_141 : i32
    %c1_i32_142 = arith.constant 1 : i32
    %306 = arith.addi %305, %c1_i32_142 : i32
    %307 = vector.shape_cast %273 : vector<2x256xf32> to vector<1x2x256xf32>
    %cst_143 = arith.constant dense<0.000000e+00> : vector<1xf32>
    %308 = vector.multi_reduction <add>, %307, %cst_143 [1, 2] : vector<1x2x256xf32> to vector<1xf32>
    %309 = vector.shape_cast %308 : vector<1xf32> to vector<1x1x1xf32>
    %310 = vector.extract %309[0, 0, 0] : f32 from vector<1x1x1xf32>
    %311 = arith.mulf %273, %273 : vector<2x256xf32>
    %312 = vector.shape_cast %311 : vector<2x256xf32> to vector<1x2x256xf32>
    %cst_144 = arith.constant dense<0.000000e+00> : vector<1xf32>
    %313 = vector.multi_reduction <add>, %312, %cst_144 [1, 2] : vector<1x2x256xf32> to vector<1xf32>
    %314 = vector.shape_cast %313 : vector<1xf32> to vector<1x1x1xf32>
    %315 = vector.extract %314[0, 0, 0] : f32 from vector<1x1x1xf32>
    %cst_145 = arith.constant 0.001953125 : f32
    %316 = arith.mulf %310, %cst_145 : f32
    %cst_146 = arith.constant 0.001953125 : f32
    %317 = arith.mulf %315, %cst_146 : f32
    %318 = arith.mulf %316, %316 : f32
    %319 = arith.subf %317, %318 : f32
    %cst_147 = arith.constant 9.99999974E-6 : f32
    %320 = arith.addf %319, %cst_147 : f32
    %321 = math.rsqrt %320 : f32
    %322 = arith.index_cast %306 : i32 to index
    %323 = memref.load %arg3[%322] : memref<8xf32, #tpu.memory_space<smem>>
    %324 = arith.mulf %321, %323 : f32
    %325 = arith.index_cast %306 : i32 to index
    %326 = memref.load %arg4[%325] : memref<8xf32, #tpu.memory_space<smem>>
    %327 = arith.mulf %316, %324 : f32
    %328 = arith.subf %326, %327 : f32
    %329 = vector.broadcast %324 : f32 to vector<2x256xf32>
    %330 = arith.mulf %273, %329 : vector<2x256xf32>
    %331 = vector.broadcast %328 : f32 to vector<2x256xf32>
    %332 = arith.addf %330, %331 : vector<2x256xf32>
    %c0_148 = arith.constant 0 : index
    %c1 = arith.constant 1 : index
    %c0_149 = arith.constant 0 : index
    %333 = vector.load %arg5[%c0_148, %c1, %c0_149] : memref<2x8x256xf32, #tpu.memory_space<vmem>>, vector<2x1x256xf32>
    %334 = vector.shape_cast %333 : vector<2x1x256xf32> to vector<2x256xf32>
    %335 = vector.shape_cast %332 : vector<2x256xf32> to vector<2x1x256xf32>
    tpu.vector_store %arg5[%c0_148, %c1, %c0_149], %335 {strides = array<i32>} : memref<2x8x256xf32, #tpu.memory_space<vmem>>, vector<2x1x256xf32>,
    %c0_150 = arith.constant 0 : index
    %c1_151 = arith.constant 1 : index
    %c0_152 = arith.constant 0 : index
    %336 = vector.load %arg6[%c0_150, %c1_151, %c0_152] : memref<2x4x512xf32, #tpu.memory_space<vmem>>, vector<2x1x512xf32>
    %337 = vector.shape_cast %336 : vector<2x1x512xf32> to vector<2x512xf32>
    %338 = vector.extract_strided_slice %337 {offsets = [0, 111], sizes = [2, 256], strides = [1, 1]} : vector<2x512xf32> to vector<2x256xf32>
    %c8_i32_153 = arith.constant 8 : i32
    %339 = arith.muli %arg0, %c8_i32_153 : i32
    %c2_i32_154 = arith.constant 2 : i32
    %340 = arith.addi %339, %c2_i32_154 : i32
    %c0_i32_155 = arith.constant 0 : i32
    %341 = arith.addi %340, %c0_i32_155 : i32
    %c9_i32_156 = arith.constant 9 : i32
    %342 = arith.muli %341, %c9_i32_156 : i32
    %c0_i32_157 = arith.constant 0 : i32
    %343 = arith.addi %342, %c0_i32_157 : i32
    %c0_i32_158 = arith.constant 0 : i32
    %344 = arith.addi %343, %c0_i32_158 : i32
    %345 = arith.index_cast %344 : i32 to index
    %346 = memref.load %arg2[%345] : memref<72xf32, #tpu.memory_space<smem>>
    %347 = vector.broadcast %346 : f32 to vector<2x256xf32>
    %348 = arith.mulf %338, %347 : vector<2x256xf32>
    %c8_i32_159 = arith.constant 8 : i32
    %349 = arith.muli %arg0, %c8_i32_159 : i32
    %c2_i32_160 = arith.constant 2 : i32
    %350 = arith.addi %349, %c2_i32_160 : i32
    %c1_i32_161 = arith.constant 1 : i32
    %351 = arith.addi %350, %c1_i32_161 : i32
    %c9_i32_162 = arith.constant 9 : i32
    %352 = arith.muli %351, %c9_i32_162 : i32
    %c0_i32_163 = arith.constant 0 : i32
    %353 = arith.addi %352, %c0_i32_163 : i32
    %c0_i32_164 = arith.constant 0 : i32
    %354 = arith.addi %353, %c0_i32_164 : i32
    %355 = arith.index_cast %354 : i32 to index
    %356 = memref.load %arg2[%355] : memref<72xf32, #tpu.memory_space<smem>>
    %357 = vector.broadcast %356 : f32 to vector<2x256xf32>
    %358 = arith.mulf %338, %357 : vector<2x256xf32>
    %359 = vector.extract_strided_slice %337 {offsets = [0, 127], sizes = [2, 256], strides = [1, 1]} : vector<2x512xf32> to vector<2x256xf32>
    %c8_i32_165 = arith.constant 8 : i32
    %360 = arith.muli %arg0, %c8_i32_165 : i32
    %c2_i32_166 = arith.constant 2 : i32
    %361 = arith.addi %360, %c2_i32_166 : i32
    %c0_i32_167 = arith.constant 0 : i32
    %362 = arith.addi %361, %c0_i32_167 : i32
    %c9_i32_168 = arith.constant 9 : i32
    %363 = arith.muli %362, %c9_i32_168 : i32
    %c3_i32_169 = arith.constant 3 : i32
    %364 = arith.addi %363, %c3_i32_169 : i32
    %c0_i32_170 = arith.constant 0 : i32
    %365 = arith.addi %364, %c0_i32_170 : i32
    %366 = arith.index_cast %365 : i32 to index
    %367 = memref.load %arg2[%366] : memref<72xf32, #tpu.memory_space<smem>>
    %368 = vector.broadcast %367 : f32 to vector<2x256xf32>
    %369 = arith.mulf %359, %368 : vector<2x256xf32>
    %370 = arith.addf %348, %369 : vector<2x256xf32>
    %c8_i32_171 = arith.constant 8 : i32
    %371 = arith.muli %arg0, %c8_i32_171 : i32
    %c2_i32_172 = arith.constant 2 : i32
    %372 = arith.addi %371, %c2_i32_172 : i32
    %c1_i32_173 = arith.constant 1 : i32
    %373 = arith.addi %372, %c1_i32_173 : i32
    %c9_i32_174 = arith.constant 9 : i32
    %374 = arith.muli %373, %c9_i32_174 : i32
    %c3_i32_175 = arith.constant 3 : i32
    %375 = arith.addi %374, %c3_i32_175 : i32
    %c0_i32_176 = arith.constant 0 : i32
    %376 = arith.addi %375, %c0_i32_176 : i32
    %377 = arith.index_cast %376 : i32 to index
    %378 = memref.load %arg2[%377] : memref<72xf32, #tpu.memory_space<smem>>
    %379 = vector.broadcast %378 : f32 to vector<2x256xf32>
    %380 = arith.mulf %359, %379 : vector<2x256xf32>
    %381 = arith.addf %358, %380 : vector<2x256xf32>
    %382 = vector.extract_strided_slice %337 {offsets = [0, 143], sizes = [2, 256], strides = [1, 1]} : vector<2x512xf32> to vector<2x256xf32>
    %c8_i32_177 = arith.constant 8 : i32
    %383 = arith.muli %arg0, %c8_i32_177 : i32
    %c2_i32_178 = arith.constant 2 : i32
    %384 = arith.addi %383, %c2_i32_178 : i32
    %c0_i32_179 = arith.constant 0 : i32
    %385 = arith.addi %384, %c0_i32_179 : i32
    %c9_i32_180 = arith.constant 9 : i32
    %386 = arith.muli %385, %c9_i32_180 : i32
    %c6_i32_181 = arith.constant 6 : i32
    %387 = arith.addi %386, %c6_i32_181 : i32
    %c0_i32_182 = arith.constant 0 : i32
    %388 = arith.addi %387, %c0_i32_182 : i32
    %389 = arith.index_cast %388 : i32 to index
    %390 = memref.load %arg2[%389] : memref<72xf32, #tpu.memory_space<smem>>
    %391 = vector.broadcast %390 : f32 to vector<2x256xf32>
    %392 = arith.mulf %382, %391 : vector<2x256xf32>
    %393 = arith.addf %370, %392 : vector<2x256xf32>
    %c8_i32_183 = arith.constant 8 : i32
    %394 = arith.muli %arg0, %c8_i32_183 : i32
    %c2_i32_184 = arith.constant 2 : i32
    %395 = arith.addi %394, %c2_i32_184 : i32
    %c1_i32_185 = arith.constant 1 : i32
    %396 = arith.addi %395, %c1_i32_185 : i32
    %c9_i32_186 = arith.constant 9 : i32
    %397 = arith.muli %396, %c9_i32_186 : i32
    %c6_i32_187 = arith.constant 6 : i32
    %398 = arith.addi %397, %c6_i32_187 : i32
    %c0_i32_188 = arith.constant 0 : i32
    %399 = arith.addi %398, %c0_i32_188 : i32
    %400 = arith.index_cast %399 : i32 to index
    %401 = memref.load %arg2[%400] : memref<72xf32, #tpu.memory_space<smem>>
    %402 = vector.broadcast %401 : f32 to vector<2x256xf32>
    %403 = arith.mulf %382, %402 : vector<2x256xf32>
    %404 = arith.addf %381, %403 : vector<2x256xf32>
    %cst_189 = arith.constant 0.000000e+00 : f32
    %405 = vector.broadcast %cst_189 : f32 to vector<2x256xf32>
    %406 = arith.select %32, %393, %405 : vector<2x256xi1>, vector<2x256xf32>
    %cst_190 = arith.constant 0.000000e+00 : f32
    %407 = vector.broadcast %cst_190 : f32 to vector<2x256xf32>
    %408 = arith.select %32, %404, %407 : vector<2x256xi1>, vector<2x256xf32>
    %409 = vector.extract_strided_slice %337 {offsets = [0, 112], sizes = [2, 256], strides = [1, 1]} : vector<2x512xf32> to vector<2x256xf32>
    %c8_i32_191 = arith.constant 8 : i32
    %410 = arith.muli %arg0, %c8_i32_191 : i32
    %c2_i32_192 = arith.constant 2 : i32
    %411 = arith.addi %410, %c2_i32_192 : i32
    %c0_i32_193 = arith.constant 0 : i32
    %412 = arith.addi %411, %c0_i32_193 : i32
    %c9_i32_194 = arith.constant 9 : i32
    %413 = arith.muli %412, %c9_i32_194 : i32
    %c0_i32_195 = arith.constant 0 : i32
    %414 = arith.addi %413, %c0_i32_195 : i32
    %c1_i32_196 = arith.constant 1 : i32
    %415 = arith.addi %414, %c1_i32_196 : i32
    %416 = arith.index_cast %415 : i32 to index
    %417 = memref.load %arg2[%416] : memref<72xf32, #tpu.memory_space<smem>>
    %418 = vector.broadcast %417 : f32 to vector<2x256xf32>
    %419 = arith.mulf %409, %418 : vector<2x256xf32>
    %c8_i32_197 = arith.constant 8 : i32
    %420 = arith.muli %arg0, %c8_i32_197 : i32
    %c2_i32_198 = arith.constant 2 : i32
    %421 = arith.addi %420, %c2_i32_198 : i32
    %c1_i32_199 = arith.constant 1 : i32
    %422 = arith.addi %421, %c1_i32_199 : i32
    %c9_i32_200 = arith.constant 9 : i32
    %423 = arith.muli %422, %c9_i32_200 : i32
    %c0_i32_201 = arith.constant 0 : i32
    %424 = arith.addi %423, %c0_i32_201 : i32
    %c1_i32_202 = arith.constant 1 : i32
    %425 = arith.addi %424, %c1_i32_202 : i32
    %426 = arith.index_cast %425 : i32 to index
    %427 = memref.load %arg2[%426] : memref<72xf32, #tpu.memory_space<smem>>
    %428 = vector.broadcast %427 : f32 to vector<2x256xf32>
    %429 = arith.mulf %409, %428 : vector<2x256xf32>
    %430 = vector.extract_strided_slice %337 {offsets = [0, 128], sizes = [2, 256], strides = [1, 1]} : vector<2x512xf32> to vector<2x256xf32>
    %c8_i32_203 = arith.constant 8 : i32
    %431 = arith.muli %arg0, %c8_i32_203 : i32
    %c2_i32_204 = arith.constant 2 : i32
    %432 = arith.addi %431, %c2_i32_204 : i32
    %c0_i32_205 = arith.constant 0 : i32
    %433 = arith.addi %432, %c0_i32_205 : i32
    %c9_i32_206 = arith.constant 9 : i32
    %434 = arith.muli %433, %c9_i32_206 : i32
    %c3_i32_207 = arith.constant 3 : i32
    %435 = arith.addi %434, %c3_i32_207 : i32
    %c1_i32_208 = arith.constant 1 : i32
    %436 = arith.addi %435, %c1_i32_208 : i32
    %437 = arith.index_cast %436 : i32 to index
    %438 = memref.load %arg2[%437] : memref<72xf32, #tpu.memory_space<smem>>
    %439 = vector.broadcast %438 : f32 to vector<2x256xf32>
    %440 = arith.mulf %430, %439 : vector<2x256xf32>
    %441 = arith.addf %419, %440 : vector<2x256xf32>
    %c8_i32_209 = arith.constant 8 : i32
    %442 = arith.muli %arg0, %c8_i32_209 : i32
    %c2_i32_210 = arith.constant 2 : i32
    %443 = arith.addi %442, %c2_i32_210 : i32
    %c1_i32_211 = arith.constant 1 : i32
    %444 = arith.addi %443, %c1_i32_211 : i32
    %c9_i32_212 = arith.constant 9 : i32
    %445 = arith.muli %444, %c9_i32_212 : i32
    %c3_i32_213 = arith.constant 3 : i32
    %446 = arith.addi %445, %c3_i32_213 : i32
    %c1_i32_214 = arith.constant 1 : i32
    %447 = arith.addi %446, %c1_i32_214 : i32
    %448 = arith.index_cast %447 : i32 to index
    %449 = memref.load %arg2[%448] : memref<72xf32, #tpu.memory_space<smem>>
    %450 = vector.broadcast %449 : f32 to vector<2x256xf32>
    %451 = arith.mulf %430, %450 : vector<2x256xf32>
    %452 = arith.addf %429, %451 : vector<2x256xf32>
    %453 = vector.extract_strided_slice %337 {offsets = [0, 144], sizes = [2, 256], strides = [1, 1]} : vector<2x512xf32> to vector<2x256xf32>
    %c8_i32_215 = arith.constant 8 : i32
    %454 = arith.muli %arg0, %c8_i32_215 : i32
    %c2_i32_216 = arith.constant 2 : i32
    %455 = arith.addi %454, %c2_i32_216 : i32
    %c0_i32_217 = arith.constant 0 : i32
    %456 = arith.addi %455, %c0_i32_217 : i32
    %c9_i32_218 = arith.constant 9 : i32
    %457 = arith.muli %456, %c9_i32_218 : i32
    %c6_i32_219 = arith.constant 6 : i32
    %458 = arith.addi %457, %c6_i32_219 : i32
    %c1_i32_220 = arith.constant 1 : i32
    %459 = arith.addi %458, %c1_i32_220 : i32
    %460 = arith.index_cast %459 : i32 to index
    %461 = memref.load %arg2[%460] : memref<72xf32, #tpu.memory_space<smem>>
    %462 = vector.broadcast %461 : f32 to vector<2x256xf32>
    %463 = arith.mulf %453, %462 : vector<2x256xf32>
    %464 = arith.addf %441, %463 : vector<2x256xf32>
    %c8_i32_221 = arith.constant 8 : i32
    %465 = arith.muli %arg0, %c8_i32_221 : i32
    %c2_i32_222 = arith.constant 2 : i32
    %466 = arith.addi %465, %c2_i32_222 : i32
    %c1_i32_223 = arith.constant 1 : i32
    %467 = arith.addi %466, %c1_i32_223 : i32
    %c9_i32_224 = arith.constant 9 : i32
    %468 = arith.muli %467, %c9_i32_224 : i32
    %c6_i32_225 = arith.constant 6 : i32
    %469 = arith.addi %468, %c6_i32_225 : i32
    %c1_i32_226 = arith.constant 1 : i32
    %470 = arith.addi %469, %c1_i32_226 : i32
    %471 = arith.index_cast %470 : i32 to index
    %472 = memref.load %arg2[%471] : memref<72xf32, #tpu.memory_space<smem>>
    %473 = vector.broadcast %472 : f32 to vector<2x256xf32>
    %474 = arith.mulf %453, %473 : vector<2x256xf32>
    %475 = arith.addf %452, %474 : vector<2x256xf32>
    %cst_227 = arith.constant 0.000000e+00 : f32
    %476 = vector.broadcast %cst_227 : f32 to vector<2x256xf32>
    %477 = arith.select %43, %464, %476 : vector<2x256xi1>, vector<2x256xf32>
    %478 = arith.addf %406, %477 : vector<2x256xf32>
    %cst_228 = arith.constant 0.000000e+00 : f32
    %479 = vector.broadcast %cst_228 : f32 to vector<2x256xf32>
    %480 = arith.select %43, %475, %479 : vector<2x256xi1>, vector<2x256xf32>
    %481 = arith.addf %408, %480 : vector<2x256xf32>
    %482 = vector.extract_strided_slice %337 {offsets = [0, 113], sizes = [2, 256], strides = [1, 1]} : vector<2x512xf32> to vector<2x256xf32>
    %c8_i32_229 = arith.constant 8 : i32
    %483 = arith.muli %arg0, %c8_i32_229 : i32
    %c2_i32_230 = arith.constant 2 : i32
    %484 = arith.addi %483, %c2_i32_230 : i32
    %c0_i32_231 = arith.constant 0 : i32
    %485 = arith.addi %484, %c0_i32_231 : i32
    %c9_i32_232 = arith.constant 9 : i32
    %486 = arith.muli %485, %c9_i32_232 : i32
    %c0_i32_233 = arith.constant 0 : i32
    %487 = arith.addi %486, %c0_i32_233 : i32
    %c2_i32_234 = arith.constant 2 : i32
    %488 = arith.addi %487, %c2_i32_234 : i32
    %489 = arith.index_cast %488 : i32 to index
    %490 = memref.load %arg2[%489] : memref<72xf32, #tpu.memory_space<smem>>
    %491 = vector.broadcast %490 : f32 to vector<2x256xf32>
    %492 = arith.mulf %482, %491 : vector<2x256xf32>
    %c8_i32_235 = arith.constant 8 : i32
    %493 = arith.muli %arg0, %c8_i32_235 : i32
    %c2_i32_236 = arith.constant 2 : i32
    %494 = arith.addi %493, %c2_i32_236 : i32
    %c1_i32_237 = arith.constant 1 : i32
    %495 = arith.addi %494, %c1_i32_237 : i32
    %c9_i32_238 = arith.constant 9 : i32
    %496 = arith.muli %495, %c9_i32_238 : i32
    %c0_i32_239 = arith.constant 0 : i32
    %497 = arith.addi %496, %c0_i32_239 : i32
    %c2_i32_240 = arith.constant 2 : i32
    %498 = arith.addi %497, %c2_i32_240 : i32
    %499 = arith.index_cast %498 : i32 to index
    %500 = memref.load %arg2[%499] : memref<72xf32, #tpu.memory_space<smem>>
    %501 = vector.broadcast %500 : f32 to vector<2x256xf32>
    %502 = arith.mulf %482, %501 : vector<2x256xf32>
    %503 = vector.extract_strided_slice %337 {offsets = [0, 129], sizes = [2, 256], strides = [1, 1]} : vector<2x512xf32> to vector<2x256xf32>
    %c8_i32_241 = arith.constant 8 : i32
    %504 = arith.muli %arg0, %c8_i32_241 : i32
    %c2_i32_242 = arith.constant 2 : i32
    %505 = arith.addi %504, %c2_i32_242 : i32
    %c0_i32_243 = arith.constant 0 : i32
    %506 = arith.addi %505, %c0_i32_243 : i32
    %c9_i32_244 = arith.constant 9 : i32
    %507 = arith.muli %506, %c9_i32_244 : i32
    %c3_i32_245 = arith.constant 3 : i32
    %508 = arith.addi %507, %c3_i32_245 : i32
    %c2_i32_246 = arith.constant 2 : i32
    %509 = arith.addi %508, %c2_i32_246 : i32
    %510 = arith.index_cast %509 : i32 to index
    %511 = memref.load %arg2[%510] : memref<72xf32, #tpu.memory_space<smem>>
    %512 = vector.broadcast %511 : f32 to vector<2x256xf32>
    %513 = arith.mulf %503, %512 : vector<2x256xf32>
    %514 = arith.addf %492, %513 : vector<2x256xf32>
    %c8_i32_247 = arith.constant 8 : i32
    %515 = arith.muli %arg0, %c8_i32_247 : i32
    %c2_i32_248 = arith.constant 2 : i32
    %516 = arith.addi %515, %c2_i32_248 : i32
    %c1_i32_249 = arith.constant 1 : i32
    %517 = arith.addi %516, %c1_i32_249 : i32
    %c9_i32_250 = arith.constant 9 : i32
    %518 = arith.muli %517, %c9_i32_250 : i32
    %c3_i32_251 = arith.constant 3 : i32
    %519 = arith.addi %518, %c3_i32_251 : i32
    %c2_i32_252 = arith.constant 2 : i32
    %520 = arith.addi %519, %c2_i32_252 : i32
    %521 = arith.index_cast %520 : i32 to index
    %522 = memref.load %arg2[%521] : memref<72xf32, #tpu.memory_space<smem>>
    %523 = vector.broadcast %522 : f32 to vector<2x256xf32>
    %524 = arith.mulf %503, %523 : vector<2x256xf32>
    %525 = arith.addf %502, %524 : vector<2x256xf32>
    %526 = vector.extract_strided_slice %337 {offsets = [0, 145], sizes = [2, 256], strides = [1, 1]} : vector<2x512xf32> to vector<2x256xf32>
    %c8_i32_253 = arith.constant 8 : i32
    %527 = arith.muli %arg0, %c8_i32_253 : i32
    %c2_i32_254 = arith.constant 2 : i32
    %528 = arith.addi %527, %c2_i32_254 : i32
    %c0_i32_255 = arith.constant 0 : i32
    %529 = arith.addi %528, %c0_i32_255 : i32
    %c9_i32_256 = arith.constant 9 : i32
    %530 = arith.muli %529, %c9_i32_256 : i32
    %c6_i32_257 = arith.constant 6 : i32
    %531 = arith.addi %530, %c6_i32_257 : i32
    %c2_i32_258 = arith.constant 2 : i32
    %532 = arith.addi %531, %c2_i32_258 : i32
    %533 = arith.index_cast %532 : i32 to index
    %534 = memref.load %arg2[%533] : memref<72xf32, #tpu.memory_space<smem>>
    %535 = vector.broadcast %534 : f32 to vector<2x256xf32>
    %536 = arith.mulf %526, %535 : vector<2x256xf32>
    %537 = arith.addf %514, %536 : vector<2x256xf32>
    %c8_i32_259 = arith.constant 8 : i32
    %538 = arith.muli %arg0, %c8_i32_259 : i32
    %c2_i32_260 = arith.constant 2 : i32
    %539 = arith.addi %538, %c2_i32_260 : i32
    %c1_i32_261 = arith.constant 1 : i32
    %540 = arith.addi %539, %c1_i32_261 : i32
    %c9_i32_262 = arith.constant 9 : i32
    %541 = arith.muli %540, %c9_i32_262 : i32
    %c6_i32_263 = arith.constant 6 : i32
    %542 = arith.addi %541, %c6_i32_263 : i32
    %c2_i32_264 = arith.constant 2 : i32
    %543 = arith.addi %542, %c2_i32_264 : i32
    %544 = arith.index_cast %543 : i32 to index
    %545 = memref.load %arg2[%544] : memref<72xf32, #tpu.memory_space<smem>>
    %546 = vector.broadcast %545 : f32 to vector<2x256xf32>
    %547 = arith.mulf %526, %546 : vector<2x256xf32>
    %548 = arith.addf %525, %547 : vector<2x256xf32>
    %cst_265 = arith.constant 0.000000e+00 : f32
    %549 = vector.broadcast %cst_265 : f32 to vector<2x256xf32>
    %550 = arith.select %54, %537, %549 : vector<2x256xi1>, vector<2x256xf32>
    %551 = arith.addf %478, %550 : vector<2x256xf32>
    %cst_266 = arith.constant 0.000000e+00 : f32
    %552 = vector.broadcast %cst_266 : f32 to vector<2x256xf32>
    %553 = arith.select %54, %548, %552 : vector<2x256xi1>, vector<2x256xf32>
    %554 = arith.addf %481, %553 : vector<2x256xf32>
    %c8_i32_267 = arith.constant 8 : i32
    %555 = arith.muli %arg0, %c8_i32_267 : i32
    %c2_i32_268 = arith.constant 2 : i32
    %556 = arith.addi %555, %c2_i32_268 : i32
    %557 = vector.shape_cast %551 : vector<2x256xf32> to vector<1x2x256xf32>
    %cst_269 = arith.constant dense<0.000000e+00> : vector<1xf32>
    %558 = vector.multi_reduction <add>, %557, %cst_269 [1, 2] : vector<1x2x256xf32> to vector<1xf32>
    %559 = vector.shape_cast %558 : vector<1xf32> to vector<1x1x1xf32>
    %560 = vector.extract %559[0, 0, 0] : f32 from vector<1x1x1xf32>
    %561 = arith.mulf %551, %551 : vector<2x256xf32>
    %562 = vector.shape_cast %561 : vector<2x256xf32> to vector<1x2x256xf32>
    %cst_270 = arith.constant dense<0.000000e+00> : vector<1xf32>
    %563 = vector.multi_reduction <add>, %562, %cst_270 [1, 2] : vector<1x2x256xf32> to vector<1xf32>
    %564 = vector.shape_cast %563 : vector<1xf32> to vector<1x1x1xf32>
    %565 = vector.extract %564[0, 0, 0] : f32 from vector<1x1x1xf32>
    %cst_271 = arith.constant 0.001953125 : f32
    %566 = arith.mulf %560, %cst_271 : f32
    %cst_272 = arith.constant 0.001953125 : f32
    %567 = arith.mulf %565, %cst_272 : f32
    %568 = arith.mulf %566, %566 : f32
    %569 = arith.subf %567, %568 : f32
    %cst_273 = arith.constant 9.99999974E-6 : f32
    %570 = arith.addf %569, %cst_273 : f32
    %571 = math.rsqrt %570 : f32
    %572 = arith.index_cast %556 : i32 to index
    %573 = memref.load %arg3[%572] : memref<8xf32, #tpu.memory_space<smem>>
    %574 = arith.mulf %571, %573 : f32
    %575 = arith.index_cast %556 : i32 to index
    %576 = memref.load %arg4[%575] : memref<8xf32, #tpu.memory_space<smem>>
    %577 = arith.mulf %566, %574 : f32
    %578 = arith.subf %576, %577 : f32
    %579 = vector.broadcast %574 : f32 to vector<2x256xf32>
    %580 = arith.mulf %551, %579 : vector<2x256xf32>
    %581 = vector.broadcast %578 : f32 to vector<2x256xf32>
    %582 = arith.addf %580, %581 : vector<2x256xf32>
    %c0_274 = arith.constant 0 : index
    %c2 = arith.constant 2 : index
    %c0_275 = arith.constant 0 : index
    %583 = vector.load %arg5[%c0_274, %c2, %c0_275] : memref<2x8x256xf32, #tpu.memory_space<vmem>>, vector<2x1x256xf32>
    %584 = vector.shape_cast %583 : vector<2x1x256xf32> to vector<2x256xf32>
    %585 = vector.shape_cast %582 : vector<2x256xf32> to vector<2x1x256xf32>
    tpu.vector_store %arg5[%c0_274, %c2, %c0_275], %585 {strides = array<i32>} : memref<2x8x256xf32, #tpu.memory_space<vmem>>, vector<2x1x256xf32>,
    %c8_i32_276 = arith.constant 8 : i32
    %586 = arith.muli %arg0, %c8_i32_276 : i32
    %c3_i32_277 = arith.constant 3 : i32
    %587 = arith.addi %586, %c3_i32_277 : i32
    %588 = vector.shape_cast %554 : vector<2x256xf32> to vector<1x2x256xf32>
    %cst_278 = arith.constant dense<0.000000e+00> : vector<1xf32>
    %589 = vector.multi_reduction <add>, %588, %cst_278 [1, 2] : vector<1x2x256xf32> to vector<1xf32>
    %590 = vector.shape_cast %589 : vector<1xf32> to vector<1x1x1xf32>
    %591 = vector.extract %590[0, 0, 0] : f32 from vector<1x1x1xf32>
    %592 = arith.mulf %554, %554 : vector<2x256xf32>
    %593 = vector.shape_cast %592 : vector<2x256xf32> to vector<1x2x256xf32>
    %cst_279 = arith.constant dense<0.000000e+00> : vector<1xf32>
    %594 = vector.multi_reduction <add>, %593, %cst_279 [1, 2] : vector<1x2x256xf32> to vector<1xf32>
    %595 = vector.shape_cast %594 : vector<1xf32> to vector<1x1x1xf32>
    %596 = vector.extract %595[0, 0, 0] : f32 from vector<1x1x1xf32>
    %cst_280 = arith.constant 0.001953125 : f32
    %597 = arith.mulf %591, %cst_280 : f32
    %cst_281 = arith.constant 0.001953125 : f32
    %598 = arith.mulf %596, %cst_281 : f32
    %599 = arith.mulf %597, %597 : f32
    %600 = arith.subf %598, %599 : f32
    %cst_282 = arith.constant 9.99999974E-6 : f32
    %601 = arith.addf %600, %cst_282 : f32
    %602 = math.rsqrt %601 : f32
    %603 = arith.index_cast %587 : i32 to index
    %604 = memref.load %arg3[%603] : memref<8xf32, #tpu.memory_space<smem>>
    %605 = arith.mulf %602, %604 : f32
    %606 = arith.index_cast %587 : i32 to index
    %607 = memref.load %arg4[%606] : memref<8xf32, #tpu.memory_space<smem>>
    %608 = arith.mulf %597, %605 : f32
    %609 = arith.subf %607, %608 : f32
    %610 = vector.broadcast %605 : f32 to vector<2x256xf32>
    %611 = arith.mulf %554, %610 : vector<2x256xf32>
    %612 = vector.broadcast %609 : f32 to vector<2x256xf32>
    %613 = arith.addf %611, %612 : vector<2x256xf32>
    %c0_283 = arith.constant 0 : index
    %c3 = arith.constant 3 : index
    %c0_284 = arith.constant 0 : index
    %614 = vector.load %arg5[%c0_283, %c3, %c0_284] : memref<2x8x256xf32, #tpu.memory_space<vmem>>, vector<2x1x256xf32>
    %615 = vector.shape_cast %614 : vector<2x1x256xf32> to vector<2x256xf32>
    %616 = vector.shape_cast %613 : vector<2x256xf32> to vector<2x1x256xf32>
    tpu.vector_store %arg5[%c0_283, %c3, %c0_284], %616 {strides = array<i32>} : memref<2x8x256xf32, #tpu.memory_space<vmem>>, vector<2x1x256xf32>,
    %c0_285 = arith.constant 0 : index
    %c2_286 = arith.constant 2 : index
    %c0_287 = arith.constant 0 : index
    %617 = vector.load %arg6[%c0_285, %c2_286, %c0_287] : memref<2x4x512xf32, #tpu.memory_space<vmem>>, vector<2x1x512xf32>
    %618 = vector.shape_cast %617 : vector<2x1x512xf32> to vector<2x512xf32>
    %619 = vector.extract_strided_slice %618 {offsets = [0, 111], sizes = [2, 256], strides = [1, 1]} : vector<2x512xf32> to vector<2x256xf32>
    %c8_i32_288 = arith.constant 8 : i32
    %620 = arith.muli %arg0, %c8_i32_288 : i32
    %c4_i32 = arith.constant 4 : i32
    %621 = arith.addi %620, %c4_i32 : i32
    %c0_i32_289 = arith.constant 0 : i32
    %622 = arith.addi %621, %c0_i32_289 : i32
    %c9_i32_290 = arith.constant 9 : i32
    %623 = arith.muli %622, %c9_i32_290 : i32
    %c0_i32_291 = arith.constant 0 : i32
    %624 = arith.addi %623, %c0_i32_291 : i32
    %c0_i32_292 = arith.constant 0 : i32
    %625 = arith.addi %624, %c0_i32_292 : i32
    %626 = arith.index_cast %625 : i32 to index
    %627 = memref.load %arg2[%626] : memref<72xf32, #tpu.memory_space<smem>>
    %628 = vector.broadcast %627 : f32 to vector<2x256xf32>
    %629 = arith.mulf %619, %628 : vector<2x256xf32>
    %c8_i32_293 = arith.constant 8 : i32
    %630 = arith.muli %arg0, %c8_i32_293 : i32
    %c4_i32_294 = arith.constant 4 : i32
    %631 = arith.addi %630, %c4_i32_294 : i32
    %c1_i32_295 = arith.constant 1 : i32
    %632 = arith.addi %631, %c1_i32_295 : i32
    %c9_i32_296 = arith.constant 9 : i32
    %633 = arith.muli %632, %c9_i32_296 : i32
    %c0_i32_297 = arith.constant 0 : i32
    %634 = arith.addi %633, %c0_i32_297 : i32
    %c0_i32_298 = arith.constant 0 : i32
    %635 = arith.addi %634, %c0_i32_298 : i32
    %636 = arith.index_cast %635 : i32 to index
    %637 = memref.load %arg2[%636] : memref<72xf32, #tpu.memory_space<smem>>
    %638 = vector.broadcast %637 : f32 to vector<2x256xf32>
    %639 = arith.mulf %619, %638 : vector<2x256xf32>
    %640 = vector.extract_strided_slice %618 {offsets = [0, 127], sizes = [2, 256], strides = [1, 1]} : vector<2x512xf32> to vector<2x256xf32>
    %c8_i32_299 = arith.constant 8 : i32
    %641 = arith.muli %arg0, %c8_i32_299 : i32
    %c4_i32_300 = arith.constant 4 : i32
    %642 = arith.addi %641, %c4_i32_300 : i32
    %c0_i32_301 = arith.constant 0 : i32
    %643 = arith.addi %642, %c0_i32_301 : i32
    %c9_i32_302 = arith.constant 9 : i32
    %644 = arith.muli %643, %c9_i32_302 : i32
    %c3_i32_303 = arith.constant 3 : i32
    %645 = arith.addi %644, %c3_i32_303 : i32
    %c0_i32_304 = arith.constant 0 : i32
    %646 = arith.addi %645, %c0_i32_304 : i32
    %647 = arith.index_cast %646 : i32 to index
    %648 = memref.load %arg2[%647] : memref<72xf32, #tpu.memory_space<smem>>
    %649 = vector.broadcast %648 : f32 to vector<2x256xf32>
    %650 = arith.mulf %640, %649 : vector<2x256xf32>
    %651 = arith.addf %629, %650 : vector<2x256xf32>
    %c8_i32_305 = arith.constant 8 : i32
    %652 = arith.muli %arg0, %c8_i32_305 : i32
    %c4_i32_306 = arith.constant 4 : i32
    %653 = arith.addi %652, %c4_i32_306 : i32
    %c1_i32_307 = arith.constant 1 : i32
    %654 = arith.addi %653, %c1_i32_307 : i32
    %c9_i32_308 = arith.constant 9 : i32
    %655 = arith.muli %654, %c9_i32_308 : i32
    %c3_i32_309 = arith.constant 3 : i32
    %656 = arith.addi %655, %c3_i32_309 : i32
    %c0_i32_310 = arith.constant 0 : i32
    %657 = arith.addi %656, %c0_i32_310 : i32
    %658 = arith.index_cast %657 : i32 to index
    %659 = memref.load %arg2[%658] : memref<72xf32, #tpu.memory_space<smem>>
    %660 = vector.broadcast %659 : f32 to vector<2x256xf32>
    %661 = arith.mulf %640, %660 : vector<2x256xf32>
    %662 = arith.addf %639, %661 : vector<2x256xf32>
    %663 = vector.extract_strided_slice %618 {offsets = [0, 143], sizes = [2, 256], strides = [1, 1]} : vector<2x512xf32> to vector<2x256xf32>
    %c8_i32_311 = arith.constant 8 : i32
    %664 = arith.muli %arg0, %c8_i32_311 : i32
    %c4_i32_312 = arith.constant 4 : i32
    %665 = arith.addi %664, %c4_i32_312 : i32
    %c0_i32_313 = arith.constant 0 : i32
    %666 = arith.addi %665, %c0_i32_313 : i32
    %c9_i32_314 = arith.constant 9 : i32
    %667 = arith.muli %666, %c9_i32_314 : i32
    %c6_i32_315 = arith.constant 6 : i32
    %668 = arith.addi %667, %c6_i32_315 : i32
    %c0_i32_316 = arith.constant 0 : i32
    %669 = arith.addi %668, %c0_i32_316 : i32
    %670 = arith.index_cast %669 : i32 to index
    %671 = memref.load %arg2[%670] : memref<72xf32, #tpu.memory_space<smem>>
    %672 = vector.broadcast %671 : f32 to vector<2x256xf32>
    %673 = arith.mulf %663, %672 : vector<2x256xf32>
    %674 = arith.addf %651, %673 : vector<2x256xf32>
    %c8_i32_317 = arith.constant 8 : i32
    %675 = arith.muli %arg0, %c8_i32_317 : i32
    %c4_i32_318 = arith.constant 4 : i32
    %676 = arith.addi %675, %c4_i32_318 : i32
    %c1_i32_319 = arith.constant 1 : i32
    %677 = arith.addi %676, %c1_i32_319 : i32
    %c9_i32_320 = arith.constant 9 : i32
    %678 = arith.muli %677, %c9_i32_320 : i32
    %c6_i32_321 = arith.constant 6 : i32
    %679 = arith.addi %678, %c6_i32_321 : i32
    %c0_i32_322 = arith.constant 0 : i32
    %680 = arith.addi %679, %c0_i32_322 : i32
    %681 = arith.index_cast %680 : i32 to index
    %682 = memref.load %arg2[%681] : memref<72xf32, #tpu.memory_space<smem>>
    %683 = vector.broadcast %682 : f32 to vector<2x256xf32>
    %684 = arith.mulf %663, %683 : vector<2x256xf32>
    %685 = arith.addf %662, %684 : vector<2x256xf32>
    %cst_323 = arith.constant 0.000000e+00 : f32
    %686 = vector.broadcast %cst_323 : f32 to vector<2x256xf32>
    %687 = arith.select %32, %674, %686 : vector<2x256xi1>, vector<2x256xf32>
    %cst_324 = arith.constant 0.000000e+00 : f32
    %688 = vector.broadcast %cst_324 : f32 to vector<2x256xf32>
    %689 = arith.select %32, %685, %688 : vector<2x256xi1>, vector<2x256xf32>
    %690 = vector.extract_strided_slice %618 {offsets = [0, 112], sizes = [2, 256], strides = [1, 1]} : vector<2x512xf32> to vector<2x256xf32>
    %c8_i32_325 = arith.constant 8 : i32
    %691 = arith.muli %arg0, %c8_i32_325 : i32
    %c4_i32_326 = arith.constant 4 : i32
    %692 = arith.addi %691, %c4_i32_326 : i32
    %c0_i32_327 = arith.constant 0 : i32
    %693 = arith.addi %692, %c0_i32_327 : i32
    %c9_i32_328 = arith.constant 9 : i32
    %694 = arith.muli %693, %c9_i32_328 : i32
    %c0_i32_329 = arith.constant 0 : i32
    %695 = arith.addi %694, %c0_i32_329 : i32
    %c1_i32_330 = arith.constant 1 : i32
    %696 = arith.addi %695, %c1_i32_330 : i32
    %697 = arith.index_cast %696 : i32 to index
    %698 = memref.load %arg2[%697] : memref<72xf32, #tpu.memory_space<smem>>
    %699 = vector.broadcast %698 : f32 to vector<2x256xf32>
    %700 = arith.mulf %690, %699 : vector<2x256xf32>
    %c8_i32_331 = arith.constant 8 : i32
    %701 = arith.muli %arg0, %c8_i32_331 : i32
    %c4_i32_332 = arith.constant 4 : i32
    %702 = arith.addi %701, %c4_i32_332 : i32
    %c1_i32_333 = arith.constant 1 : i32
    %703 = arith.addi %702, %c1_i32_333 : i32
    %c9_i32_334 = arith.constant 9 : i32
    %704 = arith.muli %703, %c9_i32_334 : i32
    %c0_i32_335 = arith.constant 0 : i32
    %705 = arith.addi %704, %c0_i32_335 : i32
    %c1_i32_336 = arith.constant 1 : i32
    %706 = arith.addi %705, %c1_i32_336 : i32
    %707 = arith.index_cast %706 : i32 to index
    %708 = memref.load %arg2[%707] : memref<72xf32, #tpu.memory_space<smem>>
    %709 = vector.broadcast %708 : f32 to vector<2x256xf32>
    %710 = arith.mulf %690, %709 : vector<2x256xf32>
    %711 = vector.extract_strided_slice %618 {offsets = [0, 128], sizes = [2, 256], strides = [1, 1]} : vector<2x512xf32> to vector<2x256xf32>
    %c8_i32_337 = arith.constant 8 : i32
    %712 = arith.muli %arg0, %c8_i32_337 : i32
    %c4_i32_338 = arith.constant 4 : i32
    %713 = arith.addi %712, %c4_i32_338 : i32
    %c0_i32_339 = arith.constant 0 : i32
    %714 = arith.addi %713, %c0_i32_339 : i32
    %c9_i32_340 = arith.constant 9 : i32
    %715 = arith.muli %714, %c9_i32_340 : i32
    %c3_i32_341 = arith.constant 3 : i32
    %716 = arith.addi %715, %c3_i32_341 : i32
    %c1_i32_342 = arith.constant 1 : i32
    %717 = arith.addi %716, %c1_i32_342 : i32
    %718 = arith.index_cast %717 : i32 to index
    %719 = memref.load %arg2[%718] : memref<72xf32, #tpu.memory_space<smem>>
    %720 = vector.broadcast %719 : f32 to vector<2x256xf32>
    %721 = arith.mulf %711, %720 : vector<2x256xf32>
    %722 = arith.addf %700, %721 : vector<2x256xf32>
    %c8_i32_343 = arith.constant 8 : i32
    %723 = arith.muli %arg0, %c8_i32_343 : i32
    %c4_i32_344 = arith.constant 4 : i32
    %724 = arith.addi %723, %c4_i32_344 : i32
    %c1_i32_345 = arith.constant 1 : i32
    %725 = arith.addi %724, %c1_i32_345 : i32
    %c9_i32_346 = arith.constant 9 : i32
    %726 = arith.muli %725, %c9_i32_346 : i32
    %c3_i32_347 = arith.constant 3 : i32
    %727 = arith.addi %726, %c3_i32_347 : i32
    %c1_i32_348 = arith.constant 1 : i32
    %728 = arith.addi %727, %c1_i32_348 : i32
    %729 = arith.index_cast %728 : i32 to index
    %730 = memref.load %arg2[%729] : memref<72xf32, #tpu.memory_space<smem>>
    %731 = vector.broadcast %730 : f32 to vector<2x256xf32>
    %732 = arith.mulf %711, %731 : vector<2x256xf32>
    %733 = arith.addf %710, %732 : vector<2x256xf32>
    %734 = vector.extract_strided_slice %618 {offsets = [0, 144], sizes = [2, 256], strides = [1, 1]} : vector<2x512xf32> to vector<2x256xf32>
    %c8_i32_349 = arith.constant 8 : i32
    %735 = arith.muli %arg0, %c8_i32_349 : i32
    %c4_i32_350 = arith.constant 4 : i32
    %736 = arith.addi %735, %c4_i32_350 : i32
    %c0_i32_351 = arith.constant 0 : i32
    %737 = arith.addi %736, %c0_i32_351 : i32
    %c9_i32_352 = arith.constant 9 : i32
    %738 = arith.muli %737, %c9_i32_352 : i32
    %c6_i32_353 = arith.constant 6 : i32
    %739 = arith.addi %738, %c6_i32_353 : i32
    %c1_i32_354 = arith.constant 1 : i32
    %740 = arith.addi %739, %c1_i32_354 : i32
    %741 = arith.index_cast %740 : i32 to index
    %742 = memref.load %arg2[%741] : memref<72xf32, #tpu.memory_space<smem>>
    %743 = vector.broadcast %742 : f32 to vector<2x256xf32>
    %744 = arith.mulf %734, %743 : vector<2x256xf32>
    %745 = arith.addf %722, %744 : vector<2x256xf32>
    %c8_i32_355 = arith.constant 8 : i32
    %746 = arith.muli %arg0, %c8_i32_355 : i32
    %c4_i32_356 = arith.constant 4 : i32
    %747 = arith.addi %746, %c4_i32_356 : i32
    %c1_i32_357 = arith.constant 1 : i32
    %748 = arith.addi %747, %c1_i32_357 : i32
    %c9_i32_358 = arith.constant 9 : i32
    %749 = arith.muli %748, %c9_i32_358 : i32
    %c6_i32_359 = arith.constant 6 : i32
    %750 = arith.addi %749, %c6_i32_359 : i32
    %c1_i32_360 = arith.constant 1 : i32
    %751 = arith.addi %750, %c1_i32_360 : i32
    %752 = arith.index_cast %751 : i32 to index
    %753 = memref.load %arg2[%752] : memref<72xf32, #tpu.memory_space<smem>>
    %754 = vector.broadcast %753 : f32 to vector<2x256xf32>
    %755 = arith.mulf %734, %754 : vector<2x256xf32>
    %756 = arith.addf %733, %755 : vector<2x256xf32>
    %cst_361 = arith.constant 0.000000e+00 : f32
    %757 = vector.broadcast %cst_361 : f32 to vector<2x256xf32>
    %758 = arith.select %43, %745, %757 : vector<2x256xi1>, vector<2x256xf32>
    %759 = arith.addf %687, %758 : vector<2x256xf32>
    %cst_362 = arith.constant 0.000000e+00 : f32
    %760 = vector.broadcast %cst_362 : f32 to vector<2x256xf32>
    %761 = arith.select %43, %756, %760 : vector<2x256xi1>, vector<2x256xf32>
    %762 = arith.addf %689, %761 : vector<2x256xf32>
    %763 = vector.extract_strided_slice %618 {offsets = [0, 113], sizes = [2, 256], strides = [1, 1]} : vector<2x512xf32> to vector<2x256xf32>
    %c8_i32_363 = arith.constant 8 : i32
    %764 = arith.muli %arg0, %c8_i32_363 : i32
    %c4_i32_364 = arith.constant 4 : i32
    %765 = arith.addi %764, %c4_i32_364 : i32
    %c0_i32_365 = arith.constant 0 : i32
    %766 = arith.addi %765, %c0_i32_365 : i32
    %c9_i32_366 = arith.constant 9 : i32
    %767 = arith.muli %766, %c9_i32_366 : i32
    %c0_i32_367 = arith.constant 0 : i32
    %768 = arith.addi %767, %c0_i32_367 : i32
    %c2_i32_368 = arith.constant 2 : i32
    %769 = arith.addi %768, %c2_i32_368 : i32
    %770 = arith.index_cast %769 : i32 to index
    %771 = memref.load %arg2[%770] : memref<72xf32, #tpu.memory_space<smem>>
    %772 = vector.broadcast %771 : f32 to vector<2x256xf32>
    %773 = arith.mulf %763, %772 : vector<2x256xf32>
    %c8_i32_369 = arith.constant 8 : i32
    %774 = arith.muli %arg0, %c8_i32_369 : i32
    %c4_i32_370 = arith.constant 4 : i32
    %775 = arith.addi %774, %c4_i32_370 : i32
    %c1_i32_371 = arith.constant 1 : i32
    %776 = arith.addi %775, %c1_i32_371 : i32
    %c9_i32_372 = arith.constant 9 : i32
    %777 = arith.muli %776, %c9_i32_372 : i32
    %c0_i32_373 = arith.constant 0 : i32
    %778 = arith.addi %777, %c0_i32_373 : i32
    %c2_i32_374 = arith.constant 2 : i32
    %779 = arith.addi %778, %c2_i32_374 : i32
    %780 = arith.index_cast %779 : i32 to index
    %781 = memref.load %arg2[%780] : memref<72xf32, #tpu.memory_space<smem>>
    %782 = vector.broadcast %781 : f32 to vector<2x256xf32>
    %783 = arith.mulf %763, %782 : vector<2x256xf32>
    %784 = vector.extract_strided_slice %618 {offsets = [0, 129], sizes = [2, 256], strides = [1, 1]} : vector<2x512xf32> to vector<2x256xf32>
    %c8_i32_375 = arith.constant 8 : i32
    %785 = arith.muli %arg0, %c8_i32_375 : i32
    %c4_i32_376 = arith.constant 4 : i32
    %786 = arith.addi %785, %c4_i32_376 : i32
    %c0_i32_377 = arith.constant 0 : i32
    %787 = arith.addi %786, %c0_i32_377 : i32
    %c9_i32_378 = arith.constant 9 : i32
    %788 = arith.muli %787, %c9_i32_378 : i32
    %c3_i32_379 = arith.constant 3 : i32
    %789 = arith.addi %788, %c3_i32_379 : i32
    %c2_i32_380 = arith.constant 2 : i32
    %790 = arith.addi %789, %c2_i32_380 : i32
    %791 = arith.index_cast %790 : i32 to index
    %792 = memref.load %arg2[%791] : memref<72xf32, #tpu.memory_space<smem>>
    %793 = vector.broadcast %792 : f32 to vector<2x256xf32>
    %794 = arith.mulf %784, %793 : vector<2x256xf32>
    %795 = arith.addf %773, %794 : vector<2x256xf32>
    %c8_i32_381 = arith.constant 8 : i32
    %796 = arith.muli %arg0, %c8_i32_381 : i32
    %c4_i32_382 = arith.constant 4 : i32
    %797 = arith.addi %796, %c4_i32_382 : i32
    %c1_i32_383 = arith.constant 1 : i32
    %798 = arith.addi %797, %c1_i32_383 : i32
    %c9_i32_384 = arith.constant 9 : i32
    %799 = arith.muli %798, %c9_i32_384 : i32
    %c3_i32_385 = arith.constant 3 : i32
    %800 = arith.addi %799, %c3_i32_385 : i32
    %c2_i32_386 = arith.constant 2 : i32
    %801 = arith.addi %800, %c2_i32_386 : i32
    %802 = arith.index_cast %801 : i32 to index
    %803 = memref.load %arg2[%802] : memref<72xf32, #tpu.memory_space<smem>>
    %804 = vector.broadcast %803 : f32 to vector<2x256xf32>
    %805 = arith.mulf %784, %804 : vector<2x256xf32>
    %806 = arith.addf %783, %805 : vector<2x256xf32>
    %807 = vector.extract_strided_slice %618 {offsets = [0, 145], sizes = [2, 256], strides = [1, 1]} : vector<2x512xf32> to vector<2x256xf32>
    %c8_i32_387 = arith.constant 8 : i32
    %808 = arith.muli %arg0, %c8_i32_387 : i32
    %c4_i32_388 = arith.constant 4 : i32
    %809 = arith.addi %808, %c4_i32_388 : i32
    %c0_i32_389 = arith.constant 0 : i32
    %810 = arith.addi %809, %c0_i32_389 : i32
    %c9_i32_390 = arith.constant 9 : i32
    %811 = arith.muli %810, %c9_i32_390 : i32
    %c6_i32_391 = arith.constant 6 : i32
    %812 = arith.addi %811, %c6_i32_391 : i32
    %c2_i32_392 = arith.constant 2 : i32
    %813 = arith.addi %812, %c2_i32_392 : i32
    %814 = arith.index_cast %813 : i32 to index
    %815 = memref.load %arg2[%814] : memref<72xf32, #tpu.memory_space<smem>>
    %816 = vector.broadcast %815 : f32 to vector<2x256xf32>
    %817 = arith.mulf %807, %816 : vector<2x256xf32>
    %818 = arith.addf %795, %817 : vector<2x256xf32>
    %c8_i32_393 = arith.constant 8 : i32
    %819 = arith.muli %arg0, %c8_i32_393 : i32
    %c4_i32_394 = arith.constant 4 : i32
    %820 = arith.addi %819, %c4_i32_394 : i32
    %c1_i32_395 = arith.constant 1 : i32
    %821 = arith.addi %820, %c1_i32_395 : i32
    %c9_i32_396 = arith.constant 9 : i32
    %822 = arith.muli %821, %c9_i32_396 : i32
    %c6_i32_397 = arith.constant 6 : i32
    %823 = arith.addi %822, %c6_i32_397 : i32
    %c2_i32_398 = arith.constant 2 : i32
    %824 = arith.addi %823, %c2_i32_398 : i32
    %825 = arith.index_cast %824 : i32 to index
    %826 = memref.load %arg2[%825] : memref<72xf32, #tpu.memory_space<smem>>
    %827 = vector.broadcast %826 : f32 to vector<2x256xf32>
    %828 = arith.mulf %807, %827 : vector<2x256xf32>
    %829 = arith.addf %806, %828 : vector<2x256xf32>
    %cst_399 = arith.constant 0.000000e+00 : f32
    %830 = vector.broadcast %cst_399 : f32 to vector<2x256xf32>
    %831 = arith.select %54, %818, %830 : vector<2x256xi1>, vector<2x256xf32>
    %832 = arith.addf %759, %831 : vector<2x256xf32>
    %cst_400 = arith.constant 0.000000e+00 : f32
    %833 = vector.broadcast %cst_400 : f32 to vector<2x256xf32>
    %834 = arith.select %54, %829, %833 : vector<2x256xi1>, vector<2x256xf32>
    %835 = arith.addf %762, %834 : vector<2x256xf32>
    %c8_i32_401 = arith.constant 8 : i32
    %836 = arith.muli %arg0, %c8_i32_401 : i32
    %c4_i32_402 = arith.constant 4 : i32
    %837 = arith.addi %836, %c4_i32_402 : i32
    %838 = vector.shape_cast %832 : vector<2x256xf32> to vector<1x2x256xf32>
    %cst_403 = arith.constant dense<0.000000e+00> : vector<1xf32>
    %839 = vector.multi_reduction <add>, %838, %cst_403 [1, 2] : vector<1x2x256xf32> to vector<1xf32>
    %840 = vector.shape_cast %839 : vector<1xf32> to vector<1x1x1xf32>
    %841 = vector.extract %840[0, 0, 0] : f32 from vector<1x1x1xf32>
    %842 = arith.mulf %832, %832 : vector<2x256xf32>
    %843 = vector.shape_cast %842 : vector<2x256xf32> to vector<1x2x256xf32>
    %cst_404 = arith.constant dense<0.000000e+00> : vector<1xf32>
    %844 = vector.multi_reduction <add>, %843, %cst_404 [1, 2] : vector<1x2x256xf32> to vector<1xf32>
    %845 = vector.shape_cast %844 : vector<1xf32> to vector<1x1x1xf32>
    %846 = vector.extract %845[0, 0, 0] : f32 from vector<1x1x1xf32>
    %cst_405 = arith.constant 0.001953125 : f32
    %847 = arith.mulf %841, %cst_405 : f32
    %cst_406 = arith.constant 0.001953125 : f32
    %848 = arith.mulf %846, %cst_406 : f32
    %849 = arith.mulf %847, %847 : f32
    %850 = arith.subf %848, %849 : f32
    %cst_407 = arith.constant 9.99999974E-6 : f32
    %851 = arith.addf %850, %cst_407 : f32
    %852 = math.rsqrt %851 : f32
    %853 = arith.index_cast %837 : i32 to index
    %854 = memref.load %arg3[%853] : memref<8xf32, #tpu.memory_space<smem>>
    %855 = arith.mulf %852, %854 : f32
    %856 = arith.index_cast %837 : i32 to index
    %857 = memref.load %arg4[%856] : memref<8xf32, #tpu.memory_space<smem>>
    %858 = arith.mulf %847, %855 : f32
    %859 = arith.subf %857, %858 : f32
    %860 = vector.broadcast %855 : f32 to vector<2x256xf32>
    %861 = arith.mulf %832, %860 : vector<2x256xf32>
    %862 = vector.broadcast %859 : f32 to vector<2x256xf32>
    %863 = arith.addf %861, %862 : vector<2x256xf32>
    %c0_408 = arith.constant 0 : index
    %c4 = arith.constant 4 : index
    %c0_409 = arith.constant 0 : index
    %864 = vector.load %arg5[%c0_408, %c4, %c0_409] : memref<2x8x256xf32, #tpu.memory_space<vmem>>, vector<2x1x256xf32>
    %865 = vector.shape_cast %864 : vector<2x1x256xf32> to vector<2x256xf32>
    %866 = vector.shape_cast %863 : vector<2x256xf32> to vector<2x1x256xf32>
    tpu.vector_store %arg5[%c0_408, %c4, %c0_409], %866 {strides = array<i32>} : memref<2x8x256xf32, #tpu.memory_space<vmem>>, vector<2x1x256xf32>,
    %c8_i32_410 = arith.constant 8 : i32
    %867 = arith.muli %arg0, %c8_i32_410 : i32
    %c5_i32 = arith.constant 5 : i32
    %868 = arith.addi %867, %c5_i32 : i32
    %869 = vector.shape_cast %835 : vector<2x256xf32> to vector<1x2x256xf32>
    %cst_411 = arith.constant dense<0.000000e+00> : vector<1xf32>
    %870 = vector.multi_reduction <add>, %869, %cst_411 [1, 2] : vector<1x2x256xf32> to vector<1xf32>
    %871 = vector.shape_cast %870 : vector<1xf32> to vector<1x1x1xf32>
    %872 = vector.extract %871[0, 0, 0] : f32 from vector<1x1x1xf32>
    %873 = arith.mulf %835, %835 : vector<2x256xf32>
    %874 = vector.shape_cast %873 : vector<2x256xf32> to vector<1x2x256xf32>
    %cst_412 = arith.constant dense<0.000000e+00> : vector<1xf32>
    %875 = vector.multi_reduction <add>, %874, %cst_412 [1, 2] : vector<1x2x256xf32> to vector<1xf32>
    %876 = vector.shape_cast %875 : vector<1xf32> to vector<1x1x1xf32>
    %877 = vector.extract %876[0, 0, 0] : f32 from vector<1x1x1xf32>
    %cst_413 = arith.constant 0.001953125 : f32
    %878 = arith.mulf %872, %cst_413 : f32
    %cst_414 = arith.constant 0.001953125 : f32
    %879 = arith.mulf %877, %cst_414 : f32
    %880 = arith.mulf %878, %878 : f32
    %881 = arith.subf %879, %880 : f32
    %cst_415 = arith.constant 9.99999974E-6 : f32
    %882 = arith.addf %881, %cst_415 : f32
    %883 = math.rsqrt %882 : f32
    %884 = arith.index_cast %868 : i32 to index
    %885 = memref.load %arg3[%884] : memref<8xf32, #tpu.memory_space<smem>>
    %886 = arith.mulf %883, %885 : f32
    %887 = arith.index_cast %868 : i32 to index
    %888 = memref.load %arg4[%887] : memref<8xf32, #tpu.memory_space<smem>>
    %889 = arith.mulf %878, %886 : f32
    %890 = arith.subf %888, %889 : f32
    %891 = vector.broadcast %886 : f32 to vector<2x256xf32>
    %892 = arith.mulf %835, %891 : vector<2x256xf32>
    %893 = vector.broadcast %890 : f32 to vector<2x256xf32>
    %894 = arith.addf %892, %893 : vector<2x256xf32>
    %c0_416 = arith.constant 0 : index
    %c5 = arith.constant 5 : index
    %c0_417 = arith.constant 0 : index
    %895 = vector.load %arg5[%c0_416, %c5, %c0_417] : memref<2x8x256xf32, #tpu.memory_space<vmem>>, vector<2x1x256xf32>
    %896 = vector.shape_cast %895 : vector<2x1x256xf32> to vector<2x256xf32>
    %897 = vector.shape_cast %894 : vector<2x256xf32> to vector<2x1x256xf32>
    tpu.vector_store %arg5[%c0_416, %c5, %c0_417], %897 {strides = array<i32>} : memref<2x8x256xf32, #tpu.memory_space<vmem>>, vector<2x1x256xf32>,
    %c0_418 = arith.constant 0 : index
    %c3_419 = arith.constant 3 : index
    %c0_420 = arith.constant 0 : index
    %898 = vector.load %arg6[%c0_418, %c3_419, %c0_420] : memref<2x4x512xf32, #tpu.memory_space<vmem>>, vector<2x1x512xf32>
    %899 = vector.shape_cast %898 : vector<2x1x512xf32> to vector<2x512xf32>
    %900 = vector.extract_strided_slice %899 {offsets = [0, 111], sizes = [2, 256], strides = [1, 1]} : vector<2x512xf32> to vector<2x256xf32>
    %c8_i32_421 = arith.constant 8 : i32
    %901 = arith.muli %arg0, %c8_i32_421 : i32
    %c6_i32_422 = arith.constant 6 : i32
    %902 = arith.addi %901, %c6_i32_422 : i32
    %c0_i32_423 = arith.constant 0 : i32
    %903 = arith.addi %902, %c0_i32_423 : i32
    %c9_i32_424 = arith.constant 9 : i32
    %904 = arith.muli %903, %c9_i32_424 : i32
    %c0_i32_425 = arith.constant 0 : i32
    %905 = arith.addi %904, %c0_i32_425 : i32
    %c0_i32_426 = arith.constant 0 : i32
    %906 = arith.addi %905, %c0_i32_426 : i32
    %907 = arith.index_cast %906 : i32 to index
    %908 = memref.load %arg2[%907] : memref<72xf32, #tpu.memory_space<smem>>
    %909 = vector.broadcast %908 : f32 to vector<2x256xf32>
    %910 = arith.mulf %900, %909 : vector<2x256xf32>
    %c8_i32_427 = arith.constant 8 : i32
    %911 = arith.muli %arg0, %c8_i32_427 : i32
    %c6_i32_428 = arith.constant 6 : i32
    %912 = arith.addi %911, %c6_i32_428 : i32
    %c1_i32_429 = arith.constant 1 : i32
    %913 = arith.addi %912, %c1_i32_429 : i32
    %c9_i32_430 = arith.constant 9 : i32
    %914 = arith.muli %913, %c9_i32_430 : i32
    %c0_i32_431 = arith.constant 0 : i32
    %915 = arith.addi %914, %c0_i32_431 : i32
    %c0_i32_432 = arith.constant 0 : i32
    %916 = arith.addi %915, %c0_i32_432 : i32
    %917 = arith.index_cast %916 : i32 to index
    %918 = memref.load %arg2[%917] : memref<72xf32, #tpu.memory_space<smem>>
    %919 = vector.broadcast %918 : f32 to vector<2x256xf32>
    %920 = arith.mulf %900, %919 : vector<2x256xf32>
    %921 = vector.extract_strided_slice %899 {offsets = [0, 127], sizes = [2, 256], strides = [1, 1]} : vector<2x512xf32> to vector<2x256xf32>
    %c8_i32_433 = arith.constant 8 : i32
    %922 = arith.muli %arg0, %c8_i32_433 : i32
    %c6_i32_434 = arith.constant 6 : i32
    %923 = arith.addi %922, %c6_i32_434 : i32
    %c0_i32_435 = arith.constant 0 : i32
    %924 = arith.addi %923, %c0_i32_435 : i32
    %c9_i32_436 = arith.constant 9 : i32
    %925 = arith.muli %924, %c9_i32_436 : i32
    %c3_i32_437 = arith.constant 3 : i32
    %926 = arith.addi %925, %c3_i32_437 : i32
    %c0_i32_438 = arith.constant 0 : i32
    %927 = arith.addi %926, %c0_i32_438 : i32
    %928 = arith.index_cast %927 : i32 to index
    %929 = memref.load %arg2[%928] : memref<72xf32, #tpu.memory_space<smem>>
    %930 = vector.broadcast %929 : f32 to vector<2x256xf32>
    %931 = arith.mulf %921, %930 : vector<2x256xf32>
    %932 = arith.addf %910, %931 : vector<2x256xf32>
    %c8_i32_439 = arith.constant 8 : i32
    %933 = arith.muli %arg0, %c8_i32_439 : i32
    %c6_i32_440 = arith.constant 6 : i32
    %934 = arith.addi %933, %c6_i32_440 : i32
    %c1_i32_441 = arith.constant 1 : i32
    %935 = arith.addi %934, %c1_i32_441 : i32
    %c9_i32_442 = arith.constant 9 : i32
    %936 = arith.muli %935, %c9_i32_442 : i32
    %c3_i32_443 = arith.constant 3 : i32
    %937 = arith.addi %936, %c3_i32_443 : i32
    %c0_i32_444 = arith.constant 0 : i32
    %938 = arith.addi %937, %c0_i32_444 : i32
    %939 = arith.index_cast %938 : i32 to index
    %940 = memref.load %arg2[%939] : memref<72xf32, #tpu.memory_space<smem>>
    %941 = vector.broadcast %940 : f32 to vector<2x256xf32>
    %942 = arith.mulf %921, %941 : vector<2x256xf32>
    %943 = arith.addf %920, %942 : vector<2x256xf32>
    %944 = vector.extract_strided_slice %899 {offsets = [0, 143], sizes = [2, 256], strides = [1, 1]} : vector<2x512xf32> to vector<2x256xf32>
    %c8_i32_445 = arith.constant 8 : i32
    %945 = arith.muli %arg0, %c8_i32_445 : i32
    %c6_i32_446 = arith.constant 6 : i32
    %946 = arith.addi %945, %c6_i32_446 : i32
    %c0_i32_447 = arith.constant 0 : i32
    %947 = arith.addi %946, %c0_i32_447 : i32
    %c9_i32_448 = arith.constant 9 : i32
    %948 = arith.muli %947, %c9_i32_448 : i32
    %c6_i32_449 = arith.constant 6 : i32
    %949 = arith.addi %948, %c6_i32_449 : i32
    %c0_i32_450 = arith.constant 0 : i32
    %950 = arith.addi %949, %c0_i32_450 : i32
    %951 = arith.index_cast %950 : i32 to index
    %952 = memref.load %arg2[%951] : memref<72xf32, #tpu.memory_space<smem>>
    %953 = vector.broadcast %952 : f32 to vector<2x256xf32>
    %954 = arith.mulf %944, %953 : vector<2x256xf32>
    %955 = arith.addf %932, %954 : vector<2x256xf32>
    %c8_i32_451 = arith.constant 8 : i32
    %956 = arith.muli %arg0, %c8_i32_451 : i32
    %c6_i32_452 = arith.constant 6 : i32
    %957 = arith.addi %956, %c6_i32_452 : i32
    %c1_i32_453 = arith.constant 1 : i32
    %958 = arith.addi %957, %c1_i32_453 : i32
    %c9_i32_454 = arith.constant 9 : i32
    %959 = arith.muli %958, %c9_i32_454 : i32
    %c6_i32_455 = arith.constant 6 : i32
    %960 = arith.addi %959, %c6_i32_455 : i32
    %c0_i32_456 = arith.constant 0 : i32
    %961 = arith.addi %960, %c0_i32_456 : i32
    %962 = arith.index_cast %961 : i32 to index
    %963 = memref.load %arg2[%962] : memref<72xf32, #tpu.memory_space<smem>>
    %964 = vector.broadcast %963 : f32 to vector<2x256xf32>
    %965 = arith.mulf %944, %964 : vector<2x256xf32>
    %966 = arith.addf %943, %965 : vector<2x256xf32>
    %cst_457 = arith.constant 0.000000e+00 : f32
    %967 = vector.broadcast %cst_457 : f32 to vector<2x256xf32>
    %968 = arith.select %32, %955, %967 : vector<2x256xi1>, vector<2x256xf32>
    %cst_458 = arith.constant 0.000000e+00 : f32
    %969 = vector.broadcast %cst_458 : f32 to vector<2x256xf32>
    %970 = arith.select %32, %966, %969 : vector<2x256xi1>, vector<2x256xf32>
    %971 = vector.extract_strided_slice %899 {offsets = [0, 112], sizes = [2, 256], strides = [1, 1]} : vector<2x512xf32> to vector<2x256xf32>
    %c8_i32_459 = arith.constant 8 : i32
    %972 = arith.muli %arg0, %c8_i32_459 : i32
    %c6_i32_460 = arith.constant 6 : i32
    %973 = arith.addi %972, %c6_i32_460 : i32
    %c0_i32_461 = arith.constant 0 : i32
    %974 = arith.addi %973, %c0_i32_461 : i32
    %c9_i32_462 = arith.constant 9 : i32
    %975 = arith.muli %974, %c9_i32_462 : i32
    %c0_i32_463 = arith.constant 0 : i32
    %976 = arith.addi %975, %c0_i32_463 : i32
    %c1_i32_464 = arith.constant 1 : i32
    %977 = arith.addi %976, %c1_i32_464 : i32
    %978 = arith.index_cast %977 : i32 to index
    %979 = memref.load %arg2[%978] : memref<72xf32, #tpu.memory_space<smem>>
    %980 = vector.broadcast %979 : f32 to vector<2x256xf32>
    %981 = arith.mulf %971, %980 : vector<2x256xf32>
    %c8_i32_465 = arith.constant 8 : i32
    %982 = arith.muli %arg0, %c8_i32_465 : i32
    %c6_i32_466 = arith.constant 6 : i32
    %983 = arith.addi %982, %c6_i32_466 : i32
    %c1_i32_467 = arith.constant 1 : i32
    %984 = arith.addi %983, %c1_i32_467 : i32
    %c9_i32_468 = arith.constant 9 : i32
    %985 = arith.muli %984, %c9_i32_468 : i32
    %c0_i32_469 = arith.constant 0 : i32
    %986 = arith.addi %985, %c0_i32_469 : i32
    %c1_i32_470 = arith.constant 1 : i32
    %987 = arith.addi %986, %c1_i32_470 : i32
    %988 = arith.index_cast %987 : i32 to index
    %989 = memref.load %arg2[%988] : memref<72xf32, #tpu.memory_space<smem>>
    %990 = vector.broadcast %989 : f32 to vector<2x256xf32>
    %991 = arith.mulf %971, %990 : vector<2x256xf32>
    %992 = vector.extract_strided_slice %899 {offsets = [0, 128], sizes = [2, 256], strides = [1, 1]} : vector<2x512xf32> to vector<2x256xf32>
    %c8_i32_471 = arith.constant 8 : i32
    %993 = arith.muli %arg0, %c8_i32_471 : i32
    %c6_i32_472 = arith.constant 6 : i32
    %994 = arith.addi %993, %c6_i32_472 : i32
    %c0_i32_473 = arith.constant 0 : i32
    %995 = arith.addi %994, %c0_i32_473 : i32
    %c9_i32_474 = arith.constant 9 : i32
    %996 = arith.muli %995, %c9_i32_474 : i32
    %c3_i32_475 = arith.constant 3 : i32
    %997 = arith.addi %996, %c3_i32_475 : i32
    %c1_i32_476 = arith.constant 1 : i32
    %998 = arith.addi %997, %c1_i32_476 : i32
    %999 = arith.index_cast %998 : i32 to index
    %1000 = memref.load %arg2[%999] : memref<72xf32, #tpu.memory_space<smem>>
    %1001 = vector.broadcast %1000 : f32 to vector<2x256xf32>
    %1002 = arith.mulf %992, %1001 : vector<2x256xf32>
    %1003 = arith.addf %981, %1002 : vector<2x256xf32>
    %c8_i32_477 = arith.constant 8 : i32
    %1004 = arith.muli %arg0, %c8_i32_477 : i32
    %c6_i32_478 = arith.constant 6 : i32
    %1005 = arith.addi %1004, %c6_i32_478 : i32
    %c1_i32_479 = arith.constant 1 : i32
    %1006 = arith.addi %1005, %c1_i32_479 : i32
    %c9_i32_480 = arith.constant 9 : i32
    %1007 = arith.muli %1006, %c9_i32_480 : i32
    %c3_i32_481 = arith.constant 3 : i32
    %1008 = arith.addi %1007, %c3_i32_481 : i32
    %c1_i32_482 = arith.constant 1 : i32
    %1009 = arith.addi %1008, %c1_i32_482 : i32
    %1010 = arith.index_cast %1009 : i32 to index
    %1011 = memref.load %arg2[%1010] : memref<72xf32, #tpu.memory_space<smem>>
    %1012 = vector.broadcast %1011 : f32 to vector<2x256xf32>
    %1013 = arith.mulf %992, %1012 : vector<2x256xf32>
    %1014 = arith.addf %991, %1013 : vector<2x256xf32>
    %1015 = vector.extract_strided_slice %899 {offsets = [0, 144], sizes = [2, 256], strides = [1, 1]} : vector<2x512xf32> to vector<2x256xf32>
    %c8_i32_483 = arith.constant 8 : i32
    %1016 = arith.muli %arg0, %c8_i32_483 : i32
    %c6_i32_484 = arith.constant 6 : i32
    %1017 = arith.addi %1016, %c6_i32_484 : i32
    %c0_i32_485 = arith.constant 0 : i32
    %1018 = arith.addi %1017, %c0_i32_485 : i32
    %c9_i32_486 = arith.constant 9 : i32
    %1019 = arith.muli %1018, %c9_i32_486 : i32
    %c6_i32_487 = arith.constant 6 : i32
    %1020 = arith.addi %1019, %c6_i32_487 : i32
    %c1_i32_488 = arith.constant 1 : i32
    %1021 = arith.addi %1020, %c1_i32_488 : i32
    %1022 = arith.index_cast %1021 : i32 to index
    %1023 = memref.load %arg2[%1022] : memref<72xf32, #tpu.memory_space<smem>>
    %1024 = vector.broadcast %1023 : f32 to vector<2x256xf32>
    %1025 = arith.mulf %1015, %1024 : vector<2x256xf32>
    %1026 = arith.addf %1003, %1025 : vector<2x256xf32>
    %c8_i32_489 = arith.constant 8 : i32
    %1027 = arith.muli %arg0, %c8_i32_489 : i32
    %c6_i32_490 = arith.constant 6 : i32
    %1028 = arith.addi %1027, %c6_i32_490 : i32
    %c1_i32_491 = arith.constant 1 : i32
    %1029 = arith.addi %1028, %c1_i32_491 : i32
    %c9_i32_492 = arith.constant 9 : i32
    %1030 = arith.muli %1029, %c9_i32_492 : i32
    %c6_i32_493 = arith.constant 6 : i32
    %1031 = arith.addi %1030, %c6_i32_493 : i32
    %c1_i32_494 = arith.constant 1 : i32
    %1032 = arith.addi %1031, %c1_i32_494 : i32
    %1033 = arith.index_cast %1032 : i32 to index
    %1034 = memref.load %arg2[%1033] : memref<72xf32, #tpu.memory_space<smem>>
    %1035 = vector.broadcast %1034 : f32 to vector<2x256xf32>
    %1036 = arith.mulf %1015, %1035 : vector<2x256xf32>
    %1037 = arith.addf %1014, %1036 : vector<2x256xf32>
    %cst_495 = arith.constant 0.000000e+00 : f32
    %1038 = vector.broadcast %cst_495 : f32 to vector<2x256xf32>
    %1039 = arith.select %43, %1026, %1038 : vector<2x256xi1>, vector<2x256xf32>
    %1040 = arith.addf %968, %1039 : vector<2x256xf32>
    %cst_496 = arith.constant 0.000000e+00 : f32
    %1041 = vector.broadcast %cst_496 : f32 to vector<2x256xf32>
    %1042 = arith.select %43, %1037, %1041 : vector<2x256xi1>, vector<2x256xf32>
    %1043 = arith.addf %970, %1042 : vector<2x256xf32>
    %1044 = vector.extract_strided_slice %899 {offsets = [0, 113], sizes = [2, 256], strides = [1, 1]} : vector<2x512xf32> to vector<2x256xf32>
    %c8_i32_497 = arith.constant 8 : i32
    %1045 = arith.muli %arg0, %c8_i32_497 : i32
    %c6_i32_498 = arith.constant 6 : i32
    %1046 = arith.addi %1045, %c6_i32_498 : i32
    %c0_i32_499 = arith.constant 0 : i32
    %1047 = arith.addi %1046, %c0_i32_499 : i32
    %c9_i32_500 = arith.constant 9 : i32
    %1048 = arith.muli %1047, %c9_i32_500 : i32
    %c0_i32_501 = arith.constant 0 : i32
    %1049 = arith.addi %1048, %c0_i32_501 : i32
    %c2_i32_502 = arith.constant 2 : i32
    %1050 = arith.addi %1049, %c2_i32_502 : i32
    %1051 = arith.index_cast %1050 : i32 to index
    %1052 = memref.load %arg2[%1051] : memref<72xf32, #tpu.memory_space<smem>>
    %1053 = vector.broadcast %1052 : f32 to vector<2x256xf32>
    %1054 = arith.mulf %1044, %1053 : vector<2x256xf32>
    %c8_i32_503 = arith.constant 8 : i32
    %1055 = arith.muli %arg0, %c8_i32_503 : i32
    %c6_i32_504 = arith.constant 6 : i32
    %1056 = arith.addi %1055, %c6_i32_504 : i32
    %c1_i32_505 = arith.constant 1 : i32
    %1057 = arith.addi %1056, %c1_i32_505 : i32
    %c9_i32_506 = arith.constant 9 : i32
    %1058 = arith.muli %1057, %c9_i32_506 : i32
    %c0_i32_507 = arith.constant 0 : i32
    %1059 = arith.addi %1058, %c0_i32_507 : i32
    %c2_i32_508 = arith.constant 2 : i32
    %1060 = arith.addi %1059, %c2_i32_508 : i32
    %1061 = arith.index_cast %1060 : i32 to index
    %1062 = memref.load %arg2[%1061] : memref<72xf32, #tpu.memory_space<smem>>
    %1063 = vector.broadcast %1062 : f32 to vector<2x256xf32>
    %1064 = arith.mulf %1044, %1063 : vector<2x256xf32>
    %1065 = vector.extract_strided_slice %899 {offsets = [0, 129], sizes = [2, 256], strides = [1, 1]} : vector<2x512xf32> to vector<2x256xf32>
    %c8_i32_509 = arith.constant 8 : i32
    %1066 = arith.muli %arg0, %c8_i32_509 : i32
    %c6_i32_510 = arith.constant 6 : i32
    %1067 = arith.addi %1066, %c6_i32_510 : i32
    %c0_i32_511 = arith.constant 0 : i32
    %1068 = arith.addi %1067, %c0_i32_511 : i32
    %c9_i32_512 = arith.constant 9 : i32
    %1069 = arith.muli %1068, %c9_i32_512 : i32
    %c3_i32_513 = arith.constant 3 : i32
    %1070 = arith.addi %1069, %c3_i32_513 : i32
    %c2_i32_514 = arith.constant 2 : i32
    %1071 = arith.addi %1070, %c2_i32_514 : i32
    %1072 = arith.index_cast %1071 : i32 to index
    %1073 = memref.load %arg2[%1072] : memref<72xf32, #tpu.memory_space<smem>>
    %1074 = vector.broadcast %1073 : f32 to vector<2x256xf32>
    %1075 = arith.mulf %1065, %1074 : vector<2x256xf32>
    %1076 = arith.addf %1054, %1075 : vector<2x256xf32>
    %c8_i32_515 = arith.constant 8 : i32
    %1077 = arith.muli %arg0, %c8_i32_515 : i32
    %c6_i32_516 = arith.constant 6 : i32
    %1078 = arith.addi %1077, %c6_i32_516 : i32
    %c1_i32_517 = arith.constant 1 : i32
    %1079 = arith.addi %1078, %c1_i32_517 : i32
    %c9_i32_518 = arith.constant 9 : i32
    %1080 = arith.muli %1079, %c9_i32_518 : i32
    %c3_i32_519 = arith.constant 3 : i32
    %1081 = arith.addi %1080, %c3_i32_519 : i32
    %c2_i32_520 = arith.constant 2 : i32
    %1082 = arith.addi %1081, %c2_i32_520 : i32
    %1083 = arith.index_cast %1082 : i32 to index
    %1084 = memref.load %arg2[%1083] : memref<72xf32, #tpu.memory_space<smem>>
    %1085 = vector.broadcast %1084 : f32 to vector<2x256xf32>
    %1086 = arith.mulf %1065, %1085 : vector<2x256xf32>
    %1087 = arith.addf %1064, %1086 : vector<2x256xf32>
    %1088 = vector.extract_strided_slice %899 {offsets = [0, 145], sizes = [2, 256], strides = [1, 1]} : vector<2x512xf32> to vector<2x256xf32>
    %c8_i32_521 = arith.constant 8 : i32
    %1089 = arith.muli %arg0, %c8_i32_521 : i32
    %c6_i32_522 = arith.constant 6 : i32
    %1090 = arith.addi %1089, %c6_i32_522 : i32
    %c0_i32_523 = arith.constant 0 : i32
    %1091 = arith.addi %1090, %c0_i32_523 : i32
    %c9_i32_524 = arith.constant 9 : i32
    %1092 = arith.muli %1091, %c9_i32_524 : i32
    %c6_i32_525 = arith.constant 6 : i32
    %1093 = arith.addi %1092, %c6_i32_525 : i32
    %c2_i32_526 = arith.constant 2 : i32
    %1094 = arith.addi %1093, %c2_i32_526 : i32
    %1095 = arith.index_cast %1094 : i32 to index
    %1096 = memref.load %arg2[%1095] : memref<72xf32, #tpu.memory_space<smem>>
    %1097 = vector.broadcast %1096 : f32 to vector<2x256xf32>
    %1098 = arith.mulf %1088, %1097 : vector<2x256xf32>
    %1099 = arith.addf %1076, %1098 : vector<2x256xf32>
    %c8_i32_527 = arith.constant 8 : i32
    %1100 = arith.muli %arg0, %c8_i32_527 : i32
    %c6_i32_528 = arith.constant 6 : i32
    %1101 = arith.addi %1100, %c6_i32_528 : i32
    %c1_i32_529 = arith.constant 1 : i32
    %1102 = arith.addi %1101, %c1_i32_529 : i32
    %c9_i32_530 = arith.constant 9 : i32
    %1103 = arith.muli %1102, %c9_i32_530 : i32
    %c6_i32_531 = arith.constant 6 : i32
    %1104 = arith.addi %1103, %c6_i32_531 : i32
    %c2_i32_532 = arith.constant 2 : i32
    %1105 = arith.addi %1104, %c2_i32_532 : i32
    %1106 = arith.index_cast %1105 : i32 to index
    %1107 = memref.load %arg2[%1106] : memref<72xf32, #tpu.memory_space<smem>>
    %1108 = vector.broadcast %1107 : f32 to vector<2x256xf32>
    %1109 = arith.mulf %1088, %1108 : vector<2x256xf32>
    %1110 = arith.addf %1087, %1109 : vector<2x256xf32>
    %cst_533 = arith.constant 0.000000e+00 : f32
    %1111 = vector.broadcast %cst_533 : f32 to vector<2x256xf32>
    %1112 = arith.select %54, %1099, %1111 : vector<2x256xi1>, vector<2x256xf32>
    %1113 = arith.addf %1040, %1112 : vector<2x256xf32>
    %cst_534 = arith.constant 0.000000e+00 : f32
    %1114 = vector.broadcast %cst_534 : f32 to vector<2x256xf32>
    %1115 = arith.select %54, %1110, %1114 : vector<2x256xi1>, vector<2x256xf32>
    %1116 = arith.addf %1043, %1115 : vector<2x256xf32>
    %c8_i32_535 = arith.constant 8 : i32
    %1117 = arith.muli %arg0, %c8_i32_535 : i32
    %c6_i32_536 = arith.constant 6 : i32
    %1118 = arith.addi %1117, %c6_i32_536 : i32
    %1119 = vector.shape_cast %1113 : vector<2x256xf32> to vector<1x2x256xf32>
    %cst_537 = arith.constant dense<0.000000e+00> : vector<1xf32>
    %1120 = vector.multi_reduction <add>, %1119, %cst_537 [1, 2] : vector<1x2x256xf32> to vector<1xf32>
    %1121 = vector.shape_cast %1120 : vector<1xf32> to vector<1x1x1xf32>
    %1122 = vector.extract %1121[0, 0, 0] : f32 from vector<1x1x1xf32>
    %1123 = arith.mulf %1113, %1113 : vector<2x256xf32>
    %1124 = vector.shape_cast %1123 : vector<2x256xf32> to vector<1x2x256xf32>
    %cst_538 = arith.constant dense<0.000000e+00> : vector<1xf32>
    %1125 = vector.multi_reduction <add>, %1124, %cst_538 [1, 2] : vector<1x2x256xf32> to vector<1xf32>
    %1126 = vector.shape_cast %1125 : vector<1xf32> to vector<1x1x1xf32>
    %1127 = vector.extract %1126[0, 0, 0] : f32 from vector<1x1x1xf32>
    %cst_539 = arith.constant 0.001953125 : f32
    %1128 = arith.mulf %1122, %cst_539 : f32
    %cst_540 = arith.constant 0.001953125 : f32
    %1129 = arith.mulf %1127, %cst_540 : f32
    %1130 = arith.mulf %1128, %1128 : f32
    %1131 = arith.subf %1129, %1130 : f32
    %cst_541 = arith.constant 9.99999974E-6 : f32
    %1132 = arith.addf %1131, %cst_541 : f32
    %1133 = math.rsqrt %1132 : f32
    %1134 = arith.index_cast %1118 : i32 to index
    %1135 = memref.load %arg3[%1134] : memref<8xf32, #tpu.memory_space<smem>>
    %1136 = arith.mulf %1133, %1135 : f32
    %1137 = arith.index_cast %1118 : i32 to index
    %1138 = memref.load %arg4[%1137] : memref<8xf32, #tpu.memory_space<smem>>
    %1139 = arith.mulf %1128, %1136 : f32
    %1140 = arith.subf %1138, %1139 : f32
    %1141 = vector.broadcast %1136 : f32 to vector<2x256xf32>
    %1142 = arith.mulf %1113, %1141 : vector<2x256xf32>
    %1143 = vector.broadcast %1140 : f32 to vector<2x256xf32>
    %1144 = arith.addf %1142, %1143 : vector<2x256xf32>
    %c0_542 = arith.constant 0 : index
    %c6 = arith.constant 6 : index
    %c0_543 = arith.constant 0 : index
    %1145 = vector.load %arg5[%c0_542, %c6, %c0_543] : memref<2x8x256xf32, #tpu.memory_space<vmem>>, vector<2x1x256xf32>
    %1146 = vector.shape_cast %1145 : vector<2x1x256xf32> to vector<2x256xf32>
    %1147 = vector.shape_cast %1144 : vector<2x256xf32> to vector<2x1x256xf32>
    tpu.vector_store %arg5[%c0_542, %c6, %c0_543], %1147 {strides = array<i32>} : memref<2x8x256xf32, #tpu.memory_space<vmem>>, vector<2x1x256xf32>,
    %c8_i32_544 = arith.constant 8 : i32
    %1148 = arith.muli %arg0, %c8_i32_544 : i32
    %c7_i32 = arith.constant 7 : i32
    %1149 = arith.addi %1148, %c7_i32 : i32
    %1150 = vector.shape_cast %1116 : vector<2x256xf32> to vector<1x2x256xf32>
    %cst_545 = arith.constant dense<0.000000e+00> : vector<1xf32>
    %1151 = vector.multi_reduction <add>, %1150, %cst_545 [1, 2] : vector<1x2x256xf32> to vector<1xf32>
    %1152 = vector.shape_cast %1151 : vector<1xf32> to vector<1x1x1xf32>
    %1153 = vector.extract %1152[0, 0, 0] : f32 from vector<1x1x1xf32>
    %1154 = arith.mulf %1116, %1116 : vector<2x256xf32>
    %1155 = vector.shape_cast %1154 : vector<2x256xf32> to vector<1x2x256xf32>
    %cst_546 = arith.constant dense<0.000000e+00> : vector<1xf32>
    %1156 = vector.multi_reduction <add>, %1155, %cst_546 [1, 2] : vector<1x2x256xf32> to vector<1xf32>
    %1157 = vector.shape_cast %1156 : vector<1xf32> to vector<1x1x1xf32>
    %1158 = vector.extract %1157[0, 0, 0] : f32 from vector<1x1x1xf32>
    %cst_547 = arith.constant 0.001953125 : f32
    %1159 = arith.mulf %1153, %cst_547 : f32
    %cst_548 = arith.constant 0.001953125 : f32
    %1160 = arith.mulf %1158, %cst_548 : f32
    %1161 = arith.mulf %1159, %1159 : f32
    %1162 = arith.subf %1160, %1161 : f32
    %cst_549 = arith.constant 9.99999974E-6 : f32
    %1163 = arith.addf %1162, %cst_549 : f32
    %1164 = math.rsqrt %1163 : f32
    %1165 = arith.index_cast %1149 : i32 to index
    %1166 = memref.load %arg3[%1165] : memref<8xf32, #tpu.memory_space<smem>>
    %1167 = arith.mulf %1164, %1166 : f32
    %1168 = arith.index_cast %1149 : i32 to index
    %1169 = memref.load %arg4[%1168] : memref<8xf32, #tpu.memory_space<smem>>
    %1170 = arith.mulf %1159, %1167 : f32
    %1171 = arith.subf %1169, %1170 : f32
    %1172 = vector.broadcast %1167 : f32 to vector<2x256xf32>
    %1173 = arith.mulf %1116, %1172 : vector<2x256xf32>
    %1174 = vector.broadcast %1171 : f32 to vector<2x256xf32>
    %1175 = arith.addf %1173, %1174 : vector<2x256xf32>
    %c0_550 = arith.constant 0 : index
    %c7 = arith.constant 7 : index
    %c0_551 = arith.constant 0 : index
    %1176 = vector.load %arg5[%c0_550, %c7, %c0_551] : memref<2x8x256xf32, #tpu.memory_space<vmem>>, vector<2x1x256xf32>
    %1177 = vector.shape_cast %1176 : vector<2x1x256xf32> to vector<2x256xf32>
    %1178 = vector.shape_cast %1175 : vector<2x256xf32> to vector<2x1x256xf32>
    tpu.vector_store %arg5[%c0_550, %c7, %c0_551], %1178 {strides = array<i32>} : memref<2x8x256xf32, #tpu.memory_space<vmem>>, vector<2x1x256xf32>,
    return
  }
  func.func @transform_0(%arg0: i32) -> (i32, i32, i32) {
    %c0_i32 = arith.constant 0 : i32
    %c0_i32_0 = arith.constant 0 : i32
    %c0_i32_1 = arith.constant 0 : i32
    return %c0_i32, %arg0, %c0_i32_0 : i32, i32, i32
  }
  func.func @transform_1(%arg0: i32) -> i32 {
    %c0_i32 = arith.constant 0 : i32
    %c0_i32_0 = arith.constant 0 : i32
    return %c0_i32 : i32
  }
  func.func @transform_2(%arg0: i32) -> i32 {
    %c0_i32 = arith.constant 0 : i32
    %c0_i32_0 = arith.constant 0 : i32
    return %c0_i32 : i32
  }
  func.func @transform_3(%arg0: i32) -> i32 {
    %c0_i32 = arith.constant 0 : i32
    %c0_i32_0 = arith.constant 0 : i32
    return %c0_i32 : i32
  }
  func.func @transform_4(%arg0: i32) -> (i32, i32, i32) {
    %c0_i32 = arith.constant 0 : i32
    %c0_i32_0 = arith.constant 0 : i32
    %c0_i32_1 = arith.constant 0 : i32
    return %c0_i32, %arg0, %c0_i32_0 : i32, i32, i32
  }
}

</mosaic_0001>

<bundles_post_ra>
// kernel: tpu_custom_call.1
= control target key start
LH: loop header
LB: loop body
LE: loop exit
PB: predicated region body
PF: predicated region fallthrough
CT: control target
= control target key end

     0   :  { %9 = vsyncpa [#allocation4], 0  ;;  %s4021_s0 = inlined_call_operand.hbm [shape: f32[2,4,256], index: 0, kind: input, shape index: {}]   ;;  %s4022_s1 = inlined_call_operand.hbm [shape: f32[72], index: 1, kind: input, shape index: {}]   ;;  %s4023_s2 = inlined_call_operand.vmem [shape: f32[8], index: 2, kind: input, shape index: {}]   ;;  %s4024_s3 = inlined_call_operand.vmem [shape: f32[8], index: 3, kind: input, shape index: {}]   ;;  %s4025_s4 = inlined_call_operand.hbm [shape: f32[2,8,256], index: 4, kind: output, shape index: {}]  }
   0x1   :  { %10 = vsyncpa [#allocation6], 0 }
   0x2   :  { %11 = vsyncpa [#allocation7], 0 }
   0x3   :  { %12 = vsyncpa [#allocation11], 0 }
   0x4   :  { %13 = vsyncpa [#allocation5], 0  ;;  %s18_s17 = sshll.u32 %s4021_s0, 4  ;;  %s2770_s18 = smov [#allocation3]   ;;  %s19_s17 = int_to_ptr.hbm [resolvable:$true] %s18_s17 }
   0x5   :  { %s20_s19 = sshll.u32 %s2770_s18, 4  ;;  %s32_s22 = sshll.u32 %s4022_s1, 4  ;;  %s21_s19 = int_to_ptr.vmem [resolvable:$true] %s20_s19  ;;  %s33_s22 = int_to_ptr.hbm [resolvable:$true] %s32_s22 }
   0x6   :  { %s2771_s23 = smov 128   ;;  %s2772_s24 = smov 8  }
   0x7   :  { %26 = dma.hbm_to_vmem [thread:$0]  %s19_s17, 256, %s21_s19, [#allocation4], %s2771_s23, %s2771_s23, %s2772_s24  }
   0x8   :  { %s2773_s25 = smov [#allocation8]   ;;  %s41_s28 = sshll.u32 %s4023_s2, 4  ;;  %s42_s28 = int_to_ptr.vmem [resolvable:$true] %s41_s28 }
   0x9   :  { %35 = dma.hbm_to_smem %s33_s22, 16, %s2773_s25, [#allocation6]  }
   0xa   :  { %s50_s30 = sshll.u32 %s4024_s3, 4  ;;  %s2774_s5 = smov [#allocation9]   ;;  %s51_s30 = int_to_ptr.vmem [resolvable:$true] %s50_s30 }
   0xb   :  { %44 = dma.vmem_to_smem %s42_s28, 16, %s2774_s5, [#allocation7]  }
   0xc   :  { %s2775_s6 = smov [#allocation10]  }
   0xd   :  { %53 = dma.vmem_to_smem %s51_s30, 16, %s2775_s6, [#allocation11]  }
   0xe   :  { %2760 = dma.done.wait [#allocation4], 256  }
   0xf   :  { %2761 = vsyncadd [#allocation4], 4294967040 }
  0x10   :  { %2762 = dma.done.wait [#allocation6], 16  }
  0x11   :  { %2763 = vsyncadd [#allocation6], 4294967280 }
  0x12   :  { %2764 = dma.done.wait [#allocation7], 16  }
  0x13   :  { %2765 = vsyncadd [#allocation7], 4294967280 }
  0x14   :  { %2766 = dma.done.wait [#allocation11], 16  }
  0x15   :  { %2767 = vsyncadd [#allocation11], 4294967280 }
  0x16   :  { %70 = sfence }
  0x17   :  { %v79_v0 = vld [vmem:[#allocation3] sm:$0xff]  ;;  %v2776_v1 = vmov 0.0   ;;  %v80_v2 = vld [vmem:[#allocation3 + $0x8] sm:$0xff]  ;;  %s2777_s1 = smov 112   ;;  %s2778_s2 = smov 113   ;;  %vm211_vm0 = vcmask 924672  }
  0x18   :  { %75 = vst [vmem:[#allocation2] sm:$0xff] %v2776_v1  ;;  %s2779_s3 = smov 127   ;;  %s2507_s7 = sld [smem:[#allocation8 + $0x3]]  ;;  %vm172_vm1 = vcmask 916480   ;;  %vm4027_vm2 = vcmask 1039360   ;;  %vm4026_vm3 = vcmask 908288  }
  0x19   :  { %76 = vst [vmem:[#allocation2 + $0x8] sm:$0xff] %v2776_v1  ;;  %s2513_s8 = sld [smem:[#allocation8 + $0x4]]  ;;  %s2780_s10 = smov 111   ;;  %vm266_vm4 = vcmask 138240   ;;  %vm409_vm6 = vcmask 130048   ;;  %vm565_vm7 = vcmask 121856  }
  0x1a   :  { %81 = vst [vmem:[#allocation2 + $0x4] sm:$0xff] %v79_v0  ;;  %s2508_s9 = sld [smem:[#allocation8 + $0xc]]  ;;  %vm596_vm11 = vcmask 1041408   ;;  %vm654_vm15 = vcmask 1040384  }
  0x1b   :  { %77 = vst [vmem:[#allocation2 + $0x10] sm:$0xff] %v2776_v1  ;;  %s2514_s11 = sld [smem:[#allocation8 + $0xd]] }
  0x1c   :  { %78 = vst [vmem:[#allocation2 + $0x18] sm:$0xff] %v2776_v1  ;;  %s2875_s12 = sld [smem:[#allocation8 + $0x15]] }
  0x1d   :  { %82 = vst [vmem:[#allocation2 + $0x14] sm:$0xff] %v80_v2  ;;  %s2509_s13 = sld [smem:[#allocation8 + $0x6]] }
  0x1e   :  { %v161_v5 = vstv %s2507_s7  ;;  %s2884_s14 = sld [smem:[#allocation8 + $0x7]] }
  0x1f   :  { %v305_v7 = vstv %s2513_s8  ;;  %s2887_s15 = sld [smem:[#allocation8 + $0xf]] }
  0x20   :  { %v181_v8 = vstv %s2508_s9  ;;  %s2893_s16 = sld [smem:[#allocation8 + $0x10]]  ;;  %s2781_s9 = smov 17  }
  0x21   :  { %v2823_v3 = vld [vmem:[#allocation2] ss:$4 sm:$0xf]  ;;  %v328_v15 = vstv %s2514_s11  ;;  %v2856_v19 = vld [vmem:[#allocation2 + $0x1] ss:$4 sm:$0xf] }
  0x22   :  { %348 = vrot.lane.b32.xlu1 %v2823_v3, %s2777_s1  ;;  %203 = vrot.lane.b32.xlu0 %v2823_v3, %s2778_s2  ;;  %v162_v6 = vmul.f32 %v161_v5, %v2823_v3  ;;  %v306_v13 = vrot.slane %v2823_v3, 1  ;;  %v182_v14 = vmul.f32 %v181_v8, %v2823_v3  ;;  %v756_v21 = vstv %s2875_s12  ;;  %s2519_s17 = sld [smem:[#allocation8 + $0x5]] }
  0x23   :  { %453 = vrot.lane.b32.xlu2 %v2823_v3, %s2779_s3  ;;  %v757_v22 = vmul.f32 %v756_v21, %v2856_v19  ;;  %v200_v29 = vstv %s2509_s13  ;;  %s2521_s18 = sld [smem:[#allocation8 + $0x8]]  ;;  %s2782_s13 = smov 16  }
  0x24   :  { %v2831_v4 = vld [vmem:[#allocation2 + $0x10] ss:$4 sm:$0xf]  ;;  %v310_v16 = vmul.f32 %v306_v13, %v305_v7  ;;  %v329_v17 = vmul.f32 %v328_v15, %v306_v13  ;;  %v2863_v20 = vld [vmem:[#allocation2 + $0x11] ss:$4 sm:$0xf]  ;;  %v347_v35 = vstv %s2884_s14 }
  0x25   :  { %v307_v9 = vrot.slane %v2831_v4, 1  ;;  %v163_v10 = vmul.f32 %v161_v5, %v2831_v4  ;;  %v183_v11 = vmul.f32 %v181_v8, %v2831_v4  ;;  %v235_v42 = vstv %s2887_s15  ;;  %s2912_s19 = sld [smem:[#allocation8 + $0xe]] }
  0x26   :  { %v378_v51 = vstv %s2893_s16  ;;  %s2918_s20 = sld [smem:[#allocation8 + $0x1e]] }
  0x27   :  { %v311_v12 = vmul.f32 %v307_v9, %v305_v7  ;;  %v330_v18 = vmul.f32 %v328_v15, %v307_v9  ;;  %s2522_s21 = sld [smem:[#allocation8 + $0x11]] }
  0x28   :  { %v452_v59 = vstv %s2519_s17  ;;  %s2529_s22 = sld [smem:[#allocation8 + $0x18]]  ;;  %s2783_s17 = smov 15  }
  0x29   :  { %s2939_s23 = sld [smem:[#allocation8 + $0x21]] }
  0x2a   :  { %350 = vrot.lane.b32.xlu1 %v2831_v4, %s2777_s1  ;;  %205 = vrot.lane.b32.xlu0 %v2831_v4, %s2778_s2  ;;  %s2533_s24 = sld [smem:[#allocation8 + $0x16]] }
  0x2b   :  { %455 = vrot.lane.b32.xlu2 %v2831_v4, %s2779_s3  ;;  %s2535_s25 = sld [smem:[#allocation8 + $0x19]] }
  0x2c   :  { %s2957_s26 = sld [smem:[#allocation8 + $0x1f]] }
  0x2d   :  { %s2536_s27 = sld [smem:[#allocation8 + $0x22]] }
  0x2e   :  { %s2968_s28 = sld [smem:[#allocation8 + $0x1a]] }
  0x2f   :  { %s2539_s0 = sld [smem:[#allocation8 + $0x17]] }
  0x30   :  { %s2976_s29 = sld [smem:[#allocation8 + $0x23]] }
  0x31   :  { %s2540_s30 = sld [smem:[#allocation8 + $0x20]] }
  0x32   :  { %504 = vrot.lane.b32.xlu0 %v2823_v3, %s2780_s10  ;;  %506 = vrot.lane.b32.xlu1 %v2831_v4, %s2780_s10  ;;  %s2979_s5 = sld [smem:[#allocation8]] }
  0x33   :  { %166 = vrot.lane.b32.xlu2 %v162_v6, %s2777_s1  ;;  %s2506_s6 = sld [smem:[#allocation8 + $0x9]] }
  0x34   :  { %s3016_s7 = sld [smem:[#allocation8 + $0x1]] }
  0x35   :  { %s3031_s8 = sld [smem:[#allocation8 + $0xa]] }
  0x36   :  { %s3046_s11 = sld [smem:[#allocation8 + $0x2]] }
  0x37   :  { %s3067_s12 = sld [smem:[#allocation8 + $0xb]] }
  0x38   :  { %s3089_s14 = sld [smem:[#allocation8 + $0x12]] }
  0x39   :  { %s3093_s15 = sld [smem:[#allocation8 + $0x27]] }
  0x3a   :  { %168 = vrot.lane.b32.xlu0 %v163_v10, %s2777_s1  ;;  %188 = vrot.lane.b32.xlu1 %v183_v11, %s2777_s1  ;;  %v503_v10 = vstv %s2521_s18  ;;  %s3106_s16 = sld [smem:[#allocation8 + $0x1b]] }
  0x3b   :  { %316 = vrot.lane.b32.xlu2 %v311_v12, %s2777_s1  ;;  %s3128_s18 = sld [smem:[#allocation8 + $0x13]] }
  0x42   :  { %186 = vrot.lane.b32.xlu0 %v182_v14, %s2777_s1  ;;  %314 = vrot.lane.b32.xlu1 %v310_v16, %s2777_s1  ;;  %v484_v14 = vstv %s2912_s19  ;;  %s3151_s19 = sld [smem:[#allocation8 + $0x1c]] }
  0x43   :  { %333 = vrot.lane.b32.xlu2 %v329_v17, %s2777_s1 }
  0x4a   :  { %335 = vrot.lane.b32.xlu0 %v330_v18, %s2777_s1  ;;  %939 = vrot.lane.b32.xlu1 %v2856_v19, %s2777_s1 }
  0x4b   :  { %797 = vrot.lane.b32.xlu2 %v2856_v19, %s2778_s2 }
  0x52   :  { %799 = vrot.lane.b32.xlu0 %v2863_v20, %s2778_s2 }
  0x53   :  { %941 = vrot.lane.b32.xlu2 %v2863_v20, %s2777_s1 }
  0x5b   :  { %1043 = vrot.lane.b32.xlu2 %v2856_v19, %s2779_s3 }
  0x63   :  { %1045 = vrot.lane.b32.xlu2 %v2863_v20, %s2779_s3 }
  0x6b   :  { %1093 = vrot.lane.b32.xlu2 %v2856_v19, %s2780_s10 }
  0x73   :  { %1095 = vrot.lane.b32.xlu2 %v2863_v20, %s2780_s10 }
  0x7b   :  { %761 = vrot.lane.b32.xlu2 %v757_v22, %s2777_s1  ;;  %v775_v22 = vstv %s2918_s20  ;;  %s3170_s20 = sld [smem:[#allocation8 + $0x14]] }
  0x7d   :  { %v454_v23 = vpop.permute.xlu2 %453 }
  0x7e   :  { %v457_v52 = vrot.slane %v454_v23, 1  ;;  %v459_v53 = vrot.slane %v454_v23, 2  ;;  %v534_v23 = vstv %s2522_s21  ;;  %s3191_s21 = sld [smem:[#allocation8 + $0x1d]] }
  0x80   :  { %v462_v61 = vsel %vm4027_vm2, %v457_v52, %v459_v53 }
  0x81   :  { %v466_v2 = vmul.f32 %v462_v61, %v452_v59  ;;  %v485_v18 = vmul.f32 %v484_v14, %v462_v61  ;;  %v919_v61 = vstv %s2957_s26  ;;  %s3294_s26 = sld [smem:[#allocation8 + $0x32]] }
  0x85   :  { %v456_v24 = vpop.permute.xlu2 %455 }
  0x86   :  { %v458_v54 = vrot.slane %v456_v24, 1  ;;  %v460_v55 = vrot.slane %v456_v24, 2 }
  0x88   :  { %v463_v60 = vsel %vm4027_vm2, %v458_v54, %v460_v55 }
  0x89   :  { %v467_v1 = vmul.f32 %v463_v60, %v452_v59 }
  0x8d   :  { %v2889_v32 = vpop.permute.xlu2 %166 }
  0x94   :  { %v349_v25 = vpop.permute.xlu1 %348  ;;  %v204_v26 = vpop.permute.xlu0 %203 }
  0x95   :  { %v207_v27 = vrot.slane %v204_v26, 1  ;;  %v209_v28 = vrot.slane %v204_v26, 2  ;;  %v352_v46 = vrot.slane %v349_v25, 1  ;;  %v354_v47 = vrot.slane %v349_v25, 2  ;;  %v2901_v48 = vpop.permute.xlu2 %316 }
  0x96   :  { %v777_v25 = vmul.f32 %v775_v22, %v2863_v20 }
  0x97   :  { %v212_v30 = vsel %vm211_vm0, %v207_v27, %v209_v28  ;;  %v356_v50 = vsel %vm172_vm1, %v352_v46, %v354_v47  ;;  %v776_v47 = vmul.f32 %v775_v22, %v2856_v19 }
  0x98   :  { %v216_v31 = vmul.f32 %v212_v30, %v200_v29  ;;  %v379_v56 = vmul.f32 %v378_v51, %v356_v50  ;;  %v360_v57 = vmul.f32 %v356_v50, %v347_v35  ;;  %v236_v58 = vmul.f32 %v235_v42, %v212_v30 }
  0x99   :  { %v896_v50 = vstv %s2533_s24  ;;  %s3249_s24 = sld [smem:[#allocation8 + $0x30]] }
  0x9a   :  { %220 = vrot.lane.b32.xlu1 %v216_v31, %s2780_s10 }
  0x9c   :  { %v351_v33 = vpop.permute.xlu1 %350  ;;  %v206_v34 = vpop.permute.xlu0 %205 }
  0x9d   :  { %v353_v36 = vrot.slane %v351_v33, 1  ;;  %v355_v37 = vrot.slane %v351_v33, 2  ;;  %v208_v38 = vrot.slane %v206_v34, 1  ;;  %v210_v39 = vrot.slane %v206_v34, 2  ;;  %v2914_v0 = vpop.permute.xlu2 %333 }
  0x9e   :  { %v794_v33 = vstv %s2529_s22  ;;  %s3214_s22 = sld [smem:[#allocation8 + $0x33]] }
  0x9f   :  { %v357_v40 = vsel %vm172_vm1, %v353_v36, %v355_v37  ;;  %v213_v41 = vsel %vm211_vm0, %v208_v38, %v210_v39  ;;  %v758_v38 = vmul.f32 %v756_v21, %v2863_v20  ;;  %v897_v21 = vrot.slane %v2856_v19, 1 }
  0xa0   :  { %v361_v43 = vmul.f32 %v357_v40, %v347_v35  ;;  %v237_v44 = vmul.f32 %v235_v42, %v213_v41  ;;  %v217_v45 = vmul.f32 %v213_v41, %v200_v29  ;;  %v380_v9 = vmul.f32 %v378_v51, %v357_v40 }
  0xa1   :  { %v486_v29 = vmul.f32 %v484_v14, %v463_v60  ;;  %v827_v42 = vstv %s2939_s23  ;;  %v901_v53 = vmul.f32 %v897_v21, %v896_v50  ;;  %v938_v60 = vstv %s2535_s25  ;;  %s2551_s23 = sld [smem:[#allocation8 + $0x2a]] }
  0xa2   :  { %366 = vrot.lane.b32.xlu1 %v361_v43, %s2777_s1  ;;  %242 = vrot.lane.b32.xlu0 %v237_v44, %s2780_s10  ;;  %s2557_s25 = sld [smem:[#allocation8 + $0x2b]] }
  0xa3   :  { %222 = vrot.lane.b32.xlu2 %v217_v45, %s2780_s10 }
  0xa4   :  { %v505_v49 = vpop.permute.xlu0 %504  ;;  %v507_v62 = vpop.permute.xlu1 %506 }
  0xa5   :  { %v509_v5 = vrot.slane %v507_v62, 1  ;;  %v511_v6 = vrot.slane %v507_v62, 2  ;;  %v508_v7 = vrot.slane %v505_v49, 1  ;;  %v510_v8 = vrot.slane %v505_v49, 2  ;;  %v798_v17 = vpop.permute.xlu2 %797 }
  0xa6   :  { %v801_v27 = vrot.slane %v798_v17, 1  ;;  %v803_v28 = vrot.slane %v798_v17, 2  ;;  %v898_v49 = vrot.slane %v2863_v20, 1 }
  0xa7   :  { %v513_v11 = vsel %vm4026_vm3, %v509_v5, %v511_v6  ;;  %v512_v12 = vsel %vm4026_vm3, %v508_v7, %v510_v8  ;;  %v969_v8 = vstv %s2536_s27  ;;  %s3306_s27 = sld [smem:[#allocation8 + $0x31]] }
  0xa8   :  { %v517_v15 = vmul.f32 %v513_v11, %v503_v10  ;;  %v516_v16 = vmul.f32 %v512_v12, %v503_v10  ;;  %v535_v26 = vmul.f32 %v534_v23, %v512_v12  ;;  %v805_v34 = vsel %vm211_vm0, %v801_v27, %v803_v28 }
  0xa9   :  { %v536_v36 = vmul.f32 %v534_v23, %v513_v11  ;;  %v809_v37 = vmul.f32 %v805_v34, %v794_v33  ;;  %v828_v46 = vmul.f32 %v827_v42, %v805_v34  ;;  %v902_v54 = vmul.f32 %v898_v49, %v896_v50 }
  0xaa   :  { %383 = vrot.lane.b32.xlu1 %v379_v56, %s2777_s1  ;;  %364 = vrot.lane.b32.xlu0 %v360_v57, %s2777_s1  ;;  %v1042_v27 = vstv %s2539_s0  ;;  %s2563_s0 = sld [smem:[#allocation8 + $0x2c]] }
  0xab   :  { %240 = vrot.lane.b32.xlu2 %v236_v58, %s2780_s10 }
  0xac   :  { %v2910_v63 = vpop.permute.xlu0 %168  ;;  %v2933_v30 = vpop.permute.xlu1 %188 }
  0xad   :  { %v942_v31 = vpop.permute.xlu2 %941 }
  0xae   :  { %v944_v55 = vrot.slane %v942_v31, 1  ;;  %v946_v56 = vrot.slane %v942_v31, 2 }
  0xb0   :  { %v948_v62 = vsel %vm172_vm1, %v944_v55, %v946_v56  ;;  %v170_v56 = vrot.slane %v2889_v32, 1 }
  0xb1   :  { %v952_v5 = vmul.f32 %v948_v62, %v938_v60 }
  0xb2   :  { %472 = vrot.lane.b32.xlu1 %v467_v1, %s2778_s2  ;;  %470 = vrot.lane.b32.xlu0 %v466_v2, %s2778_s2  ;;  %v920_v2 = vmul.f32 %v919_v61, %v897_v21 }
  0xb3   :  { %385 = vrot.lane.b32.xlu2 %v380_v9, %s2777_s1 }
  0xb4   :  { %v2923_v13 = vpop.permute.xlu0 %186  ;;  %v2949_v43 = vpop.permute.xlu1 %314 }
  0xb5   :  { %v1044_v44 = vpop.permute.xlu2 %1043 }
  0xb6   :  { %v1049_v22 = vrot.slane %v1044_v44, 2 }
  0xba   :  { %489 = vrot.lane.b32.xlu1 %v485_v18, %s2778_s2  ;;  %522 = vrot.lane.b32.xlu0 %v517_v15, %s2778_s2  ;;  %v921_v15 = vmul.f32 %v919_v61, %v898_v49  ;;  %v1047_v18 = vrot.slane %v1044_v44, 1 }
  0xbb   :  { %520 = vrot.lane.b32.xlu2 %v516_v16, %s2778_s2  ;;  %v971_v16 = vmul.f32 %v969_v8, %v948_v62 }
  0xbc   :  { %v2930_v24 = vpop.permute.xlu0 %335  ;;  %v940_v51 = vpop.permute.xlu1 %939  ;;  %v1051_v28 = vsel %vm4027_vm2, %v1047_v18, %v1049_v22 }
  0xbd   :  { %v1046_v52 = vpop.permute.xlu2 %1045  ;;  %v943_v58 = vrot.slane %v940_v51, 1  ;;  %v945_v59 = vrot.slane %v940_v51, 2  ;;  %v2996_v51 = vld [vmem:[#allocation2 + $0x12] ss:$4 sm:$0xf] }
  0xbe   :  { %v1048_v9 = vrot.slane %v1046_v52, 1  ;;  %v1050_v11 = vrot.slane %v1046_v52, 2  ;;  %v2998_v52 = vld [vmem:[#allocation2 + $0x2] ss:$4 sm:$0xf] }
  0xbf   :  { %v947_v1 = vsel %vm172_vm1, %v943_v58, %v945_v59  ;;  %v173_v59 = vsel %vm172_vm1, %v2889_v32, %v170_v56 }
  0xc0   :  { %v951_v6 = vmul.f32 %v947_v1, %v938_v60  ;;  %v970_v10 = vmul.f32 %v969_v8, %v947_v1  ;;  %v1052_v23 = vsel %vm4027_vm2, %v1048_v9, %v1050_v11 }
  0xc2   :  { %782 = vrot.lane.b32.xlu1 %v777_v25, %s2777_s1  ;;  %539 = vrot.lane.b32.xlu0 %v535_v26, %s2778_s2  ;;  %v1092_v25 = vstv %s2968_s28  ;;  %s2561_s28 = sld [smem:[#allocation8 + $0x29]] }
  0xc3   :  { %491 = vrot.lane.b32.xlu2 %v486_v29, %s2778_s2  ;;  %v1056_v29 = vmul.f32 %v1052_v23, %v1042_v27 }
  0xc4   :  { %v800_v35 = vpop.permute.xlu0 %799 }
  0xc5   :  { %v802_v39 = vrot.slane %v800_v35, 1  ;;  %v804_v40 = vrot.slane %v800_v35, 2  ;;  %v1094_v7 = vpop.permute.xlu2 %1093  ;;  %v1055_v35 = vmul.f32 %v1051_v28, %v1042_v27  ;;  %v295_v27 = vstv %s3016_s7  ;;  %s2548_s7 = sld [smem:[#allocation8 + $0x2d]] }
  0xc6   :  { %v1097_v12 = vrot.slane %v1094_v7, 1  ;;  %v1099_v14 = vrot.slane %v1094_v7, 2 }
  0xc7   :  { %v806_v41 = vsel %vm211_vm0, %v802_v39, %v804_v40  ;;  %v1073_v40 = vstv %s2540_s30  ;;  %s3384_s30 = sld [smem:[#allocation8 + $0x24]] }
  0xc8   :  { %v810_v45 = vmul.f32 %v806_v41, %v794_v33  ;;  %v829_v57 = vmul.f32 %v827_v42, %v806_v41  ;;  %v1101_v26 = vsel %vm4026_vm3, %v1097_v12, %v1099_v14  ;;  %v171_v42 = vrot.slane %v2910_v63, 1 }
  0xc9   :  { %v1105_v31 = vmul.f32 %v1101_v26, %v1092_v25  ;;  %v1075_v44 = vmul.f32 %v1073_v40, %v1052_v23  ;;  %v1074_v55 = vmul.f32 %v1073_v40, %v1051_v28  ;;  %v319_v28 = vrot.slane %v2901_v48, 7 }
  0xca   :  { %541 = vrot.lane.b32.xlu1 %v536_v36, %s2778_s2  ;;  %813 = vrot.lane.b32.xlu0 %v809_v37, %s2780_s10  ;;  %v1123_v37 = vstv %s2976_s29  ;;  %s3326_s29 = sld [smem:[#allocation8 + $0x35]] }
  0xcb   :  { %763 = vrot.lane.b32.xlu2 %v758_v38, %s2777_s1  ;;  %v1124_v39 = vmul.f32 %v1123_v37, %v1101_v26 }
  0xcd   :  { %v1096_v17 = vpop.permute.xlu2 %1095 }
  0xce   :  { %v1098_v33 = vrot.slane %v1096_v17, 1  ;;  %v1100_v34 = vrot.slane %v1096_v17, 2 }
  0xd0   :  { %v1102_v38 = vsel %vm4026_vm3, %v1098_v33, %v1100_v34  ;;  %v296_v34 = vmul.f32 %v295_v27, %v2823_v3 }
  0xd1   :  { %v1106_v41 = vmul.f32 %v1102_v38, %v1092_v25  ;;  %v318_v25 = vrot.slane %v2949_v43, 7 }
  0xd2   :  { %815 = vrot.lane.b32.xlu1 %v810_v45, %s2780_s10  ;;  %832 = vrot.lane.b32.xlu0 %v828_v46, %s2780_s10  ;;  %v149_v45 = vstv %s2979_s5  ;;  %s2555_s5 = sld [smem:[#allocation8 + $0x28]] }
  0xd3   :  { %780 = vrot.lane.b32.xlu2 %v776_v47, %s2777_s1  ;;  %v151_v46 = vmul.f32 %v149_v45, %v2831_v4  ;;  %v174_v47 = vsel %vm172_vm1, %v2910_v63, %v171_v42  ;;  %v150_v58 = vmul.f32 %v149_v45, %v2823_v3 }
  0xd5   :  { %v2984_v36 = vpop.permute.xlu2 %761  ;;  %v178_v50 = vadd.f32 %v174_v47, %v151_v46  ;;  %v177_v1 = vadd.f32 %v173_v59, %v150_v58 }
  0xda   :  { %905 = vrot.lane.b32.xlu1 %v901_v53, %s2777_s1  ;;  %907 = vrot.lane.b32.xlu0 %v902_v54, %s2777_s1 }
  0xdb   :  { %834 = vrot.lane.b32.xlu2 %v829_v57, %s2780_s10  ;;  %v1125_v57 = vmul.f32 %v1123_v37, %v1102_v38  ;;  %v297_v37 = vmul.f32 %v295_v27, %v2831_v4  ;;  %v320_v38 = vsel %vm172_vm1, %v318_v25, %v2949_v43  ;;  %v300_v43 = vstv %s3031_s8 }
  0xdc   :  { %v324_v45 = vadd.f32 %v320_v38, %v296_v34 }
  0xe2   :  { %924 = vrot.lane.b32.xlu0 %v920_v2, %s2777_s1  ;;  %957 = vrot.lane.b32.xlu1 %v952_v5, %s2777_s1  ;;  %v156_v2 = vstv %s2506_s6  ;;  %v190_v5 = vrot.slane %v2923_v13, 1  ;;  %s2558_s6 = sld [smem:[#allocation8 + $0x34]] }
  0xe3   :  { %955 = vrot.lane.b32.xlu2 %v951_v6, %s2777_s1  ;;  %v191_v6 = vrot.slane %v2933_v30, 1  ;;  %v157_v32 = vmul.f32 %v156_v2, %v2823_v3 }
  0xe4   :  { %v192_v11 = vsel %vm172_vm1, %v2923_v13, %v190_v5 }
  0xe5   :  { %v193_v12 = vsel %vm172_vm1, %v2933_v30, %v191_v6  ;;  %v196_v22 = vadd.f32 %v192_v11, %v157_v32  ;;  %v442_v32 = vstv %s3046_s11 }
  0xea   :  { %976 = vrot.lane.b32.xlu0 %v971_v16, %s2777_s1  ;;  %974 = vrot.lane.b32.xlu1 %v970_v10, %s2777_s1  ;;  %v158_v10 = vmul.f32 %v156_v2, %v2831_v4 }
  0xeb   :  { %926 = vrot.lane.b32.xlu2 %v921_v15, %s2777_s1 }
  0xec   :  { %v197_v23 = vadd.f32 %v193_v12, %v158_v10 }
  0xf2   :  { %1061 = vrot.lane.b32.xlu1 %v1056_v29, %s2778_s2  ;;  %1109 = vrot.lane.b32.xlu0 %v1105_v31, %s2778_s2 }
  0xf3   :  { %1059 = vrot.lane.b32.xlu2 %v1055_v35, %s2778_s2 }
  0xfa   :  { %1128 = vrot.lane.b32.xlu1 %v1124_v39, %s2778_s2  ;;  %1080 = vrot.lane.b32.xlu0 %v1075_v44, %s2778_s2  ;;  %v321_v39 = vsel %vm172_vm1, %v319_v28, %v2901_v48  ;;  %v338_v48 = vrot.slane %v2930_v24, 7 }
  0xfb   :  { %1111 = vrot.lane.b32.xlu2 %v1106_v41, %s2778_s2  ;;  %v325_v47 = vadd.f32 %v321_v39, %v297_v37 }
  0xfc   :  { %v340_v5 = vsel %vm172_vm1, %v338_v48, %v2930_v24 }
  0xfd   :  { %v223_v21 = vpop.permute.xlu2 %222 }
  0xfe   :  { %v225_v49 = vrot.slane %v223_v21, 7 }
 0x100   :  { %v228_v53 = vsel %vm4026_vm3, %v225_v49, %v223_v21 }
 0x101   :  { %v232_v54 = vadd.f32 %v228_v53, %v178_v50  ;;  %v337_v50 = vrot.slane %v2914_v0, 7 }
 0x102   :  { %1381 = vrot.lane.b32.xlu1 %v2996_v51, %s2778_s2  ;;  %1379 = vrot.lane.b32.xlu0 %v2998_v52, %s2778_s2 }
 0x103   :  { %256 = vst [vmem:[#allocation1 + $0x1] ss:$9 sm:$0xff] %v232_v54  ;;  %1078 = vrot.lane.b32.xlu2 %v1074_v55, %s2778_s2 }
 0x105   :  { %v241_v63 = vpop.permute.xlu2 %240 }
 0x106   :  { %v244_v9 = vrot.slane %v241_v63, 7 }
 0x108   :  { %v246_v16 = vsel %vm4026_vm3, %v244_v9, %v241_v63 }
 0x109   :  { %v250_v13 = vadd.f32 %v246_v16, %v196_v22  ;;  %v443_v22 = vmul.f32 %v442_v32, %v2823_v3 }
 0x10b   :  { %1130 = vrot.lane.b32.xlu2 %v1125_v57, %s2778_s2  ;;  %v301_v57 = vmul.f32 %v300_v43, %v2823_v3 }
 0x10c   :  { %v221_v60 = vpop.permute.xlu1 %220 }
 0x10d   :  { %v224_v61 = vrot.slane %v221_v60, 7  ;;  %v3011_v62 = vpop.permute.xlu2 %385 }
 0x10e   :  { %v388_v58 = vrot.slane %v3011_v62, 7 }
 0x10f   :  { %v227_v7 = vsel %vm4026_vm3, %v224_v61, %v221_v60  ;;  %v339_v61 = vsel %vm172_vm1, %v337_v50, %v2914_v0  ;;  %v444_v0 = vmul.f32 %v442_v32, %v2831_v4 }
 0x110   :  { %v231_v8 = vadd.f32 %v227_v7, %v177_v1  ;;  %v302_v1 = vmul.f32 %v300_v43, %v2831_v4  ;;  %v390_v9 = vsel %vm172_vm1, %v388_v58, %v3011_v62 }
 0x112   :  { %254 = vst [vmem:[#allocation1] ss:$9 sm:$0xff] %v231_v8  ;;  %v343_v8 = vadd.f32 %v339_v61, %v301_v57  ;;  %v344_v11 = vadd.f32 %v340_v5, %v302_v1  ;;  %v1338_v1 = vstv %s3093_s15 }
 0x113   :  { %v1340_v32 = vmul.f32 %v1338_v1, %v2996_v51 }
 0x114   :  { %v367_v14 = vpop.permute.xlu1 %366  ;;  %v243_v15 = vpop.permute.xlu0 %242 }
 0x115   :  { %v245_v17 = vrot.slane %v243_v15, 7  ;;  %v3025_v18 = vpop.permute.xlu2 %520  ;;  %v369_v35 = vrot.slane %v367_v14, 7 }
 0x116   :  { %v524_v62 = vrot.slane %v3025_v18, 7 }
 0x117   :  { %v247_v26 = vsel %vm4026_vm3, %v245_v17, %v243_v15  ;;  %v371_v46 = vsel %vm172_vm1, %v369_v35, %v367_v14  ;;  %v394_v14 = vadd.f32 %v390_v9, %v344_v11  ;;  %v447_v35 = vstv %s3067_s12 }
 0x118   :  { %v251_v29 = vadd.f32 %v247_v26, %v197_v23  ;;  %v375_v53 = vadd.f32 %v371_v46, %v325_v47  ;;  %v449_v43 = vmul.f32 %v447_v35, %v2831_v4 }
 0x119   :  { %v257_v30 = vld [vmem:[#allocation1] sm:$0xff]  ;;  %v258_v31 = vld [vmem:[#allocation1 + $0x9] sm:$0xff]  ;;  %v259_v33 = vld [vmem:[#allocation1 + $0x12] sm:$0xff] }
 0x11a   :  { %275 = vst [vmem:[#allocation1] ss:$9 sm:$0xff] %v250_v13  ;;  %264 = vrot.lane.b32.xlu0 %v259_v33, %s2781_s9  ;;  %262 = vrot.lane.b32.xlu2 %v258_v31, %s2781_s9  ;;  %v526_v31 = vsel %vm211_vm0, %v524_v62, %v3025_v18 }
 0x11b   :  { %277 = vst [vmem:[#allocation1 + $0x1] ss:$9 sm:$0xff] %v251_v29  ;;  %260 = vrot.lane.b32.xlu1 %v257_v30, %s2781_s9 }
 0x11c   :  { %v384_v40 = vpop.permute.xlu1 %383  ;;  %v365_v41 = vpop.permute.xlu0 %364 }
 0x11d   :  { %v368_v42 = vrot.slane %v365_v41, 7  ;;  %v3042_v44 = vpop.permute.xlu2 %491  ;;  %v387_v56 = vrot.slane %v384_v40, 7 }
 0x11f   :  { %v370_v21 = vsel %vm172_vm1, %v368_v42, %v365_v41  ;;  %v389_v6 = vsel %vm172_vm1, %v387_v56, %v384_v40  ;;  %v448_v41 = vmul.f32 %v447_v35, %v2823_v3 }
 0x120   :  { %v374_v49 = vadd.f32 %v370_v21, %v324_v45  ;;  %v393_v12 = vadd.f32 %v389_v6, %v343_v8  ;;  %v494_v21 = vrot.slane %v3042_v44, 7 }
 0x122   :  { %v278_v54 = vld [vmem:[#allocation1] sm:$0xff]  ;;  %v279_v55 = vld [vmem:[#allocation1 + $0x9] sm:$0xff]  ;;  %v280_v63 = vld [vmem:[#allocation1 + $0x12] sm:$0xff] }
 0x123   :  { %399 = vst [vmem:[#allocation1 + $0x1] ss:$9 sm:$0xff] %v375_v53  ;;  %285 = vrot.lane.b32.xlu0 %v280_v63, %s2781_s9  ;;  %281 = vrot.lane.b32.xlu2 %v278_v54, %s2781_s9  ;;  %v496_v53 = vsel %vm211_vm0, %v494_v21, %v3042_v44 }
 0x124   :  { %397 = vst [vmem:[#allocation1] ss:$9 sm:$0xff] %v374_v49  ;;  %v473_v59 = vpop.permute.xlu1 %472  ;;  %v471_v60 = vpop.permute.xlu0 %470  ;;  %v500_v44 = vadd.f32 %v496_v53, %v449_v43 }
 0x125   :  { %v3058_v2 = vpop.permute.xlu2 %763  ;;  %v475_v7 = vrot.slane %v473_v59, 7  ;;  %v474_v10 = vrot.slane %v471_v60, 7 }
 0x127   :  { %v477_v24 = vsel %vm211_vm0, %v475_v7, %v473_v59  ;;  %v476_v23 = vsel %vm211_vm0, %v474_v10, %v471_v60  ;;  %v745_v59 = vstv %s3089_s14  ;;  %v765_v60 = vrot.slane %v2984_v36, 1 }
 0x128   :  { %v481_v13 = vadd.f32 %v477_v24, %v444_v0  ;;  %v480_v29 = vadd.f32 %v476_v23, %v443_v22  ;;  %v747_v5 = vmul.f32 %v745_v59, %v2863_v20  ;;  %v746_v9 = vmul.f32 %v745_v59, %v2856_v19 }
 0x129   :  { %v767_v10 = vsel %vm172_vm1, %v2984_v36, %v765_v60  ;;  %v751_v24 = vstv %s3106_s16  ;;  %v891_v60 = vstv %s3151_s19  ;;  %s2553_s19 = sld [smem:[#allocation8 + $0x25]] }
 0x12a   :  { %v530_v37 = vadd.f32 %v526_v31, %v480_v29  ;;  %v753_v22 = vmul.f32 %v751_v24, %v2863_v20  ;;  %v752_v31 = vmul.f32 %v751_v24, %v2856_v19 }
 0x12b   :  { %v400_v15 = vld [vmem:[#allocation1] sm:$0xff]  ;;  %v401_v16 = vld [vmem:[#allocation1 + $0x9] sm:$0xff]  ;;  %v402_v17 = vld [vmem:[#allocation1 + $0x12] sm:$0xff]  ;;  %283 = vrot.lane.b32.xlu2 %v279_v55, %s2781_s9  ;;  %v766_v55 = vrot.slane %v3058_v2, 1 }
 0x12c   :  { %420 = vst [vmem:[#allocation1] ss:$9 sm:$0xff] %v393_v12  ;;  %407 = vrot.lane.b32.xlu0 %v402_v17, %s2782_s13  ;;  %403 = vrot.lane.b32.xlu1 %v400_v15, %s2782_s13  ;;  %v490_v25 = vpop.permute.xlu1 %489  ;;  %v523_v26 = vpop.permute.xlu0 %522  ;;  %v771_v17 = vadd.f32 %v767_v10, %v746_v9  ;;  %v892_v9 = vmul.f32 %v891_v60, %v2856_v19 }
 0x12d   :  { %422 = vst [vmem:[#allocation1 + $0x1] ss:$9 sm:$0xff] %v394_v14  ;;  %v525_v27 = vrot.slane %v523_v26, 7  ;;  %v3076_v28 = vpop.permute.xlu2 %780  ;;  %v493_v33 = vrot.slane %v490_v25, 7  ;;  %v768_v7 = vsel %vm172_vm1, %v3058_v2, %v766_v55 }
 0x12e   :  { %v772_v11 = vadd.f32 %v768_v7, %v747_v5  ;;  %v784_v36 = vrot.slane %v3076_v28, 1 }
 0x12f   :  { %v527_v30 = vsel %vm211_vm0, %v525_v27, %v523_v26  ;;  %v495_v46 = vsel %vm211_vm0, %v493_v33, %v490_v25 }
 0x130   :  { %v531_v34 = vadd.f32 %v527_v30, %v481_v13  ;;  %v499_v3 = vadd.f32 %v495_v46, %v448_v41  ;;  %v786_v33 = vsel %vm172_vm1, %v3076_v28, %v784_v36 }
 0x133   :  { %405 = vrot.lane.b32.xlu2 %v401_v16, %s2782_s13 }
 0x134   :  { %v423_v38 = vld [vmem:[#allocation1] sm:$0xff]  ;;  %v424_v39 = vld [vmem:[#allocation1 + $0x9] sm:$0xff]  ;;  %v425_v40 = vld [vmem:[#allocation1 + $0x12] sm:$0xff]  ;;  %v783_v42 = vpop.permute.xlu1 %782  ;;  %v540_v45 = vpop.permute.xlu0 %539 }
 0x135   :  { %553 = vst [vmem:[#allocation1] ss:$9 sm:$0xff] %v530_v37  ;;  %430 = vrot.lane.b32.xlu0 %v425_v40, %s2782_s13  ;;  %428 = vrot.lane.b32.xlu1 %v424_v39, %s2782_s13  ;;  %v543_v18 = vrot.slane %v540_v45, 7  ;;  %v3087_v47 = vpop.permute.xlu2 %834  ;;  %v785_v12 = vrot.slane %v783_v42, 1  ;;  %v886_v40 = vstv %s3128_s18 }
 0x136   :  { %555 = vst [vmem:[#allocation1 + $0x1] ss:$9 sm:$0xff] %v531_v34  ;;  %v837_v25 = vrot.slane %v3087_v47, 7 }
 0x137   :  { %v545_v49 = vsel %vm211_vm0, %v543_v18, %v540_v45  ;;  %v787_v23 = vsel %vm172_vm1, %v783_v42, %v785_v12  ;;  %v790_v45 = vadd.f32 %v786_v33, %v752_v31 }
 0x138   :  { %v549_v50 = vadd.f32 %v545_v49, %v499_v3  ;;  %v791_v34 = vadd.f32 %v787_v23, %v753_v22  ;;  %v839_v37 = vsel %vm4026_vm3, %v837_v25, %v3087_v47  ;;  %v887_v47 = vmul.f32 %v886_v40, %v2856_v19 }
 0x139   :  { %v888_v3 = vmul.f32 %v886_v40, %v2863_v20  ;;  %v1032_v25 = vstv %s3170_s20  ;;  %s2554_s20 = sld [smem:[#allocation8 + $0x2e]] }
 0x13a   :  { %v843_v46 = vadd.f32 %v839_v37, %v791_v34  ;;  %v1033_v31 = vmul.f32 %v1032_v25, %v2856_v19 }
 0x13b   :  { %426 = vrot.lane.b32.xlu2 %v423_v38, %s2782_s13 }
 0x13c   :  { %v542_v48 = vpop.permute.xlu1 %541  ;;  %v814_v54 = vpop.permute.xlu0 %813 }
 0x13d   :  { %v556_v63 = vld [vmem:[#allocation1] sm:$0xff]  ;;  %v557_v56 = vld [vmem:[#allocation1 + $0x9] sm:$0xff]  ;;  %v3100_v57 = vld [vmem:[#allocation1 + $0x12] sm:$0xff]  ;;  %1523 = vrot.lane.b32.xlu0 %v2996_v51, %s2777_s1  ;;  %v544_v4 = vrot.slane %v542_v48, 7  ;;  %v3104_v58 = vpop.permute.xlu2 %955  ;;  %v817_v8 = vrot.slane %v814_v54, 7 }
 0x13e   :  { %576 = vst [vmem:[#allocation1] ss:$9 sm:$0xff] %v549_v50  ;;  %559 = vrot.lane.b32.xlu1 %v556_v63, %s2783_s17  ;;  %v959_v21 = vrot.slane %v3104_v58, 7 }
 0x13f   :  { %v546_v61 = vsel %vm211_vm0, %v544_v4, %v542_v48  ;;  %v819_v15 = vsel %vm4026_vm3, %v817_v8, %v814_v54 }
 0x140   :  { %v550_v6 = vadd.f32 %v546_v61, %v500_v44  ;;  %v823_v26 = vadd.f32 %v819_v15, %v771_v17  ;;  %v961_v4 = vsel %vm172_vm1, %v959_v21, %v3104_v58  ;;  %v893_v58 = vmul.f32 %v891_v60, %v2863_v20 }
 0x142   :  { %578 = vst [vmem:[#allocation1 + $0x1] ss:$9 sm:$0xff] %v550_v6 }
 0x143   :  { %561 = vrot.lane.b32.xlu2 %v557_v56, %s2783_s17 }
 0x144   :  { %v816_v0 = vpop.permute.xlu1 %815  ;;  %v833_v14 = vpop.permute.xlu0 %832 }
 0x145   :  { %1625 = vrot.lane.b32.xlu0 %v2998_v52, %s2779_s3  ;;  %v818_v2 = vrot.slane %v816_v0, 7  ;;  %v3126_v16 = vpop.permute.xlu2 %926  ;;  %v836_v35 = vrot.slane %v833_v14, 7 }
 0x146   :  { %1345 = vrot.lane.b32.xlu1 %v1340_v32, %s2777_s1  ;;  %v929_v5 = vrot.slane %v3126_v16, 7 }
 0x147   :  { %v820_v62 = vsel %vm4026_vm3, %v818_v2, %v816_v0  ;;  %v838_v18 = vsel %vm4026_vm3, %v836_v35, %v833_v14  ;;  %v1034_v35 = vmul.f32 %v1032_v25, %v2863_v20  ;;  %v1376_v25 = vstv %s2551_s23  ;;  %s642_s23 = sld [smem:[#allocation10]] }
 0x148   :  { %v824_v27 = vadd.f32 %v820_v62, %v772_v11  ;;  %v842_v48 = vadd.f32 %v838_v18, %v790_v45  ;;  %v931_v14 = vsel %vm172_vm1, %v929_v5, %v3126_v16 }
 0x149   :  { %v3137_v13 = vld [vmem:[#allocation1] sm:$0xff]  ;;  %v580_v29 = vld [vmem:[#allocation1 + $0x9] sm:$0xff]  ;;  %v581_v30 = vld [vmem:[#allocation1 + $0x12] sm:$0xff]  ;;  %v935_v22 = vadd.f32 %v931_v14, %v893_v58 }
 0x14a   :  { %846 = vst [vmem:[#allocation1] ss:$9 sm:$0xff] %v823_v26 }
 0x14b   :  { %848 = vst [vmem:[#allocation1 + $0x1] ss:$9 sm:$0xff] %v824_v27  ;;  %1521 = vrot.lane.b32.xlu2 %v2998_v52, %s2777_s1 }
 0x14c   :  { %v906_v38 = vpop.permute.xlu1 %905  ;;  %v908_v39 = vpop.permute.xlu0 %907 }
 0x14d   :  { %1627 = vrot.lane.b32.xlu0 %v2996_v51, %s2779_s3  ;;  %v909_v41 = vrot.slane %v906_v38, 7  ;;  %v3149_v42 = vpop.permute.xlu2 %1059  ;;  %v910_v28 = vrot.slane %v908_v39, 7 }
 0x14e   :  { %586 = vrot.lane.b32.xlu1 %v581_v30, %s2783_s17  ;;  %v1063_v16 = vrot.slane %v3149_v42, 7 }
 0x14f   :  { %v911_v49 = vsel %vm172_vm1, %v909_v41, %v906_v38  ;;  %v912_v54 = vsel %vm172_vm1, %v910_v28, %v908_v39 }
 0x150   :  { %v915_v55 = vadd.f32 %v911_v49, %v887_v47  ;;  %v916_v44 = vadd.f32 %v912_v54, %v888_v3  ;;  %v1065_v40 = vsel %vm211_vm0, %v1063_v16, %v3149_v42  ;;  %v1037_v49 = vstv %s3191_s21  ;;  %s3565_s21 = sld [smem:[#allocation8 + $0x26]] }
 0x152   :  { %v849_v43 = vld [vmem:[#allocation1] sm:$0xff]  ;;  %v850_v50 = vld [vmem:[#allocation1 + $0x9] sm:$0xff]  ;;  %v3159_v53 = vld [vmem:[#allocation1 + $0x12] sm:$0xff]  ;;  %v965_v8 = vadd.f32 %v961_v4, %v915_v55 }
 0x153   :  { %868 = vst [vmem:[#allocation1 + $0x1] ss:$9 sm:$0xff] %v843_v46  ;;  %584 = vrot.lane.b32.xlu2 %v580_v29, %s2783_s17  ;;  %v1339_v29 = vmul.f32 %v1338_v1, %v2998_v52  ;;  %v1069_v46 = vadd.f32 %v1065_v40, %v1033_v31  ;;  %v1357_v40 = vstv %s3249_s24 }
 0x154   :  { %866 = vst [vmem:[#allocation1] ss:$9 sm:$0xff] %v842_v48  ;;  %v925_v63 = vpop.permute.xlu0 %924  ;;  %v958_v56 = vpop.permute.xlu1 %957  ;;  %v1039_v48 = vmul.f32 %v1037_v49, %v2863_v20 }
 0x155   :  { %1675 = vrot.lane.b32.xlu0 %v2998_v52, %s2780_s10  ;;  %v960_v59 = vrot.slane %v958_v56, 7  ;;  %v928_v61 = vrot.slane %v925_v63, 7  ;;  %v1112_v7 = vpop.permute.xlu2 %1111 }
 0x156   :  { %v1114_v19 = vrot.slane %v1112_v7, 7 }
 0x157   :  { %v962_v6 = vsel %vm172_vm1, %v960_v59, %v958_v56  ;;  %v930_v10 = vsel %vm172_vm1, %v928_v61, %v925_v63 }
 0x158   :  { %v966_v32 = vadd.f32 %v962_v6, %v916_v44  ;;  %v934_v17 = vadd.f32 %v930_v10, %v892_v9  ;;  %v1116_v47 = vsel %vm211_vm0, %v1114_v19, %v1112_v7 }
 0x15b   :  { %v3175_v11 = vld [vmem:[#allocation1] sm:$0xff]  ;;  %v3177_v12 = vld [vmem:[#allocation1 + $0x9] sm:$0xff]  ;;  %v871_v0 = vld [vmem:[#allocation1 + $0x12] sm:$0xff]  ;;  %852 = vrot.lane.b32.xlu2 %v849_v43, %s2781_s9 }
 0x15c   :  { %988 = vst [vmem:[#allocation1] ss:$9 sm:$0xff] %v965_v8  ;;  %v977_v15 = vpop.permute.xlu0 %976  ;;  %v975_v2 = vpop.permute.xlu1 %974 }
 0x15d   :  { %990 = vst [vmem:[#allocation1 + $0x1] ss:$9 sm:$0xff] %v966_v32  ;;  %1677 = vrot.lane.b32.xlu0 %v2996_v51, %s2780_s10  ;;  %v979_v24 = vrot.slane %v977_v15, 7  ;;  %v978_v36 = vrot.slane %v975_v2, 7  ;;  %v1079_v27 = vpop.permute.xlu2 %1078 }
 0x15e   :  { %v1082_v43 = vrot.slane %v1079_v27, 7 }
 0x15f   :  { %v981_v62 = vsel %vm172_vm1, %v979_v24, %v977_v15  ;;  %v980_v23 = vsel %vm172_vm1, %v978_v36, %v975_v2 }
 0x160   :  { %v984_v26 = vadd.f32 %v980_v23, %v934_v17  ;;  %v985_v30 = vadd.f32 %v981_v62, %v935_v22  ;;  %v1084_v61 = vsel %vm211_vm0, %v1082_v43, %v1079_v27  ;;  %v1409_v17 = vstv %s3214_s22  ;;  %s640_s22 = sld [smem:[#allocation9]] }
 0x163   :  { %854 = vrot.lane.b32.xlu2 %v850_v50, %s2781_s9 }
 0x164   :  { %v993_v33 = vld [vmem:[#allocation1 + $0x12] sm:$0xff]  ;;  %v3195_v34 = vld [vmem:[#allocation1 + $0x9] sm:$0xff]  ;;  %v1062_v37 = vpop.permute.xlu1 %1061  ;;  %v1110_v38 = vpop.permute.xlu0 %1109  ;;  %v991_v39 = vld [vmem:[#allocation1] sm:$0xff] }
 0x165   :  { %1343 = vrot.lane.b32.xlu0 %v1339_v29, %s2777_s1  ;;  %998 = vrot.lane.b32.xlu1 %v993_v33, %s2782_s13  ;;  %v1064_v1 = vrot.slane %v1062_v37, 7  ;;  %v1113_v41 = vrot.slane %v1110_v38, 7  ;;  %1010 = vst [vmem:[#allocation1] ss:$9 sm:$0xff] %v984_v26  ;;  %v1131_v3 = vpop.permute.xlu2 %1130 }
 0x166   :  { %1012 = vst [vmem:[#allocation1 + $0x1] ss:$9 sm:$0xff] %v985_v30  ;;  %v1133_v60 = vrot.slane %v1131_v3, 7 }
 0x167   :  { %v1066_v45 = vsel %vm211_vm0, %v1064_v1, %v1062_v37  ;;  %v1115_v28 = vsel %vm211_vm0, %v1113_v41, %v1110_v38 }
 0x168   :  { %v1070_v18 = vadd.f32 %v1066_v45, %v1034_v35  ;;  %v1119_v21 = vadd.f32 %v1115_v28, %v1069_v46  ;;  %v1135_v7 = vsel %vm211_vm0, %v1133_v60, %v1131_v3  ;;  %v1358_v45 = vmul.f32 %v1357_v40, %v2998_v52 }
 0x16a   :  { %v1120_v42 = vadd.f32 %v1116_v47, %v1070_v18 }
 0x16b   :  { %856 = vrot.lane.b32.xlu2 %v3159_v53, %s2781_s9  ;;  %v2671_v53 = vld [vmem:[#allocation2 + $0x1] ss:$4 sm:$0xf] }
 0x16c   :  { %v1129_v50 = vpop.permute.xlu1 %1128  ;;  %v1081_v54 = vpop.permute.xlu0 %1080  ;;  %v1038_v59 = vmul.f32 %v2671_v53, %v1037_v49 }
 0x16d   :  { %563 = vrot.lane.b32.xlu0 %v3100_v57, %s2783_s17  ;;  %876 = vrot.lane.b32.xlu1 %v871_v0, %s2781_s9  ;;  %v1083_v55 = vrot.slane %v1081_v54, 7  ;;  %v1015_v63 = vld [vmem:[#allocation1 + $0x12] sm:$0xff]  ;;  %v1013_v56 = vld [vmem:[#allocation1] sm:$0xff]  ;;  %v3212_v4 = vld [vmem:[#allocation1 + $0x9] sm:$0xff]  ;;  %v1132_v44 = vrot.slane %v1129_v50, 7 }
 0x16e   :  { %1142 = vst [vmem:[#allocation1] ss:$9 sm:$0xff] %v1119_v21  ;;  %v1088_v6 = vadd.f32 %v1084_v61, %v1038_v59 }
 0x16f   :  { %v1085_v20 = vsel %vm211_vm0, %v1083_v55, %v1081_v54  ;;  %1144 = vst [vmem:[#allocation1 + $0x1] ss:$9 sm:$0xff] %v1120_v42  ;;  %v1134_v5 = vsel %vm211_vm0, %v1132_v44, %v1129_v50  ;;  %v1520_v55 = vstv %s2557_s25 }
 0x170   :  { %v1089_v57 = vadd.f32 %v1085_v20, %v1039_v48  ;;  %v1138_v32 = vadd.f32 %v1134_v5, %v1088_v6 }
 0x172   :  { %v1139_v8 = vadd.f32 %v1135_v7, %v1089_v57 }
 0x173   :  { %994 = vrot.lane.b32.xlu2 %v991_v39, %s2782_s13 }
 0x174   :  { %v3221_v9 = vpop.permute.xlu2 %262  ;;  %v1380_v58 = vpop.permute.xlu0 %1379 }
 0x175   :  { %582 = vrot.lane.b32.xlu0 %v3137_v13, %s2783_s17  ;;  %1020 = vrot.lane.b32.xlu1 %v1015_v63, %s2782_s13  ;;  %v1383_v15 = vrot.slane %v1380_v58, 1  ;;  %v1385_v2 = vrot.slane %v1380_v58, 2  ;;  %v1382_v24 = vpop.permute.xlu1 %1381  ;;  %v1480_v58 = vrot.slane %v2996_v51, 1 }
 0x176   :  { %v1145_v10 = vld [vmem:[#allocation1] sm:$0xff]  ;;  %v1146_v0 = vld [vmem:[#allocation1 + $0x9] sm:$0xff]  ;;  %v1147_v14 = vld [vmem:[#allocation1 + $0x12] sm:$0xff]  ;;  %v1384_v62 = vrot.slane %v1382_v24, 1  ;;  %v1386_v23 = vrot.slane %v1382_v24, 2 }
 0x177   :  { %1164 = vst [vmem:[#allocation1] ss:$9 sm:$0xff] %v1138_v32  ;;  %v1387_v36 = vsel %vm211_vm0, %v1383_v15, %v1385_v2 }
 0x178   :  { %1166 = vst [vmem:[#allocation1 + $0x1] ss:$9 sm:$0xff] %v1139_v8  ;;  %v3228_v22 = vmul.f32 %v1409_v17, %v1387_v36  ;;  %v1388_v16 = vsel %vm211_vm0, %v1384_v62, %v1386_v23  ;;  %v1391_v33 = vmul.f32 %v1387_v36, %v1376_v25  ;;  %v1655_v8 = vstv %s3294_s26 }
 0x179   :  { %v1392_v27 = vmul.f32 %v1388_v16, %v1376_v25  ;;  %v1411_v54 = vmul.f32 %v1409_v17, %v1388_v16  ;;  %v1624_v36 = vstv %s2561_s28 }
 0x17b   :  { %996 = vrot.lane.b32.xlu2 %v3195_v34, %s2782_s13  ;;  %v83_v34 = vlaneseq }
 0x17d   :  { %1148 = vrot.lane.b32.xlu0 %v1145_v10, %s2783_s17  ;;  %v3233_v13 = vpop.permute.xlu2 %281 }
 0x17f   :  { %v1167_v26 = vld [vmem:[#allocation1] sm:$0xff]  ;;  %v1168_v43 = vld [vmem:[#allocation1 + $0x9] sm:$0xff] }
 0x180   :  { %1170 = vrot.lane.b32.xlu1 %v1167_v26, %s2783_s17 }
 0x183   :  { %1150 = vrot.lane.b32.xlu2 %v1146_v0, %s2783_s17  ;;  %v1501_v0 = vstv %s3306_s27 }
 0x184   :  { %v1503_v2 = vmul.f32 %v1501_v0, %v1480_v58 }
 0x185   :  { %1397 = vrot.lane.b32.xlu0 %v1392_v27, %s2780_s10  ;;  %v3239_v29 = vpop.permute.xlu2 %283 }
 0x18b   :  { %1152 = vrot.lane.b32.xlu2 %v1147_v14, %s2783_s17 }
 0x18c   :  { %v3242_v30 = vpop.permute.xlu0 %264 }
 0x18d   :  { %872 = vrot.lane.b32.xlu0 %v3175_v11, %s2781_s9  ;;  %v3246_v31 = vpop.permute.xlu2 %405  ;;  %v3255_v38 = vpop.permute.xlu1 %260  ;;  %v3258_v11 = vand.u32 127, %v83_v34 }
 0x18f   :  { %v3261_v39 = vadd.s32 128, %v3258_v11 }
 0x193   :  { %1395 = vrot.lane.b32.xlu2 %v1391_v33, %s2780_s10  ;;  %v1674_v33 = vstv %s2563_s0 }
 0x195   :  { %874 = vrot.lane.b32.xlu0 %v3177_v12, %s2781_s9  ;;  %v286_v35 = vpop.permute.xlu0 %285  ;;  %v3253_v37 = vpop.permute.xlu2 %426  ;;  %v97_v12 = vand.u32 15, %v3261_v39 }
 0x196   :  { %v288_v46 = vsel %vm266_vm4, %v3239_v29, %v286_v35  ;;  %v1705_v35 = vstv %s3326_s29 }
 0x197   :  { %v3277_v28 = vadd.s32 4294967295, %v97_v12 }
 0x199   :  { %vm113_vm5 = vcmp.ge.s32.totalorder %v3277_v28, 0 }
 0x19a   :  { %v292_v49 = vsel %vm113_vm5, %v288_v46, 0.0 }
 0x19b   :  { %1016 = vrot.lane.b32.xlu2 %v1013_v56, %s2782_s13 }
 0x19d   :  { %v3265_v1 = vpop.permute.xlu2 %561 }
 0x19e   :  { %v3267_v41 = vpop.permute.xlu0 %407  ;;  %v3269_v19 = vpop.permute.xlu1 %403 }
 0x1a3   :  { %1362 = vrot.lane.b32.xlu2 %v1358_v45, %s2777_s1 }
 0x1a5   :  { %v1522_v18 = vpop.permute.xlu2 %1521 }
 0x1a6   :  { %v1525_v63 = vrot.slane %v1522_v18, 1  ;;  %v1527_v56 = vrot.slane %v1522_v18, 2 }
 0x1a7   :  { %v431_v47 = vpop.permute.xlu0 %430  ;;  %v3283_v21 = vpop.permute.xlu1 %428 }
 0x1a8   :  { %v433_v42 = vsel %vm409_vm6, %v3283_v21, %v431_v47  ;;  %v3304_v20 = vsel %vm172_vm1, %v1525_v63, %v1527_v56 }
 0x1a9   :  { %v3289_v3 = vadd.f32 %v433_v42, %v292_v49  ;;  %v1533_v5 = vmul.f32 %v3304_v20, %v1520_v55 }
 0x1ab   :  { %1172 = vrot.lane.b32.xlu2 %v1168_v43, %s2783_s17 }
 0x1ad   :  { %v3292_v50 = vpop.permute.xlu2 %584 }
 0x1af   :  { %v1524_v48 = vpop.permute.xlu0 %1523 }
 0x1b0   :  { %v1526_v44 = vrot.slane %v1524_v48, 1  ;;  %v1528_v53 = vrot.slane %v1524_v48, 2  ;;  %v560_v42 = vpop.permute.xlu1 %559 }
 0x1b2   :  { %v3297_v59 = vsel %vm172_vm1, %v1526_v44, %v1528_v53 }
 0x1b3   :  { %1416 = vrot.lane.b32.xlu2 %v1411_v54, %s2780_s10  ;;  %v3301_v60 = vmul.f32 %v3297_v59, %v1520_v55  ;;  %v90_v55 = vand.u32 15, %v3258_v11  ;;  %v566_v11 = vsel %vm565_vm7, %v560_v42, %v3265_v1 }
 0x1b5   :  { %v3308_v61 = vpop.permute.xlu2 %852  ;;  %v3351_v44 = vadd.s32 1, %v90_v55 }
 0x1b7   :  { %v1626_v57 = vpop.permute.xlu0 %1625  ;;  %vm136_vm8 = vcmp.lt.s32.totalorder %v3351_v44, 16 }
 0x1b8   :  { %v1629_v6 = vrot.slane %v1626_v57, 1  ;;  %v1631_v7 = vrot.slane %v1626_v57, 2  ;;  %v3354_v57 = vadd.s32 4294967295, %v90_v55 }
 0x1ba   :  { %v1633_v32 = vsel %vm4027_vm2, %v1629_v6, %v1631_v7  ;;  %v267_v6 = vsel %vm266_vm4, %v3255_v38, %v3221_v9  ;;  %v410_v7 = vsel %vm409_vm6, %v3269_v19, %v3246_v31  ;;  %vm112_vm9 = vcmp.ge.s32.totalorder %v3354_v57, 0 }
 0x1bb   :  { %1537 = vrot.lane.b32.xlu2 %v1533_v5, %s2777_s1  ;;  %v3317_v10 = vmul.f32 %v1655_v8, %v1633_v32  ;;  %v1637_v45 = vmul.f32 %v1633_v32, %v1624_v36  ;;  %v1346_v32 = vpop.permute.xlu1 %1345  ;;  %v268_v38 = vsel %vm266_vm4, %v3221_v9, %v3242_v30  ;;  %v411_v19 = vsel %vm409_vm6, %v3246_v31, %v3267_v41 }
 0x1bd   :  { %v3320_v14 = vpop.permute.xlu2 %854 }
 0x1bf   :  { %v1628_v15 = vpop.permute.xlu0 %1627 }
 0x1c0   :  { %v1630_v17 = vrot.slane %v1628_v15, 1  ;;  %v1632_v24 = vrot.slane %v1628_v15, 2  ;;  %v271_v15 = vsel %vm112_vm9, %v267_v6, 0.0 }
 0x1c2   :  { %v3329_v62 = vsel %vm4027_vm2, %v1630_v17, %v1632_v24  ;;  %v416_v17 = vadd.f32 %v410_v7, %v271_v15  ;;  %v3375_v24 = vadd.s32 1, %v97_v12  ;;  %v858_v15 = vsel %vm266_vm4, %v3308_v61, %v3320_v14 }
 0x1c3   :  { %1508 = vrot.lane.b32.xlu2 %v1503_v2, %s2777_s1  ;;  %v3333_v23 = vmul.f32 %v3329_v62, %v1624_v36  ;;  %v570_v2 = vsel %vm136_vm8, %v566_v11, 0.0  ;;  %v3395_v41 = vpop.permute.xlu1 %586 }
 0x1c4   :  { %vm137_vm10 = vcmp.lt.s32.totalorder %v3375_v24, 16 }
 0x1c5   :  { %v3335_v25 = vpop.permute.xlu2 %856 }
 0x1c7   :  { %v1676_v16 = vpop.permute.xlu0 %1675 }
 0x1c8   :  { %v1679_v26 = vrot.slane %v1676_v16, 1  ;;  %v1681_v27 = vrot.slane %v1676_v16, 2  ;;  %v3380_v16 = vadd.f32 %v570_v2, %v416_v17  ;;  %v859_v2 = vsel %vm266_vm4, %v3320_v14, %v3335_v25 }
 0x1c9   :  { %v863_v61 = vsel %vm113_vm5, %v859_v2, 0.0 }
 0x1ca   :  { %v1683_v46 = vsel %vm4026_vm3, %v1679_v26, %v1681_v27  ;;  %v272_v26 = vsel %vm113_vm5, %v268_v38, 0.0  ;;  %v609_v39 = vmul.f32 %v3380_v16, %v3380_v16  ;;  %v597_v12 = vsel %vm596_vm11, %v3380_v16, 0.0 }
 0x1cb   :  { %1641 = vrot.lane.b32.xlu2 %v1637_v45, %s2778_s2  ;;  %v3340_v18 = vmul.f32 %v1683_v46, %v1674_v33  ;;  %v3344_v47 = vmul.f32 %v1705_v35, %v1683_v46 }
 0x1cd   :  { %v995_v49 = vpop.permute.xlu2 %994 }
 0x1cf   :  { %v1678_v43 = vpop.permute.xlu0 %1677 }
 0x1d0   :  { %v1680_v48 = vrot.slane %v1678_v43, 1  ;;  %v1682_v54 = vrot.slane %v1678_v43, 2  ;;  %v611_v43 = vsel %vm596_vm11, %v609_v39, 0.0 }
 0x1d2   :  { %v3348_v63 = vsel %vm4026_vm3, %v1680_v48, %v1682_v54 }
 0x1d3   :  { %v1688_v56 = vmul.f32 %v3348_v63, %v1674_v33  ;;  %v417_v33 = vadd.f32 %v411_v19, %v272_v26 }
 0x1d5   :  { %1693 = vrot.lane.b32.xlu2 %v1688_v56, %s2778_s2  ;;  %v997_v53 = vpop.permute.xlu2 %996  ;;  %v1327_v56 = vstv %s3384_s30 }
 0x1d6   :  { %v1328_v11 = vmul.f32 %v1327_v56, %v2998_v52  ;;  %v1000_v17 = vsel %vm409_vm6, %v995_v49, %v997_v53  ;;  %v1348_v52 = vrot.slane %v1346_v32, 1 }
 0x1d7   :  { %v1344_v5 = vpop.permute.xlu0 %1343  ;;  %v999_v7 = vpop.permute.xlu1 %998 }
 0x1d8   :  { %v1347_v6 = vrot.slane %v1344_v5, 1 }
 0x1da   :  { %v1349_v38 = vsel %vm172_vm1, %v1344_v5, %v1347_v6 }
 0x1dd   :  { %v1151_v36 = vpop.permute.xlu2 %1150 }
 0x1df   :  { %v564_v27 = vpop.permute.xlu0 %563 }
 0x1e0   :  { %v567_v9 = vsel %vm565_vm7, %v3265_v1, %v564_v27  ;;  %v1001_v27 = vsel %vm409_vm6, %v997_v53, %v999_v7 }
 0x1e1   :  { %v571_v30 = vsel %vm137_vm10, %v567_v9, 0.0  ;;  %v862_v9 = vsel %vm112_vm9, %v858_v15, 0.0 }
 0x1e2   :  { %v3391_v31 = vadd.f32 %v571_v30, %v417_v33  ;;  %v1353_v30 = vadd.f32 %v1349_v38, %v1328_v11  ;;  %v1006_v14 = vadd.f32 %v1000_v17, %v862_v9  ;;  %v3442_v17 = vld [vmem:[#allocation2 + $0x12] ss:$4 sm:$0xf] }
 0x1e4   :  { %v598_v45 = vsel %vm596_vm11, %v3391_v31, 0.0  ;;  %v610_v1 = vmul.f32 %v3391_v31, %v3391_v31 }
 0x1e5   :  { %v1153_v46 = vpop.permute.xlu2 %1152  ;;  %v599_v42 = vadd.f32 %v598_v45, %v597_v12  ;;  %v1007_v12 = vadd.f32 %v1001_v27, %v863_v61 }
 0x1e6   :  { %v612_v48 = vsel %vm596_vm11, %v610_v1, 0.0  ;;  %v1155_v19 = vsel %vm565_vm7, %v1151_v36, %v1153_v46  ;;  %v1169_v46 = vld [vmem:[#allocation1 + $0x12] sm:$0xff] }
 0x1e7   :  { %v583_v54 = vpop.permute.xlu0 %582  ;;  %600 = vadd.xlane.f32.xlu0 %v599_v42  ;;  %v613_v55 = vadd.f32 %v612_v48, %v611_v43  ;;  %v1159_v25 = vsel %vm137_vm10, %v1155_v19, 0.0  ;;  %v1329_v42 = vmul.f32 %v1327_v56, %v2996_v51  ;;  %v1350_v48 = vsel %vm172_vm1, %v1346_v32, %v1348_v52 }
 0x1e8   :  { %v3430_v43 = vadd.f32 %v1159_v25, %v1007_v12  ;;  %v1359_v19 = vmul.f32 %v3442_v17, %v1357_v40  ;;  %v588_v27 = vsel %vm565_vm7, %v583_v54, %v3292_v50  ;;  %v432_v40 = vsel %vm409_vm6, %v3253_v37, %v3283_v21  ;;  %v3488_v12 = vld [vmem:[#allocation2 + $0x2] ss:$4 sm:$0xf] }
 0x1e9   :  { %614 = vadd.xlane.f32.xlu1 %v613_v55 }
 0x1ea   :  { %v1197_v11 = vmul.f32 %v3430_v43, %v3430_v43 }
 0x1ec   :  { %v1199_v38 = vsel %vm596_vm11, %v1197_v11, 0.0 }
 0x1ed   :  { %v1396_v26 = vpop.permute.xlu2 %1395 }
 0x1ee   :  { %v1399_v33 = vrot.slane %v1396_v26, 7 }
 0x1ef   :  { %v1149_v39 = vpop.permute.xlu0 %1148 }
 0x1f0   :  { %v1401_v49 = vsel %vm4026_vm3, %v1399_v33, %v1396_v26  ;;  %v1154_v5 = vsel %vm565_vm7, %v1149_v39, %v1151_v36  ;;  %v1354_v36 = vadd.f32 %v1350_v48, %v1329_v42 }
 0x1f1   :  { %v1405_v53 = vadd.f32 %v1401_v49, %v1353_v30  ;;  %v1158_v45 = vsel %vm136_vm8, %v1154_v5, 0.0  ;;  %v1478_v49 = vstv %s2555_s5 }
 0x1f2   :  { %v3427_v1 = vadd.f32 %v1158_v45, %v1006_v14  ;;  %v1484_v5 = vmul.f32 %v1480_v58, %v1478_v49  ;;  %v877_v45 = vpop.permute.xlu1 %876 }
 0x1f3   :  { %1428 = vst [vmem:[#allocation1] ss:$9 sm:$0xff] %v1405_v53  ;;  %v1479_v53 = vrot.slane %v3488_v12, 1 }
 0x1f4   :  { %v1196_v55 = vmul.f32 %v3427_v1, %v3427_v1 }
 0x1f5   :  { %v1502_v48 = vmul.f32 %v1501_v0, %v1479_v53  ;;  %v1017_v11 = vpop.permute.xlu2 %1016 }
 0x1f6   :  { %v1198_v15 = vsel %vm596_vm11, %v1196_v55, 0.0 }
 0x1f7   :  { %v1398_v6 = vpop.permute.xlu0 %1397  ;;  %v1200_v32 = vadd.f32 %v1199_v38, %v1198_v15 }
 0x1f8   :  { %v1400_v7 = vrot.slane %v1398_v6, 7 }
 0x1fa   :  { %v1402_v2 = vsel %vm4026_vm3, %v1400_v7, %v1398_v6  ;;  %v1021_v55 = vpop.permute.xlu1 %1020 }
 0x1fb   :  { %v1406_v56 = vadd.f32 %v1402_v2, %v1354_v36  ;;  %1018 = vrot.lane.b32.xlu0 %v3212_v4, %s2782_s13  ;;  %v287_v4 = vsel %vm266_vm4, %v3233_v13, %v3239_v29  ;;  %v592_v13 = vsel %vm136_vm8, %v588_v27, 0.0  ;;  %v1551_v36 = vstv %s2558_s6 }
 0x1fc   :  { %v291_v52 = vsel %vm112_vm9, %v287_v4, 0.0  ;;  %v1553_v58 = vmul.f32 %v1551_v36, %v3297_v59  ;;  %v1552_v7 = vmul.f32 %v1551_v36, %v3304_v20 }
 0x1fd   :  { %1430 = vst [vmem:[#allocation1 + $0x1] ss:$9 sm:$0xff] %v1406_v56  ;;  %v438_v29 = vadd.f32 %v432_v40, %v291_v52  ;;  %v1333_v52 = vstv %s2548_s7 }
 0x1fe   :  { %1201 = vadd.xlane.f32.xlu2 %v1200_v32 }
 0x1ff   :  { %v3470_v9 = vadd.f32 %v592_v13, %v438_v29  ;;  %v873_v42 = vpop.permute.xlu0 %872 }
 0x201   :  { %v682_v30 = vmul.f32 %v3470_v9, %v3470_v9 }
 0x202   :  { %1414 = vrot.lane.b32.xlu1 %v3228_v22, %s2780_s10  ;;  %v589_v22 = vsel %vm565_vm7, %v3292_v50, %v3395_v41  ;;  %v670_v50 = vsel %vm596_vm11, %v3470_v9, 0.0  ;;  %v1171_v6 = vpop.permute.xlu1 %1170 }
 0x203   :  { %1364 = vrot.lane.b32.xlu0 %v1359_v19, %s2777_s1  ;;  %v593_v54 = vsel %vm137_vm10, %v589_v22, 0.0 }
 0x204   :  { %v1431_v26 = vld [vmem:[#allocation1] sm:$0xff]  ;;  %v1432_v33 = vld [vmem:[#allocation1 + $0x9] sm:$0xff]  ;;  %v3473_v37 = vadd.f32 %v593_v54, %v3289_v3  ;;  %v1433_v21 = vld [vmem:[#allocation1 + $0x12] sm:$0xff]  ;;  %v684_v3 = vsel %vm596_vm11, %v682_v30, 0.0  ;;  %v1334_v54 = vmul.f32 %v3488_v12, %v1333_v52  ;;  %v1335_v30 = vmul.f32 %v3442_v17, %v1333_v52 }
 0x206   :  { %v671_v41 = vsel %vm596_vm11, %v3473_v37, 0.0  ;;  %v683_v39 = vmul.f32 %v3473_v37, %v3473_v37 }
 0x207   :  { %v672_v61 = vadd.f32 %v671_v41, %v670_v50  ;;  %v875_v51 = vpop.permute.xlu0 %874 }
 0x208   :  { %v685_v14 = vsel %vm596_vm11, %v683_v39, 0.0 }
 0x209   :  { %v686_v25 = vadd.f32 %v685_v14, %v684_v3 }
 0x20b   :  { %1174 = vrot.lane.b32.xlu0 %v1169_v46, %s2783_s17  ;;  %v1483_v46 = vmul.f32 %v1479_v53, %v1478_v49 }
 0x216   :  { %1434 = vrot.lane.b32.xlu2 %v1431_v26, %s2781_s9  ;;  %v1363_v26 = vpop.permute.xlu2 %1362 }
 0x217   :  { %v1366_v13 = vrot.slane %v1363_v26, 1 }
 0x21e   :  { %1436 = vrot.lane.b32.xlu2 %v1432_v33, %s2781_s9  ;;  %v1173_v22 = vpop.permute.xlu2 %1172 }
 0x226   :  { %1438 = vrot.lane.b32.xlu2 %v1433_v21, %s2781_s9  ;;  %v1368_v21 = vsel %vm172_vm1, %v1363_v26, %v1366_v13 }
 0x227   :  { %v1372_v50 = vadd.f32 %v1368_v21, %v1334_v54 }
 0x22c   :  { %673 = vadd.xlane.f32.xlu1 %v672_v61 }
 0x235   :  { %687 = vadd.xlane.f32.xlu0 %v686_v25 }
 0x245   :  { %1489 = vrot.lane.b32.xlu1 %v1484_v5, %s2777_s1 }
 0x249   :  { %1487 = vrot.lane.b32.xlu0 %v1483_v46, %s2777_s1 }
 0x24d   :  { %1506 = vrot.lane.b32.xlu1 %v1502_v48, %s2777_s1  ;;  %v1184_v48 = vsel %vm596_vm11, %v3427_v1, 0.0 }
 0x251   :  { %1539 = vrot.lane.b32.xlu0 %v3301_v60, %s2777_s1 }
 0x255   :  { %1558 = vrot.lane.b32.xlu1 %v1553_v58, %s2777_s1  ;;  %v878_v58 = vsel %vm266_vm4, %v873_v42, %v875_v51 }
 0x259   :  { %1556 = vrot.lane.b32.xlu0 %v1552_v7, %s2777_s1  ;;  %v879_v7 = vsel %vm266_vm4, %v875_v51, %v877_v45  ;;  %v1176_v51 = vsel %vm565_vm7, %v1171_v6, %v1173_v22 }
 0x25a   :  { %v601_v15 = vpop.xlane.xlu0 %600  ;;  %v883_v42 = vsel %vm113_vm5, %v879_v7, 0.0 }
 0x25b   :  { %v602_v0 = vrot.slane %v601_v15, 4 }
 0x25c   :  { %v615_v2 = vpop.xlane.xlu1 %614 }
 0x25d   :  { %v603_v56 = vadd.f32 %v602_v0, %v601_v15  ;;  %v616_v38 = vrot.slane %v615_v2, 4  ;;  %v1185_v15 = vsel %vm596_vm11, %v3430_v43, 0.0 }
 0x25f   :  { %v604_v32 = vrot.slane %v603_v56, 2  ;;  %v617_v19 = vadd.f32 %v616_v38, %v615_v2  ;;  %v1186_v38 = vadd.f32 %v1185_v15, %v1184_v48 }
 0x261   :  { %v618_v60 = vrot.slane %v617_v19, 2  ;;  %1643 = vrot.lane.b32.xlu0 %v3333_v23, %s2778_s2  ;;  %v605_v59 = vadd.f32 %v604_v32, %v603_v56  ;;  %v1417_v23 = vpop.permute.xlu2 %1416 }
 0x262   :  { %v1419_v3 = vrot.slane %v1417_v23, 7 }
 0x263   :  { %v606_v4 = vrot.slane %v605_v59, 1  ;;  %v619_v27 = vadd.f32 %v618_v60, %v617_v19  ;;  %v882_v19 = vsel %vm112_vm9, %v878_v58, 0.0  ;;  %v1180_v60 = vsel %vm136_vm8, %v1176_v51, 0.0 }
 0x264   :  { %v1421_v46 = vsel %vm4026_vm3, %v1419_v3, %v1417_v23  ;;  %v1468_v58 = vstv %s2553_s19 }
 0x265   :  { %v607_v33 = vadd.f32 %v606_v4, %v605_v59  ;;  %v620_v20 = vrot.slane %v619_v27, 1  ;;  %v1469_v7 = vmul.f32 %v3488_v12, %v1468_v58 }
 0x267   :  { %2591 = vpush %v607_v33  ;;  %v621_v40 = vadd.f32 %v620_v20, %v619_v27 }
 0x269   :  { %2593 = vpush %v621_v40 }
 0x26d   :  { %v1019_v29 = vpop.permute.xlu0 %1018 }
 0x26e   :  { %v1022_v0 = vsel %vm409_vm6, %v1017_v11, %v1019_v29  ;;  %v1023_v2 = vsel %vm409_vm6, %v1019_v29, %v1021_v55 }
 0x26f   :  { %v1028_v11 = vadd.f32 %v1022_v0, %v882_v19  ;;  %v1029_v26 = vadd.f32 %v1023_v2, %v883_v42 }
 0x271   :  { %v3530_v59 = vadd.f32 %v1180_v60, %v1028_v11 }
 0x273   :  { %v1252_v27 = vsel %vm596_vm11, %v3530_v59, 0.0  ;;  %v1264_v0 = vmul.f32 %v3530_v59, %v3530_v59 }
 0x274   :  { %v1415_v41 = vpop.permute.xlu1 %1414 }
 0x275   :  { %v1418_v61 = vrot.slane %v1415_v41, 7  ;;  %v1365_v39 = vpop.permute.xlu0 %1364  ;;  %v1266_v11 = vsel %vm596_vm11, %v1264_v0, 0.0 }
 0x276   :  { %v1367_v14 = vrot.slane %v1365_v39, 1 }
 0x277   :  { %v1420_v25 = vsel %vm4026_vm3, %v1418_v61, %v1415_v41 }
 0x278   :  { %v1424_v49 = vadd.f32 %v1420_v25, %v1372_v50  ;;  %v1369_v5 = vsel %vm172_vm1, %v1365_v39, %v1367_v14 }
 0x279   :  { %v1373_v53 = vadd.f32 %v1369_v5, %v1335_v30 }
 0x27a   :  { %1448 = vst [vmem:[#allocation1] ss:$9 sm:$0xff] %v1424_v49  ;;  %v1538_v49 = vpop.permute.xlu2 %1537 }
 0x27b   :  { %v1425_v36 = vadd.f32 %v1421_v46, %v1373_v53  ;;  %v1541_v2 = vrot.slane %v1538_v49, 7 }
 0x27d   :  { %1450 = vst [vmem:[#allocation1 + $0x1] ss:$9 sm:$0xff] %v1425_v36  ;;  %v1175_v56 = vpop.permute.xlu0 %1174 }
 0x27e   :  { %v1177_v32 = vsel %vm565_vm7, %v1173_v22, %v1175_v56 }
 0x27f   :  { %v1181_v45 = vsel %vm137_vm10, %v1177_v32, 0.0  ;;  %1187 = vadd.xlane.f32.xlu1 %v1186_v38 }
 0x280   :  { %v3526_v55 = vadd.f32 %v1181_v45, %v1029_v26  ;;  %v1543_v26 = vsel %vm172_vm1, %v1541_v2, %v1538_v49 }
 0x282   :  { %v1253_v4 = vsel %vm596_vm11, %v3526_v55, 0.0  ;;  %v1265_v36 = vmul.f32 %v3526_v55, %v3526_v55  ;;  %v1509_v38 = vpop.permute.xlu2 %1508 }
 0x283   :  { %v1254_v33 = vadd.f32 %v1253_v4, %v1252_v27  ;;  %v1470_v4 = vmul.f32 %v3442_v17, %v1468_v58 }
 0x284   :  { %v1267_v32 = vsel %vm596_vm11, %v1265_v36, 0.0 }
 0x285   :  { %v1268_v60 = vadd.f32 %v1267_v32, %v1266_v11  ;;  %v1657_v11 = vmul.f32 %v1655_v8, %v3329_v62 }
 0x28b   :  { %1255 = vadd.xlane.f32.xlu0 %v1254_v33 }
 0x298   :  { %s2592_s8 = spop %2591  ;;  %1691 = vrot.lane.b32.xlu1 %v3340_v18, %s2778_s2 }
 0x299   :  { %s3538_s11 = smul.f32 0.001953125, %s2592_s8  ;;  %s2523_s8 = sld [smem:[#allocation9 + $0x1]] }
 0x29a   :  { %s2594_s12 = spop %2593 }
 0x29b   :  { %s625_s14 = smul.f32 %s3538_s11, %s3538_s11 }
 0x29c   :  { %s624_s15 = smul.f32 0.001953125, %s2594_s12 }
 0x29e   :  { %s626_s16 = ssub.f32 %s624_s15, %s625_s14 }
 0x29f   :  { %v674_v6 = vpop.xlane.xlu1 %673 }
 0x2a0   :  { %s627_s18 = sadd.f32 1e-05, %s626_s16  ;;  %v675_v20 = vrot.slane %v674_v6, 4 }
 0x2a2   :  { %v628_v40 = vstv %s627_s18  ;;  %v676_v22 = vadd.f32 %v675_v20, %v674_v6  ;;  %v3553_v6 = vld [vmem:[#allocation1] sm:$0xff]  ;;  %v3555_v20 = vld [vmem:[#allocation1 + $0x9] sm:$0xff] }
 0x2a3   :  { %2655 = vrsqrt.f32 %v628_v40  ;;  %vm635_vm13 = vweird.f32 %v628_v40 }
 0x2a4   :  { %v677_v52 = vrot.slane %v676_v22, 2 }
 0x2a6   :  { %v678_v41 = vadd.f32 %v677_v52, %v676_v22 }
 0x2a8   :  { %v688_v13 = vpop.xlane.xlu0 %687  ;;  %v679_v3 = vrot.slane %v678_v41, 1 }
 0x2a9   :  { %v2656_v29 = vpop.eup %2655  ;;  %v689_v54 = vrot.slane %v688_v13, 4 }
 0x2aa   :  { %v630_v21 = vmul.f32 %v2656_v29, %v628_v40  ;;  %vm636_vm12 = vweird.f32 %v2656_v29  ;;  %v680_v46 = vadd.f32 %v679_v3, %v678_v41  ;;  %v3557_v40 = vld [vmem:[#allocation1 + $0x12] sm:$0xff] }
 0x2ab   :  { %v690_v18 = vadd.f32 %v689_v54, %v688_v13  ;;  %vm637_vm14 = vmor %vm635_vm13, %vm636_vm12  ;;  %v1511_v13 = vrot.slane %v1509_v38, 7  ;;  %v1473_v54 = vstv %s2554_s20  ;;  %vm656_vm12 = vcmask 1041409  }
 0x2ac   :  { %v631_v50 = vmul.f32 %v2656_v29, %v630_v21  ;;  %vm3601_vm13 = vcmp.lt.s32.totalorder %v83_v34, 256 }
 0x2ad   :  { %v691_v23 = vrot.slane %v690_v18, 2 }
 0x2ae   :  { %v632_v61 = vmul.f32 0.5, %v631_v50  ;;  %v3560_v50 = vpop.permute.xlu2 %1641 }
 0x2af   :  { %v692_v30 = vadd.f32 %v691_v23, %v690_v18 }
 0x2b0   :  { %v633_v39 = vsub.f32 1.5, %v632_v61  ;;  %v1475_v61 = vmul.f32 %v3442_v17, %v1473_v54 }
 0x2b1   :  { %v693_v14 = vrot.slane %v692_v30, 1 }
 0x2b2   :  { %v634_v25 = vmul.f32 %v2656_v29, %v633_v39  ;;  %v1474_v39 = vmul.f32 %v3488_v12, %v1473_v54 }
 0x2b3   :  { %v694_v5 = vadd.f32 %v693_v14, %v692_v30  ;;  %v1513_v30 = vsel %vm172_vm1, %v1511_v13, %v1509_v38 }
 0x2b4   :  { %v638_v53 = vsel %vm637_vm14, %v2656_v29, %v634_v25  ;;  %v1517_v49 = vadd.f32 %v1513_v30, %v1475_v61 }
 0x2b5   :  { %2595 = vpush %v638_v53 }
 0x2b6   :  { %2597 = vpush %v680_v46  ;;  %v1694_v2 = vpop.permute.xlu2 %1693 }
 0x2b7   :  { %2599 = vpush %v694_v5  ;;  %v1490_v48 = vpop.permute.xlu1 %1489 }
 0x2b8   :  { %v1492_v19 = vrot.slane %v1490_v48, 7 }
 0x2ba   :  { %v1494_v33 = vsel %vm172_vm1, %v1492_v19, %v1490_v48  ;;  %v1696_v19 = vrot.slane %v1694_v2, 7 }
 0x2bb   :  { %v1488_v15 = vpop.permute.xlu0 %1487  ;;  %v1498_v29 = vadd.f32 %v1494_v33, %v1470_v4 }
 0x2bc   :  { %v1491_v56 = vrot.slane %v1488_v15, 7 }
 0x2be   :  { %v1493_v42 = vsel %vm172_vm1, %v1491_v56, %v1488_v15  ;;  %v1614_v56 = vstv %s3565_s21 }
 0x2bf   :  { %v1497_v45 = vadd.f32 %v1493_v42, %v1469_v7  ;;  %v1507_v51 = vpop.permute.xlu1 %1506  ;;  %v1616_v38 = vmul.f32 %v3442_v17, %v1614_v56 }
 0x2c0   :  { %v1510_v21 = vrot.slane %v1507_v51, 7 }
 0x2c1   :  { %v1547_v27 = vadd.f32 %v1543_v26, %v1497_v45  ;;  %v1698_v26 = vsel %vm211_vm0, %v1696_v19, %v1694_v2  ;;  %v1615_v19 = vmul.f32 %v3488_v12, %v1614_v56  ;;  %v3627_v56 = vld [vmem:[#allocation2 + $0x13] ss:$4 sm:$0xf] }
 0x2c2   :  { %1269 = vadd.xlane.f32.xlu1 %v1268_v60  ;;  %v1512_v14 = vsel %vm172_vm1, %v1510_v21, %v1507_v51 }
 0x2c3   :  { %v1540_v22 = vpop.permute.xlu0 %1539  ;;  %1570 = vst [vmem:[#allocation1] ss:$9 sm:$0xff] %v1547_v27  ;;  %v1516_v53 = vadd.f32 %v1512_v14, %v1474_v39 }
 0x2c4   :  { %v1542_v52 = vrot.slane %v1540_v22, 7 }
 0x2c6   :  { %v1544_v18 = vsel %vm172_vm1, %v1542_v52, %v1540_v22  ;;  %v1707_v22 = vmul.f32 %v1705_v35, %v3348_v63  ;;  %v1202_v35 = vpop.xlane.xlu2 %1201 }
 0x2c7   :  { %v1548_v41 = vadd.f32 %v1544_v18, %v1498_v29  ;;  %v1559_v23 = vpop.permute.xlu1 %1558  ;;  %v1203_v54 = vrot.slane %v1202_v35, 4 }
 0x2c8   :  { %v1561_v3 = vrot.slane %v1559_v23, 7 }
 0x2c9   :  { %1572 = vst [vmem:[#allocation1 + $0x1] ss:$9 sm:$0xff] %v1548_v41  ;;  %v1204_v39 = vadd.f32 %v1203_v54, %v1202_v35 }
 0x2ca   :  { %v1563_v46 = vsel %vm172_vm1, %v1561_v3, %v1559_v23 }
 0x2cb   :  { %v1557_v25 = vpop.permute.xlu0 %1556  ;;  %v1567_v58 = vadd.f32 %v1563_v46, %v1517_v49 }
 0x2cc   :  { %v1560_v5 = vrot.slane %v1557_v25, 7 }
 0x2ce   :  { %v1562_v48 = vsel %vm172_vm1, %v1560_v5, %v1557_v25  ;;  %v1205_v25 = vrot.slane %v1204_v39, 2 }
 0x2cf   :  { %v1566_v36 = vadd.f32 %v1562_v48, %v1516_v53 }
 0x2d0   :  { %v1575_v7 = vld [vmem:[#allocation1 + $0x12] sm:$0xff]  ;;  %v1573_v15 = vld [vmem:[#allocation1] sm:$0xff]  ;;  %v1574_v0 = vld [vmem:[#allocation1 + $0x9] sm:$0xff]  ;;  %v1206_v46 = vadd.f32 %v1205_v25, %v1204_v39 }
 0x2d1   :  { %1580 = vrot.lane.b32.xlu0 %v1575_v7, %s2782_s13  ;;  %1576 = vrot.lane.b32.xlu2 %v1573_v15, %s2782_s13  ;;  %1592 = vst [vmem:[#allocation1] ss:$9 sm:$0xff] %v1566_v36 }
 0x2d2   :  { %1594 = vst [vmem:[#allocation1 + $0x1] ss:$9 sm:$0xff] %v1567_v58  ;;  %v1207_v7 = vrot.slane %v1206_v46, 1 }
 0x2d3   :  { %v1644_v32 = vpop.permute.xlu0 %1643 }
 0x2d4   :  { %v1646_v42 = vrot.slane %v1644_v32, 7 }
 0x2d6   :  { %v1648_v45 = vsel %vm211_vm0, %v1646_v42, %v1644_v32  ;;  %v1645_v32 = vrot.slane %v3560_v50, 7 }
 0x2d7   :  { %v1652_v51 = vadd.f32 %v1648_v45, %v1616_v38  ;;  %v1208_v38 = vadd.f32 %v1207_v7, %v1206_v46 }
 0x2d8   :  { %v1647_v42 = vsel %vm211_vm0, %v1645_v32, %v3560_v50 }
 0x2d9   :  { %v1702_v60 = vadd.f32 %v1698_v26, %v1652_v51  ;;  %1662 = vrot.lane.b32.xlu0 %v1657_v11, %s2778_s2  ;;  %1578 = vrot.lane.b32.xlu2 %v1574_v0, %s2782_s13  ;;  %v3583_v4 = vld [vmem:[#allocation1] sm:$0xff]  ;;  %v3585_v27 = vld [vmem:[#allocation1 + $0x9] sm:$0xff]  ;;  %v3587_v33 = vld [vmem:[#allocation1 + $0x12] sm:$0xff]  ;;  %v1651_v26 = vadd.f32 %v1647_v42, %v1615_v19 }
 0x2da   :  { %v3617_v11 = vld [vmem:[#allocation2 + $0x3] ss:$4 sm:$0xf] }
 0x2db   :  { %1726 = vst [vmem:[#allocation1 + $0x1] ss:$9 sm:$0xff] %v1702_v60 }
 0x2e1   :  { %1712 = vrot.lane.b32.xlu0 %v1707_v22, %s2778_s2 }
 0x2e6   :  { %s2596_s24 = spop %2595 }
 0x2e7   :  { %s641_s25 = smul.f32 %s2596_s24, %s640_s22  ;;  %s2598_s26 = spop %2597 }
 0x2e8   :  { %s3593_s27 = smul.f32 0.001953125, %s2598_s26  ;;  %s2600_s28 = spop %2599 }
 0x2e9   :  { %s643_s0 = smul.f32 %s641_s25, %s3538_s11  ;;  %v645_v8 = vstv %s641_s25  ;;  %2103 = vrot.lane.b32.xlu0 %v3617_v11, %s2777_s1  ;;  %s2524_s11 = sld [smem:[#allocation10 + $0x1]] }
 0x2ea   :  { %s698_s30 = smul.f32 %s3593_s27, %s3593_s27  ;;  %v647_v62 = vmul.f32 %v645_v8, %v3391_v31  ;;  %v646_v52 = vmul.f32 %v645_v8, %v3380_v16  ;;  %s3664_s25 = sld [smem:[#allocation8 + $0x39]] }
 0x2eb   :  { %s644_s5 = ssub.f32 %s642_s23, %s643_s0  ;;  %s697_s6 = smul.f32 0.001953125, %s2600_s28 }
 0x2ec   :  { %s2543_s26 = sld [smem:[#allocation9 + $0x2]] }
 0x2ed   :  { %v648_v63 = vstv %s644_s5  ;;  %s699_s29 = ssub.f32 %s697_s6, %s698_s30 }
 0x2ee   :  { %v650_v13 = vadd.f32 %v648_v63, %v647_v62  ;;  %v649_v21 = vadd.f32 %v648_v63, %v646_v52 }
 0x2ef   :  { %s700_s7 = sadd.f32 1e-05, %s699_s29 }
 0x2f0   :  { %v653_v18 = vrot.slane %v650_v13, 7 }
 0x2f1   :  { %v701_v41 = vstv %s700_s7 }
 0x2f2   :  { %v655_v31 = vsel %vm654_vm15, %v649_v21, %v653_v18  ;;  %v657_v23 = vsel %vm656_vm12, %v649_v21, %v653_v18  ;;  %2657 = vrsqrt.f32 %v701_v41  ;;  %v1188_v61 = vpop.xlane.xlu1 %1187  ;;  %vm708_vm3 = vweird.f32 %v701_v41 }
 0x2f3   :  { %v658_v16 = vrot.slane %v657_v23, 1  ;;  %665 = vst.msk [vmem:[#allocation12] ss:$8 sm:$0x3] %vm3601_vm13, %v655_v31  ;;  %v1189_v30 = vrot.slane %v1188_v61, 4 }
 0x2f5   :  { %668 = vst.msk [vmem:[#allocation12 + $0x10] ss:$8 sm:$0x3] %vm3601_vm13, %v658_v16  ;;  %v1190_v34 = vadd.f32 %v1189_v30, %v1188_v61 }
 0x2f7   :  { %v1191_v3 = vrot.slane %v1190_v34, 2 }
 0x2f8   :  { %v2658_v14 = vpop.eup %2657 }
 0x2f9   :  { %v703_v49 = vmul.f32 %v2658_v14, %v701_v41  ;;  %v1192_v53 = vadd.f32 %v1191_v3, %v1190_v34  ;;  %vm709_vm14 = vweird.f32 %v2658_v14  ;;  %v1435_v34 = vpop.permute.xlu2 %1434 }
 0x2fa   :  { %vm710_vm2 = vmor %vm708_vm3, %vm709_vm14 }
 0x2fb   :  { %v704_v5 = vmul.f32 %v2658_v14, %v703_v49  ;;  %v1193_v58 = vrot.slane %v1192_v53, 1 }
 0x2fd   :  { %v705_v48 = vmul.f32 0.5, %v704_v5  ;;  %v1194_v2 = vadd.f32 %v1193_v58, %v1192_v53 }
 0x2ff   :  { %v706_v36 = vsub.f32 1.5, %v705_v48 }
 0x301   :  { %v707_v15 = vmul.f32 %v2658_v14, %v706_v36  ;;  %v1437_v7 = vpop.permute.xlu2 %1436 }
 0x303   :  { %v711_v0 = vsel %vm710_vm2, %v2658_v14, %v707_v15 }
 0x304   :  { %2601 = vpush %v711_v0 }
 0x305   :  { %2603 = vpush %v1194_v2 }
 0x306   :  { %2605 = vpush %v1208_v38 }
 0x30a   :  { %v1692_v45 = vpop.permute.xlu1 %1691 }
 0x30b   :  { %v1695_v51 = vrot.slane %v1692_v45, 7 }
 0x30d   :  { %v1697_v60 = vsel %vm211_vm0, %v1695_v51, %v1692_v45 }
 0x30e   :  { %v1701_v22 = vadd.f32 %v1697_v60, %v1651_v26 }
 0x310   :  { %1724 = vst [vmem:[#allocation1] ss:$9 sm:$0xff] %v1701_v22 }
 0x317   :  { %v1728_v8 = vld [vmem:[#allocation1 + $0x9] sm:$0xff]  ;;  %v1727_v62 = vld [vmem:[#allocation1] sm:$0xff]  ;;  %v1729_v50 = vld [vmem:[#allocation1 + $0x12] sm:$0xff] }
 0x318   :  { %1732 = vrot.lane.b32.xlu1 %v1728_v8, %s2783_s17  ;;  %1730 = vrot.lane.b32.xlu2 %v1727_v62, %s2783_s17 }
 0x320   :  { %1734 = vrot.lane.b32.xlu2 %v1729_v50, %s2783_s17  ;;  %1961 = vrot.lane.b32.xlu1 %v3617_v11, %s2778_s2 }
 0x328   :  { %1660 = vrot.lane.b32.xlu2 %v3317_v10, %s2778_s2  ;;  %2105 = vrot.lane.b32.xlu1 %v3627_v56, %s2777_s1 }
 0x330   :  { %1710 = vrot.lane.b32.xlu2 %v3344_v47, %s2778_s2  ;;  %2207 = vrot.lane.b32.xlu1 %v3617_v11, %s2779_s3  ;;  %v1256_v47 = vpop.xlane.xlu0 %1255 }
 0x331   :  { %v1257_v13 = vrot.slane %v1256_v47, 4 }
 0x333   :  { %v1258_v61 = vadd.f32 %v1257_v13, %v1256_v47 }
 0x335   :  { %s2602_s12 = spop %2601  ;;  %v1270_v52 = vpop.xlane.xlu1 %1269  ;;  %v1259_v3 = vrot.slane %v1258_v61, 2 }
 0x336   :  { %s714_s14 = smul.f32 %s2602_s12, %s2523_s8  ;;  %s2604_s15 = spop %2603  ;;  %v1271_v31 = vrot.slane %v1270_v52, 4 }
 0x337   :  { %s3637_s16 = smul.f32 0.001953125, %s2604_s15  ;;  %s2606_s18 = spop %2605  ;;  %v1260_v5 = vadd.f32 %v1259_v3, %v1258_v61 }
 0x338   :  { %s716_s19 = smul.f32 %s714_s14, %s3593_s27  ;;  %v718_v10 = vstv %s714_s14  ;;  %1963 = vrot.lane.b32.xlu2 %v3627_v56, %s2778_s2  ;;  %2209 = vrot.lane.b32.xlu1 %v3627_v56, %s2779_s3  ;;  %s3656_s3 = sld [smem:[#allocation8 + $0x2f]] }
 0x339   :  { %s1212_s20 = smul.f32 %s3637_s16, %s3637_s16  ;;  %v720_v35 = vmul.f32 %v718_v10, %v3473_v37  ;;  %v719_v54 = vmul.f32 %v718_v10, %v3470_v9  ;;  %v1272_v9 = vadd.f32 %v1271_v31, %v1270_v52  ;;  %v1261_v58 = vrot.slane %v1260_v5, 1  ;;  %v1439_v10 = vpop.permute.xlu2 %1438  ;;  %s2544_s27 = sld [smem:[#allocation10 + $0x2]] }
 0x33a   :  { %s717_s21 = ssub.f32 %s2524_s11, %s716_s19  ;;  %s1211_s22 = smul.f32 0.001953125, %s2606_s18 }
 0x33b   :  { %v1273_v25 = vrot.slane %v1272_v9, 2  ;;  %v1262_v51 = vadd.f32 %v1261_v58, %v1260_v5  ;;  %s3687_s12 = sld [smem:[#allocation8 + $0x3c]] }
 0x33c   :  { %v721_v63 = vstv %s717_s21  ;;  %s1213_s23 = ssub.f32 %s1211_s22, %s1212_s20 }
 0x33d   :  { %v723_v21 = vadd.f32 %v721_v63, %v720_v35  ;;  %v722_v18 = vadd.f32 %v721_v63, %v719_v54  ;;  %v1274_v48 = vadd.f32 %v1273_v25, %v1272_v9  ;;  %v1920_v63 = vstv %s3664_s25  ;;  %s3739_s18 = sld [smem:[#allocation8 + $0x3a]] }
 0x33e   :  { %s1214_s24 = sadd.f32 1e-05, %s1213_s23  ;;  %v1619_v15 = vstv %s3656_s3  ;;  %v1921_v52 = vmul.f32 %v1920_v63, %v3617_v11 }
 0x33f   :  { %v726_v41 = vrot.slane %v723_v21, 7  ;;  %v1275_v38 = vrot.slane %v1274_v48, 1  ;;  %v1621_v19 = vmul.f32 %v3442_v17, %v1619_v15  ;;  %v1620_v31 = vmul.f32 %v3488_v12, %v1619_v15  ;;  %s2574_s19 = sld [smem:[#allocation8 + $0x45]] }
 0x340   :  { %v1215_v23 = vstv %s1214_s24  ;;  %2257 = vrot.lane.b32.xlu1 %v3617_v11, %s2780_s10  ;;  %s2579_s20 = sld [smem:[#allocation8 + $0x3d]] }
 0x341   :  { %v727_v16 = vsel %vm654_vm15, %v722_v18, %v726_v41  ;;  %v728_v37 = vsel %vm656_vm12, %v722_v18, %v726_v41  ;;  %2659 = vrsqrt.f32 %v1215_v23  ;;  %vm1222_vm3 = vweird.f32 %v1215_v23  ;;  %v1577_v47 = vpop.permute.xlu2 %1576  ;;  %s3754_s21 = sld [smem:[#allocation8 + $0x46]] }
 0x342   :  { %v729_v30 = vrot.slane %v728_v37, 1  ;;  %733 = vst.msk [vmem:[#allocation12 + $0x1] ss:$8 sm:$0x3] %vm3601_vm13, %v727_v16  ;;  %v1276_v26 = vadd.f32 %v1275_v38, %v1274_v48  ;;  %v1440_v18 = vsel %vm266_vm4, %v1435_v34, %v1437_v7  ;;  %v1441_v41 = vsel %vm266_vm4, %v1437_v7, %v1439_v10  ;;  %s2578_s22 = sld [smem:[#allocation8 + $0x43]] }
 0x343   :  { %v1581_v39 = vpop.permute.xlu0 %1580  ;;  %v1445_v9 = vsel %vm113_vm5, %v1441_v41, 0.0  ;;  %s2545_s23 = sld [smem:[#allocation9 + $0x3]] }
 0x344   :  { %736 = vst.msk [vmem:[#allocation12 + $0x11] ss:$8 sm:$0x3] %vm3601_vm13, %v729_v30  ;;  %v1444_v30 = vsel %vm112_vm9, %v1440_v18, 0.0  ;;  %s2546_s24 = sld [smem:[#allocation10 + $0x3]] }
 0x345   :  { %s3763_s3 = sld [smem:[#allocation8 + $0x3b]] }
 0x347   :  { %v2660_v14 = vpop.eup %2659 }
 0x348   :  { %v1217_v49 = vmul.f32 %v2660_v14, %v1215_v23  ;;  %2259 = vrot.lane.b32.xlu1 %v3627_v56, %s2780_s10  ;;  %vm1223_vm2 = vweird.f32 %v2660_v14 }
 0x349   :  { %vm1224_vm14 = vmor %vm1222_vm3, %vm1223_vm2  ;;  %v1579_v35 = vpop.permute.xlu2 %1578 }
 0x34a   :  { %v1218_v53 = vmul.f32 %v2660_v14, %v1217_v49  ;;  %v1582_v23 = vsel %vm409_vm6, %v1577_v47, %v1579_v35  ;;  %v1583_v61 = vsel %vm409_vm6, %v1579_v35, %v1581_v39 }
 0x34b   :  { %v1663_v46 = vpop.permute.xlu0 %1662  ;;  %v1588_v34 = vadd.f32 %v1582_v23, %v1444_v30  ;;  %v1589_v12 = vadd.f32 %v1583_v61, %v1445_v9 }
 0x34c   :  { %v1219_v36 = vmul.f32 0.5, %v1218_v53  ;;  %v1665_v0 = vrot.slane %v1663_v46, 7 }
 0x34e   :  { %v1220_v2 = vsub.f32 1.5, %v1219_v36  ;;  %v1667_v42 = vsel %vm211_vm0, %v1665_v0, %v1663_v46 }
 0x34f   :  { %v1671_v8 = vadd.f32 %v1667_v42, %v1621_v19 }
 0x350   :  { %v1221_v32 = vmul.f32 %v2660_v14, %v1220_v2  ;;  %1925 = vrot.lane.b32.xlu1 %v1921_v52, %s2777_s1 }
 0x352   :  { %v1225_v45 = vsel %vm1224_vm14, %v2660_v14, %v1221_v32 }
 0x353   :  { %2607 = vpush %v1225_v45  ;;  %v1713_v60 = vpop.permute.xlu0 %1712 }
 0x354   :  { %2609 = vpush %v1262_v51  ;;  %v1715_v22 = vrot.slane %v1713_v60, 7 }
 0x355   :  { %2611 = vpush %v1276_v26 }
 0x356   :  { %v1717_v62 = vsel %vm211_vm0, %v1715_v22, %v1713_v60 }
 0x357   :  { %v1721_v50 = vadd.f32 %v1717_v62, %v1671_v8 }
 0x359   :  { %1748 = vst [vmem:[#allocation1 + $0x1] ss:$9 sm:$0xff] %v1721_v50 }
 0x372   :  { %v1731_v17 = vpop.permute.xlu2 %1730 }
 0x37a   :  { %v1735_v13 = vpop.permute.xlu2 %1734 }
 0x382   :  { %v1661_v54 = vpop.permute.xlu2 %1660 }
 0x383   :  { %v1664_v21 = vrot.slane %v1661_v54, 7 }
 0x384   :  { %s2608_s28 = spop %2607 }
 0x385   :  { %s1228_s0 = smul.f32 %s2608_s28, %s2543_s26  ;;  %s2610_s30 = spop %2609  ;;  %v1666_v37 = vsel %vm211_vm0, %v1664_v21, %v1661_v54 }
 0x386   :  { %s3673_s5 = smul.f32 0.001953125, %s2610_s30  ;;  %s2612_s6 = spop %2611  ;;  %v1670_v14 = vadd.f32 %v1666_v37, %v1620_v31 }
 0x387   :  { %s1230_s29 = smul.f32 %s1228_s0, %s3637_s16  ;;  %v1232_v16 = vstv %s1228_s0  ;;  %s2572_s16 = sld [smem:[#allocation8 + $0x42]] }
 0x388   :  { %s1280_s7 = smul.f32 %s3673_s5, %s3673_s5  ;;  %v1234_v3 = vmul.f32 %v1232_v16, %v3430_v43  ;;  %v1233_v48 = vmul.f32 %v1232_v16, %v3427_v1  ;;  %s2585_s28 = sld [smem:[#allocation8 + $0x3e]] }
 0x389   :  { %s1231_s8 = ssub.f32 %s2544_s27, %s1230_s29  ;;  %s1279_s11 = smul.f32 0.001953125, %s2612_s6 }
 0x38a   :  { %v1733_v39 = vpop.permute.xlu1 %1732  ;;  %v1711_v25 = vpop.permute.xlu2 %1710  ;;  %s3801_s0 = sld [smem:[#allocation8 + $0x36]] }
 0x38b   :  { %v1235_v49 = vstv %s1231_s8  ;;  %s1281_s14 = ssub.f32 %s1279_s11, %s1280_s7  ;;  %v1736_v5 = vsel %vm565_vm7, %v1731_v17, %v1733_v39  ;;  %v1737_v53 = vsel %vm565_vm7, %v1733_v39, %v1735_v13  ;;  %v1714_v46 = vrot.slane %v1711_v25, 7 }
 0x38c   :  { %v1237_v36 = vadd.f32 %v1235_v49, %v1234_v3  ;;  %v1740_v58 = vsel %vm136_vm8, %v1736_v5, 0.0  ;;  %v1741_v43 = vsel %vm137_vm10, %v1737_v53, 0.0  ;;  %v1236_v2 = vadd.f32 %v1235_v49, %v1233_v48  ;;  %s3832_s30 = sld [smem:[#allocation8 + $0x37]] }
 0x38d   :  { %s1282_s15 = sadd.f32 1e-05, %s1281_s14  ;;  %v3696_v7 = vadd.f32 %v1740_v58, %v1588_v34  ;;  %v3698_v15 = vadd.f32 %v1741_v43, %v1589_v12  ;;  %v1716_v0 = vsel %vm211_vm0, %v1714_v46, %v1711_v25  ;;  %v1958_v17 = vstv %s3687_s12 }
 0x38e   :  { %v1240_v38 = vrot.slane %v1237_v36, 7  ;;  %v1720_v32 = vadd.f32 %v1716_v0, %v1670_v14  ;;  %v1922_v12 = vmul.f32 %v1920_v63, %v3627_v56  ;;  %v2060_v49 = vstv %s3739_s18  ;;  %s2584_s18 = sld [smem:[#allocation8 + $0x44]] }
 0x38f   :  { %v1283_v19 = vstv %s1282_s15  ;;  %v1766_v1 = vsel %vm596_vm11, %v3696_v7, 0.0  ;;  %v1767_v42 = vsel %vm596_vm11, %v3698_v15, 0.0  ;;  %v1778_v45 = vmul.f32 %v3696_v7, %v3696_v7  ;;  %s2581_s15 = sld [smem:[#allocation8 + $0x38]] }
 0x390   :  { %v1241_v51 = vsel %vm654_vm15, %v1236_v2, %v1240_v38  ;;  %v1242_v26 = vsel %vm656_vm12, %v1236_v2, %v1240_v38  ;;  %2661 = vrsqrt.f32 %v1283_v19  ;;  %1746 = vst [vmem:[#allocation1] ss:$9 sm:$0xff] %v1720_v32  ;;  %v1768_v60 = vadd.f32 %v1767_v42, %v1766_v1 }
 0x391   :  { %v1243_v22 = vrot.slane %v1242_v26, 1  ;;  %1247 = vst.msk [vmem:[#allocation12 + $0x2] ss:$8 sm:$0x3] %vm3601_vm13, %v1241_v51  ;;  %v1779_v8 = vmul.f32 %v3698_v15, %v3698_v15  ;;  %v1780_v62 = vsel %vm596_vm11, %v1778_v45, 0.0  ;;  %vm1290_vm3 = vweird.f32 %v1283_v19 }
 0x392   :  { %1769 = vadd.xlane.f32.xlu2 %v1768_v60  ;;  %v1964_v50 = vpop.permute.xlu2 %1963  ;;  %v1962_v23 = vpop.permute.xlu1 %1961  ;;  %v1991_v53 = vstv %s2574_s19  ;;  %v2102_v2 = vstv %s2579_s20  ;;  %v2062_v32 = vrot.slane %v3627_v56, 1  ;;  %v2133_v26 = vstv %s3754_s21  ;;  %s2565_s19 = sld [smem:[#allocation9 + $0x4]] }
 0x393   :  { %1250 = vst.msk [vmem:[#allocation12 + $0x12] ss:$8 sm:$0x3] %vm3601_vm13, %v1243_v22  ;;  %v1966_v10 = vrot.slane %v1964_v50, 1  ;;  %v1968_v47 = vrot.slane %v1964_v50, 2  ;;  %v1781_v35 = vsel %vm596_vm11, %v1779_v8, 0.0  ;;  %v2083_v60 = vstv %s2578_s22 }
 0x394   :  { %v1782_v52 = vadd.f32 %v1781_v35, %v1780_v62  ;;  %v1965_v37 = vrot.slane %v1962_v23, 1  ;;  %v1967_v30 = vrot.slane %v1962_v23, 2  ;;  %v2066_v51 = vmul.f32 %v2062_v32, %v2060_v49  ;;  %s2566_s20 = sld [smem:[#allocation10 + $0x4]] }
 0x395   :  { %v1970_v13 = vsel %vm211_vm0, %v1966_v10, %v1968_v47  ;;  %v2085_v35 = vmul.f32 %v2083_v60, %v2062_v32 }
 0x396   :  { %v2662_v54 = vpop.eup %2661  ;;  %1783 = vadd.xlane.f32.xlu0 %v1782_v52  ;;  %v1974_v21 = vmul.f32 %v1970_v13, %v1958_v17  ;;  %v1969_v34 = vsel %vm211_vm0, %v1965_v37, %v1967_v30  ;;  %v1993_v43 = vmul.f32 %v1991_v53, %v1970_v13 }
 0x397   :  { %v1285_v18 = vmul.f32 %v2662_v54, %v1283_v19  ;;  %vm1291_vm2 = vweird.f32 %v2662_v54  ;;  %v1973_v3 = vmul.f32 %v1969_v34, %v1958_v17  ;;  %v1749_v39 = vld [vmem:[#allocation1] sm:$0xff]  ;;  %v1750_v25 = vld [vmem:[#allocation1 + $0x9] sm:$0xff]  ;;  %v1992_v0 = vmul.f32 %v1991_v53, %v1969_v34 }
 0x398   :  { %1979 = vrot.lane.b32.xlu1 %v1974_v21, %s2780_s10  ;;  %vm1292_vm14 = vmor %vm1290_vm3, %vm1291_vm2  ;;  %vm4030_vm2 = vcmask 1039360  }
 0x399   :  { %v1286_v41 = vmul.f32 %v2662_v54, %v1285_v18  ;;  %vm4031_vm3 = vmmov %vm4030_vm2 }
 0x39b   :  { %v1287_v31 = vmul.f32 0.5, %v1286_v41 }
 0x39d   :  { %v1288_v61 = vsub.f32 1.5, %v1287_v31  ;;  %v2206_v31 = vstv %s3763_s3 }
 0x39f   :  { %v1289_v16 = vmul.f32 %v2662_v54, %v1288_v61 }
 0x3a0   :  { %1454 = vrot.lane.b32.xlu1 %v3553_v6, %s2781_s9  ;;  %v1939_v6 = vstv %s2572_s16  ;;  %s3875_s16 = sld [smem:[#allocation8 + $0x47]] }
 0x3a1   :  { %v1293_v9 = vsel %vm1292_vm14, %v2662_v54, %v1289_v16  ;;  %v1941_v63 = vmul.f32 %v1939_v6, %v3627_v56  ;;  %v1940_v14 = vmul.f32 %v1939_v6, %v3617_v11  ;;  %vm4032_vm14 = vcmask 908288  }
 0x3a2   :  { %2613 = vpush %v1293_v9 }
 0x3a8   :  { %1456 = vrot.lane.b32.xlu1 %v3555_v20, %s2781_s9  ;;  %v2106_v20 = vpop.permute.xlu1 %2105 }
 0x3a9   :  { %v2108_v46 = vrot.slane %v2106_v20, 1  ;;  %v2110_v48 = vrot.slane %v2106_v20, 2  ;;  %v2256_v20 = vstv %s2585_s28 }
 0x3aa   :  { %1977 = vrot.lane.b32.xlu0 %v1973_v3, %s2780_s10  ;;  %1927 = vrot.lane.b32.xlu2 %v1922_v12, %s2777_s1 }
 0x3ab   :  { %v2112_v38 = vsel %vm172_vm1, %v2108_v46, %v2110_v48 }
 0x3ac   :  { %v2116_v42 = vmul.f32 %v2112_v38, %v2102_v2 }
 0x3b0   :  { %1600 = vrot.lane.b32.xlu1 %v3585_v27, %s2782_s13  ;;  %v3746_v27 = vpop.permute.xlu1 %2207 }
 0x3b1   :  { %v2211_v52 = vrot.slane %v3746_v27, 1  ;;  %v2213_v13 = vrot.slane %v3746_v27, 2 }
 0x3b2   :  { %1458 = vrot.lane.b32.xlu0 %v3557_v40, %s2781_s9  ;;  %1598 = vrot.lane.b32.xlu2 %v3583_v4, %s2782_s13  ;;  %v1751_v40 = vld [vmem:[#allocation1 + $0x12] sm:$0xff]  ;;  %v2061_v4 = vrot.slane %v3617_v11, 1 }
 0x3b3   :  { %v3779_v37 = vsel %vm4031_vm3, %v2211_v52, %v2213_v13 }
 0x3b4   :  { %v2065_v5 = vmul.f32 %v2061_v4, %v2060_v49  ;;  %v2084_v47 = vmul.f32 %v2083_v60, %v2061_v4 }
 0x3b8   :  { %1946 = vrot.lane.b32.xlu1 %v1941_v63, %s2777_s1  ;;  %v2210_v19 = vpop.permute.xlu1 %2209 }
 0x3b9   :  { %v2212_v62 = vrot.slane %v2210_v19, 1  ;;  %v2214_v50 = vrot.slane %v2210_v19, 2 }
 0x3ba   :  { %1602 = vrot.lane.b32.xlu0 %v3587_v33, %s2782_s13  ;;  %1944 = vrot.lane.b32.xlu2 %v1940_v14, %s2777_s1  ;;  %v2104_v33 = vpop.permute.xlu0 %2103  ;;  %v2219_v14 = vmul.f32 %v3779_v37, %v2206_v31 }
 0x3bb   :  { %v2107_v36 = vrot.slane %v2104_v33, 1  ;;  %v2109_v58 = vrot.slane %v2104_v33, 2  ;;  %v3771_v54 = vsel %vm4030_vm2, %v2212_v62, %v2214_v50  ;;  %vm4033_vm2 = vmmov %vm4032_vm14 }
 0x3bc   :  { %v2220_v23 = vmul.f32 %v3771_v54, %v2206_v31  ;;  %vm4034_vm3 = vmmov %vm4033_vm2 }
 0x3bd   :  { %v2111_v1 = vsel %vm172_vm1, %v2107_v36, %v2109_v58  ;;  %v1909_v58 = vstv %s3801_s0  ;;  %s2567_s0 = sld [smem:[#allocation9 + $0x5]] }
 0x3be   :  { %v2115_v45 = vmul.f32 %v2111_v1, %v2102_v2  ;;  %v2134_v22 = vmul.f32 %v2133_v26, %v2111_v1 }
 0x3c0   :  { %1756 = vrot.lane.b32.xlu1 %v1751_v40, %s2783_s17  ;;  %v2258_v8 = vpop.permute.xlu1 %2257 }
 0x3c1   :  { %v2261_v30 = vrot.slane %v2258_v8, 1  ;;  %v2263_v9 = vrot.slane %v2258_v8, 2 }
 0x3c2   :  { %1752 = vrot.lane.b32.xlu0 %v1749_v39, %s2783_s17  ;;  %1754 = vrot.lane.b32.xlu2 %v1750_v25, %s2783_s17 }
 0x3c3   :  { %v3792_v40 = vsel %vm4032_vm14, %v2261_v30, %v2263_v9  ;;  %vm4035_vm14 = vmmov %vm4033_vm2 }
 0x3c4   :  { %v2269_v27 = vmul.f32 %v3792_v40, %v2256_v20 }
 0x3c8   :  { %2069 = vrot.lane.b32.xlu1 %v2065_v5, %s2777_s1 }
 0x3ca   :  { %1996 = vrot.lane.b32.xlu0 %v1992_v0, %s2780_s10  ;;  %1998 = vrot.lane.b32.xlu2 %v1993_v43, %s2780_s10 }
 0x3d0   :  { %2121 = vrot.lane.b32.xlu1 %v2116_v42, %s2777_s1 }
 0x3d2   :  { %2071 = vrot.lane.b32.xlu0 %v2066_v51, %s2777_s1  ;;  %2119 = vrot.lane.b32.xlu2 %v2115_v45, %s2777_s1 }
 0x3d3   :  { %s2614_s10 = spop %2613 }
 0x3d4   :  { %s1296_s25 = smul.f32 %s2614_s10, %s2545_s23 }
 0x3d6   :  { %s1298_s26 = smul.f32 %s1296_s25, %s3673_s5  ;;  %v1300_v10 = vstv %s1296_s25  ;;  %s3855_s5 = sld [smem:[#allocation8 + $0x40]] }
 0x3d7   :  { %v1302_v17 = vmul.f32 %v1300_v10, %v3526_v55  ;;  %v1301_v18 = vmul.f32 %v1300_v10, %v3530_v59  ;;  %v2260_v55 = vpop.permute.xlu1 %2259  ;;  %v2135_v59 = vmul.f32 %v2133_v26, %v2112_v38  ;;  %v1911_v38 = vmul.f32 %v1909_v58, %v3627_v56 }
 0x3d8   :  { %s1299_s27 = ssub.f32 %s2546_s24, %s1298_s26  ;;  %2138 = vrot.lane.b32.xlu1 %v2134_v22, %s2777_s1  ;;  %v2262_v3 = vrot.slane %v2260_v55, 1  ;;  %v2264_v6 = vrot.slane %v2260_v55, 2 }
 0x3da   :  { %v1303_v21 = vstv %s1299_s27  ;;  %2088 = vrot.lane.b32.xlu0 %v2084_v47, %s2777_s1  ;;  %2090 = vrot.lane.b32.xlu2 %v2085_v35, %s2777_s1  ;;  %v3795_v4 = vsel %vm4033_vm2, %v2262_v3, %v2264_v6 }
 0x3db   :  { %v1305_v41 = vadd.f32 %v1303_v21, %v1302_v17  ;;  %v1304_v61 = vadd.f32 %v1303_v21, %v1301_v18  ;;  %v2270_v39 = vmul.f32 %v3795_v4, %v2256_v20  ;;  %v1910_v17 = vmul.f32 %v1909_v58, %v3617_v11 }
 0x3dd   :  { %v1308_v16 = vrot.slane %v1305_v41, 7 }
 0x3df   :  { %v1309_v34 = vsel %vm654_vm15, %v1304_v61, %v1308_v16  ;;  %v1310_v12 = vsel %vm656_vm12, %v1304_v61, %v1308_v16  ;;  %v1926_v25 = vpop.permute.xlu1 %1925 }
 0x3e0   :  { %v1311_v63 = vrot.slane %v1310_v12, 1  ;;  %1315 = vst.msk [vmem:[#allocation12 + $0x3] ss:$8 sm:$0x3] %vm3601_vm13, %v1309_v34  ;;  %2225 = vrot.lane.b32.xlu1 %v2220_v23, %s2778_s2  ;;  %v1929_v35 = vrot.slane %v1926_v25, 1 }
 0x3e2   :  { %1318 = vst.msk [vmem:[#allocation12 + $0x13] ss:$8 sm:$0x3] %vm3601_vm13, %v1311_v63  ;;  %2140 = vrot.lane.b32.xlu0 %v2135_v59, %s2777_s1  ;;  %2223 = vrot.lane.b32.xlu2 %v2219_v14, %s2778_s2  ;;  %v1931_v13 = vsel %vm172_vm1, %v1926_v25, %v1929_v35  ;;  %s3810_s1 = sld [smem:[#allocation8 + $0x3f]] }
 0x3e3   :  { %v1935_v31 = vadd.f32 %v1931_v13, %v1910_v17 }
 0x3e8   :  { %v1915_v9 = vstv %s3810_s1  ;;  %s2568_s1 = sld [smem:[#allocation10 + $0x5]] }
 0x3e9   :  { %v1917_v12 = vmul.f32 %v1915_v9, %v3627_v56 }
 0x3ea   :  { %2273 = vrot.lane.b32.xlu0 %v2269_v27, %s2778_s2  ;;  %2275 = vrot.lane.b32.xlu2 %v2270_v39, %s2778_s2 }
 0x405   :  { %v1770_v49 = vpop.xlane.xlu2 %1769 }
 0x406   :  { %v1771_v5 = vrot.slane %v1770_v49, 4 }
 0x408   :  { %v1772_v33 = vadd.f32 %v1771_v5, %v1770_v49 }
 0x409   :  { %v1784_v53 = vpop.xlane.xlu0 %1783 }
 0x40a   :  { %v1773_v46 = vrot.slane %v1772_v33, 2  ;;  %v1785_v48 = vrot.slane %v1784_v53, 4  ;;  %v1980_v36 = vpop.permute.xlu1 %1979 }
 0x40b   :  { %v1982_v0 = vrot.slane %v1980_v36, 7 }
 0x40c   :  { %v1786_v43 = vadd.f32 %v1785_v48, %v1784_v53  ;;  %v1774_v2 = vadd.f32 %v1773_v46, %v1772_v33 }
 0x40d   :  { %v1928_v32 = vpop.permute.xlu2 %1927  ;;  %v1984_v45 = vsel %vm4034_vm3, %v1982_v0, %v1980_v36  ;;  %vm4036_vm3 = vmmov %vm4033_vm2 }
 0x40e   :  { %v1787_v19 = vrot.slane %v1786_v43, 2  ;;  %v1930_v1 = vrot.slane %v1928_v32, 1  ;;  %v1775_v42 = vrot.slane %v1774_v2, 1 }
 0x410   :  { %v1932_v51 = vsel %vm172_vm1, %v1928_v32, %v1930_v1  ;;  %v1776_v26 = vadd.f32 %v1775_v42, %v1774_v2  ;;  %v1788_v60 = vadd.f32 %v1787_v19, %v1786_v43 }
 0x411   :  { %v1936_v22 = vadd.f32 %v1932_v51, %v1911_v38 }
 0x412   :  { %v1455_v8 = vpop.permute.xlu1 %1454  ;;  %2615 = vpush %v1776_v26  ;;  %v1789_v62 = vrot.slane %v1788_v60, 1 }
 0x413   :  { %v1988_v50 = vadd.f32 %v1984_v45, %v1936_v22 }
 0x414   :  { %v1790_v10 = vadd.f32 %v1789_v62, %v1788_v60 }
 0x415   :  { %2012 = vst [vmem:[#allocation1 + $0x1] ss:$9 sm:$0xff] %v1988_v50  ;;  %v1599_v47 = vpop.permute.xlu2 %1598 }
 0x416   :  { %2617 = vpush %v1790_v10  ;;  %v1916_v10 = vmul.f32 %v1915_v9, %v3617_v11 }
 0x41a   :  { %v1457_v52 = vpop.permute.xlu1 %1456 }
 0x41b   :  { %v1460_v5 = vsel %vm266_vm4, %v1455_v8, %v1457_v52 }
 0x41c   :  { %v1978_v21 = vpop.permute.xlu0 %1977  ;;  %v1464_v2 = vsel %vm112_vm9, %v1460_v5, 0.0 }
 0x41d   :  { %v1981_v18 = vrot.slane %v1978_v21, 7  ;;  %v1945_v41 = vpop.permute.xlu2 %1944 }
 0x41e   :  { %v1948_v51 = vrot.slane %v1945_v41, 1 }
 0x41f   :  { %v1983_v23 = vsel %vm4035_vm14, %v1981_v18, %v1978_v21 }
 0x420   :  { %v1987_v55 = vadd.f32 %v1983_v23, %v1935_v31  ;;  %v1950_v17 = vsel %vm172_vm1, %v1945_v41, %v1948_v51  ;;  %v2050_v31 = vstv %s3832_s30 }
 0x422   :  { %2010 = vst [vmem:[#allocation1] ss:$9 sm:$0xff] %v1987_v55  ;;  %v1601_v61 = vpop.permute.xlu1 %1600 }
 0x423   :  { %v1604_v48 = vsel %vm409_vm6, %v1599_v47, %v1601_v61 }
 0x424   :  { %v1459_v16 = vpop.permute.xlu0 %1458  ;;  %v1610_v19 = vadd.f32 %v1604_v48, %v1464_v2 }
 0x425   :  { %v1755_v30 = vpop.permute.xlu2 %1754  ;;  %v1461_v39 = vsel %vm266_vm4, %v1457_v52, %v1459_v16 }
 0x426   :  { %v1465_v46 = vsel %vm113_vm5, %v1461_v39, 0.0 }
 0x429   :  { %v2013_v34 = vld [vmem:[#allocation1] sm:$0xff]  ;;  %v2014_v53 = vld [vmem:[#allocation1 + $0x9] sm:$0xff]  ;;  %v2015_v58 = vld [vmem:[#allocation1 + $0x12] sm:$0xff] }
 0x42a   :  { %2016 = vrot.lane.b32.xlu2 %v2013_v34, %s2781_s9  ;;  %v1947_v3 = vpop.permute.xlu1 %1946 }
 0x42b   :  { %v1949_v6 = vrot.slane %v1947_v3, 1 }
 0x42c   :  { %v1603_v59 = vpop.permute.xlu0 %1602 }
 0x42d   :  { %v1951_v63 = vsel %vm172_vm1, %v1947_v3, %v1949_v6  ;;  %v1999_v14 = vpop.permute.xlu2 %1998  ;;  %v1605_v25 = vsel %vm409_vm6, %v1601_v61, %v1603_v59  ;;  %v1954_v61 = vadd.f32 %v1950_v17, %v1916_v10  ;;  %v2052_v6 = vmul.f32 %v2050_v31, %v3627_v56 }
 0x42e   :  { %v1955_v20 = vadd.f32 %v1951_v63, %v1917_v12  ;;  %v2001_v27 = vrot.slane %v1999_v14, 7  ;;  %v1611_v43 = vadd.f32 %v1605_v25, %v1465_v46 }
 0x430   :  { %v2003_v49 = vsel %vm4033_vm2, %v2001_v27, %v1999_v14 }
 0x431   :  { %v2007_v33 = vadd.f32 %v2003_v49, %v1955_v20 }
 0x432   :  { %2018 = vrot.lane.b32.xlu2 %v2014_v53, %s2781_s9  ;;  %v1757_v36 = vpop.permute.xlu1 %1756 }
 0x433   :  { %v1759_v0 = vsel %vm565_vm7, %v1755_v30, %v1757_v36  ;;  %2032 = vst [vmem:[#allocation1 + $0x1] ss:$9 sm:$0xff] %v2007_v33 }
 0x434   :  { %v1763_v38 = vsel %vm137_vm10, %v1759_v0, 0.0  ;;  %v1753_v32 = vpop.permute.xlu0 %1752 }
 0x435   :  { %v3829_v1 = vadd.f32 %v1763_v38, %v1611_v43  ;;  %v1758_v42 = vsel %vm565_vm7, %v1753_v32, %v1755_v30  ;;  %v2120_v52 = vpop.permute.xlu2 %2119  ;;  %v2051_v30 = vmul.f32 %v2050_v31, %v3617_v11 }
 0x436   :  { %v1762_v45 = vsel %vm136_vm8, %v1758_v42, 0.0  ;;  %v2123_v12 = vrot.slane %v2120_v52, 7 }
 0x437   :  { %v3836_v26 = vadd.f32 %v1762_v45, %v1610_v19  ;;  %v1835_v60 = vsel %vm596_vm11, %v3829_v1, 0.0  ;;  %v1847_v22 = vmul.f32 %v3829_v1, %v3829_v1 }
 0x438   :  { %v2125_v27 = vsel %vm172_vm1, %v2123_v12, %v2120_v52 }
 0x439   :  { %v1834_v8 = vsel %vm596_vm11, %v3836_v26, 0.0  ;;  %v1846_v62 = vmul.f32 %v3836_v26, %v3836_v26  ;;  %v1849_v50 = vsel %vm596_vm11, %v1847_v22, 0.0 }
 0x43a   :  { %2020 = vrot.lane.b32.xlu2 %v2015_v58, %s2781_s9  ;;  %v2070_v47 = vpop.permute.xlu1 %2069  ;;  %v1836_v35 = vadd.f32 %v1835_v60, %v1834_v8  ;;  %v2055_v58 = vstv %s3855_s5 }
 0x43b   :  { %v1848_v13 = vsel %vm596_vm11, %v1846_v62, 0.0  ;;  %v2073_v23 = vrot.slane %v2070_v47, 7  ;;  %v2056_v0 = vmul.f32 %v2055_v58, %v3617_v11  ;;  %v2057_v22 = vmul.f32 %v2055_v58, %v3627_v56 }
 0x43c   :  { %1837 = vadd.xlane.f32.xlu1 %v1836_v35  ;;  %v1997_v21 = vpop.permute.xlu0 %1996  ;;  %v1850_v18 = vadd.f32 %v1849_v50, %v1848_v13 }
 0x43d   :  { %v2000_v55 = vrot.slane %v1997_v21, 7  ;;  %v2075_v34 = vsel %vm172_vm1, %v2073_v23, %v2070_v47  ;;  %v2091_v63 = vpop.permute.xlu2 %2090  ;;  %v2196_v23 = vstv %s2581_s15 }
 0x43e   :  { %1851 = vadd.xlane.f32.xlu0 %v1850_v18  ;;  %v2079_v3 = vadd.f32 %v2075_v34, %v2051_v30  ;;  %v2093_v19 = vrot.slane %v2091_v63, 7  ;;  %v2287_v30 = vstv %s3875_s16  ;;  %v2197_v12 = vmul.f32 %v2196_v23, %v3617_v11  ;;  %s2587_s16 = sld [smem:[#allocation9 + $0x6]] }
 0x43f   :  { %v2002_v16 = vsel %vm4036_vm3, %v2000_v55, %v1997_v21 }
 0x440   :  { %v2006_v9 = vadd.f32 %v2002_v16, %v1954_v61  ;;  %v2129_v25 = vadd.f32 %v2125_v27, %v2079_v3  ;;  %v2095_v62 = vsel %vm172_vm1, %v2093_v19, %v2091_v63  ;;  %v2288_v63 = vmul.f32 %v2287_v30, %v3792_v40 }
 0x441   :  { %v2099_v21 = vadd.f32 %v2095_v62, %v2057_v22 }
 0x442   :  { %2030 = vst [vmem:[#allocation1] ss:$9 sm:$0xff] %v2006_v9  ;;  %v2122_v41 = vpop.permute.xlu1 %2121 }
 0x443   :  { %s2616_s6 = spop %2615  ;;  %v2124_v14 = vrot.slane %v2122_v41, 7 }
 0x444   :  { %v2072_v59 = vpop.permute.xlu0 %2071  ;;  %s3858_s29 = smul.f32 0.001953125, %s2616_s6 }
 0x445   :  { %v2074_v20 = vrot.slane %v2072_v59, 7  ;;  %v2126_v5 = vsel %vm172_vm1, %v2124_v14, %v2122_v41  ;;  %v2224_v42 = vpop.permute.xlu2 %2223  ;;  %v2198_v41 = vmul.f32 %v2196_v23, %v3627_v56 }
 0x446   :  { %s1794_s7 = smul.f32 %s3858_s29, %s3858_s29  ;;  %v2227_v55 = vrot.slane %v2224_v42, 7 }
 0x447   :  { %v2076_v39 = vsel %vm172_vm1, %v2074_v20, %v2072_v59  ;;  %s2618_s8 = spop %2617 }
 0x448   :  { %v2080_v49 = vadd.f32 %v2076_v39, %v2052_v6  ;;  %s1793_s11 = smul.f32 0.001953125, %s2618_s8  ;;  %v2229_v14 = vsel %vm211_vm0, %v2227_v55, %v2224_v42 }
 0x449   :  { %v3865_v33 = vld [vmem:[#allocation1] sm:$0xff]  ;;  %v3867_v53 = vld [vmem:[#allocation1 + $0x9] sm:$0xff]  ;;  %v3869_v46 = vld [vmem:[#allocation1 + $0x12] sm:$0xff]  ;;  %v2233_v56 = vadd.f32 %v2229_v14, %v2197_v12 }
 0x44a   :  { %v2130_v48 = vadd.f32 %v2126_v5, %v2080_v49  ;;  %s1795_s12 = ssub.f32 %s1793_s11, %s1794_s7  ;;  %v2139_v36 = vpop.permute.xlu1 %2138  ;;  %2152 = vst [vmem:[#allocation1] ss:$9 sm:$0xff] %v2129_v25 }
 0x44b   :  { %v2142_v43 = vrot.slane %v2139_v36, 7 }
 0x44c   :  { %s1796_s14 = sadd.f32 1e-05, %s1795_s12  ;;  %v2089_v2 = vpop.permute.xlu0 %2088  ;;  %2154 = vst [vmem:[#allocation1 + $0x1] ss:$9 sm:$0xff] %v2130_v48 }
 0x44d   :  { %v2092_v38 = vrot.slane %v2089_v2, 7  ;;  %v2144_v45 = vsel %vm172_vm1, %v2142_v43, %v2139_v36  ;;  %v2276_v16 = vpop.permute.xlu2 %2275 }
 0x44e   :  { %v1797_v32 = vstv %s1796_s14  ;;  %v2278_v6 = vrot.slane %v2276_v16, 7 }
 0x44f   :  { %2663 = vrsqrt.f32 %v1797_v32  ;;  %v2094_v51 = vsel %vm172_vm1, %v2092_v38, %v2089_v2  ;;  %vm1804_vm14 = vweird.f32 %v1797_v32 }
 0x450   :  { %v2098_v60 = vadd.f32 %v2094_v51, %v2056_v0  ;;  %v2280_v11 = vsel %vm211_vm0, %v2278_v6, %v2276_v16  ;;  %v2289_v51 = vmul.f32 %v2287_v30, %v3795_v4 }
 0x452   :  { %v2148_v8 = vadd.f32 %v2144_v45, %v2098_v60  ;;  %v2226_v50 = vpop.permute.xlu1 %2225 }
 0x453   :  { %v2155_v10 = vld [vmem:[#allocation1] sm:$0xff]  ;;  %v2157_v47 = vld [vmem:[#allocation1 + $0x12] sm:$0xff]  ;;  %v2156_v35 = vld [vmem:[#allocation1 + $0x9] sm:$0xff]  ;;  %v2228_v31 = vrot.slane %v2226_v50, 7 }
 0x454   :  { %v2141_v17 = vpop.permute.xlu0 %2140  ;;  %2158 = vrot.lane.b32.xlu2 %v2155_v10, %s2782_s13  ;;  %2174 = vst [vmem:[#allocation1] ss:$9 sm:$0xff] %v2148_v8 }
 0x455   :  { %v2664_v52 = vpop.eup %2663  ;;  %v2143_v13 = vrot.slane %v2141_v17, 7  ;;  %2162 = vrot.lane.b32.xlu1 %v2157_v47, %s2782_s13  ;;  %v2230_v3 = vsel %vm211_vm0, %v2228_v31, %v2226_v50 }
 0x456   :  { %v1799_v18 = vmul.f32 %v2664_v52, %v1797_v32  ;;  %v2234_v39 = vadd.f32 %v2230_v3, %v2198_v41  ;;  %v2237_v32 = vstv %s2584_s18  ;;  %s2588_s18 = sld [smem:[#allocation10 + $0x6]] }
 0x457   :  { %v2145_v61 = vsel %vm172_vm1, %v2143_v13, %v2141_v17  ;;  %vm1805_vm1 = vweird.f32 %v2664_v52  ;;  %v2239_v19 = vmul.f32 %v2237_v32, %v3771_v54  ;;  %v2238_v45 = vmul.f32 %v2237_v32, %v3779_v37 }
 0x458   :  { %v1800_v9 = vmul.f32 %v2664_v52, %v1799_v18  ;;  %v2149_v34 = vadd.f32 %v2145_v61, %v2099_v21  ;;  %vm1806_vm2 = vmor %vm1804_vm14, %vm1805_vm1  ;;  %v2284_v36 = vadd.f32 %v2280_v11, %v2234_v39 }
 0x45a   :  { %2176 = vst [vmem:[#allocation1 + $0x1] ss:$9 sm:$0xff] %v2149_v34  ;;  %v1801_v59 = vmul.f32 0.5, %v1800_v9 }
 0x45c   :  { %v2274_v20 = vpop.permute.xlu0 %2273  ;;  %2160 = vrot.lane.b32.xlu2 %v2156_v35, %s2782_s13  ;;  %v1802_v27 = vsub.f32 1.5, %v1801_v59 }
 0x45d   :  { %v2277_v25 = vrot.slane %v2274_v20, 7  ;;  %2292 = vrot.lane.b32.xlu1 %v2288_v63, %s2778_s2  ;;  %v2674_v63 = vld [vmem:[#allocation2 + $0x3] ss:$4 sm:$0xf] }
 0x45e   :  { %v1803_v49 = vmul.f32 %v2664_v52, %v1802_v27 }
 0x45f   :  { %v2279_v5 = vsel %vm211_vm0, %v2277_v25, %v2274_v20 }
 0x460   :  { %v2283_v40 = vadd.f32 %v2279_v5, %v2233_v56  ;;  %v1807_v48 = vsel %vm1806_vm2, %v2664_v52, %v1803_v49 }
 0x461   :  { %2619 = vpush %v1807_v48  ;;  %v2177_v58 = vld [vmem:[#allocation1] sm:$0xff]  ;;  %v2178_v43 = vld [vmem:[#allocation1 + $0x9] sm:$0xff]  ;;  %v3892_v0 = vld [vmem:[#allocation1 + $0x12] sm:$0xff] }
 0x462   :  { %2306 = vst [vmem:[#allocation1] ss:$9 sm:$0xff] %v2283_v40 }
 0x463   :  { %2308 = vst [vmem:[#allocation1 + $0x1] ss:$9 sm:$0xff] %v2284_v36 }
 0x46a   :  { %v2310_v2 = vld [vmem:[#allocation1 + $0x9] sm:$0xff]  ;;  %v2309_v38 = vld [vmem:[#allocation1] sm:$0xff]  ;;  %v2311_v42 = vld [vmem:[#allocation1 + $0x12] sm:$0xff] }
 0x46b   :  { %2314 = vrot.lane.b32.xlu2 %v2310_v2, %s2783_s17  ;;  %2312 = vrot.lane.b32.xlu0 %v2309_v38, %s2783_s17 }
 0x473   :  { %2316 = vrot.lane.b32.xlu2 %v2311_v42, %s2783_s17  ;;  %2244 = vrot.lane.b32.xlu0 %v2239_v19, %s2778_s2 }
 0x47b   :  { %2242 = vrot.lane.b32.xlu2 %v2238_v45, %s2778_s2 }
 0x483   :  { %2294 = vrot.lane.b32.xlu2 %v2289_v51, %s2778_s2  ;;  %s3920_s2 = sld [smem:[#allocation8 + $0x41]] }
 0x484   :  { %v2017_v60 = vpop.permute.xlu2 %2016 }
 0x489   :  { %v2201_v6 = vstv %s3920_s2 }
 0x48a   :  { %v2202_v14 = vmul.f32 %v2674_v63, %v2201_v6 }
 0x48b   :  { %2036 = vrot.lane.b32.xlu2 %v3865_v33, %s2781_s9 }
 0x48c   :  { %v2019_v47 = vpop.permute.xlu2 %2018 }
 0x48d   :  { %v2022_v36 = vsel %vm266_vm4, %v2017_v60, %v2019_v47 }
 0x48e   :  { %v2026_v19 = vsel %vm112_vm9, %v2022_v36, 0.0 }
 0x492   :  { %s2620_s21 = spop %2619 }
 0x493   :  { %s1810_s22 = smul.f32 %s2620_s21, %s2565_s19  ;;  %2038 = vrot.lane.b32.xlu2 %v3867_v53, %s2781_s9 }
 0x495   :  { %s1812_s23 = smul.f32 %s1810_s22, %s3858_s29  ;;  %v1814_v54 = vstv %s1810_s22 }
 0x496   :  { %v1816_v37 = vmul.f32 %v1814_v54, %v3698_v15  ;;  %v1815_v4 = vmul.f32 %v1814_v54, %v3696_v7  ;;  %v2021_v7 = vpop.permute.xlu2 %2020 }
 0x497   :  { %s1813_s24 = ssub.f32 %s2566_s20, %s1812_s23  ;;  %v2023_v27 = vsel %vm266_vm4, %v2019_v47, %v2021_v7 }
 0x498   :  { %v2027_v5 = vsel %vm113_vm5, %v2023_v27, 0.0 }
 0x499   :  { %v1817_v22 = vstv %s1813_s24 }
 0x49a   :  { %v1819_v8 = vadd.f32 %v1817_v22, %v1816_v37  ;;  %v1818_v33 = vadd.f32 %v1817_v22, %v1815_v4 }
 0x49b   :  { %2040 = vrot.lane.b32.xlu2 %v3869_v46, %s2781_s9 }
 0x49c   :  { %v1822_v62 = vrot.slane %v1819_v8, 7 }
 0x49e   :  { %v1823_v50 = vsel %vm654_vm15, %v1818_v33, %v1822_v62  ;;  %v1824_v10 = vsel %vm656_vm12, %v1818_v33, %v1822_v62 }
 0x49f   :  { %v1825_v53 = vrot.slane %v1824_v10, 1  ;;  %1829 = vst.msk [vmem:[#allocation12 + $0x4] ss:$8 sm:$0x3] %vm3601_vm13, %v1823_v50 }
 0x4a1   :  { %1832 = vst.msk [vmem:[#allocation12 + $0x14] ss:$8 sm:$0x3] %vm3601_vm13, %v1825_v53  ;;  %v2675_v53 = vld [vmem:[#allocation2 + $0x13] ss:$4 sm:$0xf] }
 0x4a2   :  { %v2203_v47 = vmul.f32 %v2675_v53, %v2201_v6 }
 0x4a3   :  { %2180 = vrot.lane.b32.xlu2 %v2177_v58, %s2782_s13 }
 0x4ab   :  { %2182 = vrot.lane.b32.xlu2 %v2178_v43, %s2782_s13 }
 0x4ae   :  { %v2159_v13 = vpop.permute.xlu2 %2158 }
 0x4af   :  { %v1838_v15 = vpop.xlane.xlu1 %1837 }
 0x4b0   :  { %v1839_v46 = vrot.slane %v1838_v15, 4 }
 0x4b1   :  { %v1852_v35 = vpop.xlane.xlu0 %1851 }
 0x4b2   :  { %v1840_v17 = vadd.f32 %v1839_v46, %v1838_v15  ;;  %v1853_v52 = vrot.slane %v1852_v35, 4 }
 0x4b4   :  { %v1841_v21 = vrot.slane %v1840_v17, 2  ;;  %v1854_v18 = vadd.f32 %v1853_v52, %v1852_v35 }
 0x4b6   :  { %v1855_v31 = vrot.slane %v1854_v18, 2  ;;  %v1842_v23 = vadd.f32 %v1841_v21, %v1840_v17  ;;  %v2161_v34 = vpop.permute.xlu2 %2160 }
 0x4b7   :  { %v2164_v2 = vsel %vm409_vm6, %v2159_v13, %v2161_v34 }
 0x4b8   :  { %v1843_v55 = vrot.slane %v1842_v23, 1  ;;  %v1856_v61 = vadd.f32 %v1855_v31, %v1854_v18  ;;  %v2170_v45 = vadd.f32 %v2164_v2, %v2026_v19 }
 0x4ba   :  { %v1844_v16 = vadd.f32 %v1843_v55, %v1842_v23  ;;  %v1857_v30 = vrot.slane %v1856_v61, 1 }
 0x4bc   :  { %2621 = vpush %v1844_v16  ;;  %v1858_v9 = vadd.f32 %v1857_v30, %v1856_v61 }
 0x4be   :  { %2623 = vpush %v1858_v9 }
 0x4c5   :  { %v2315_v41 = vpop.permute.xlu2 %2314 }
 0x4c7   :  { %v2163_v12 = vpop.permute.xlu1 %2162 }
 0x4c8   :  { %v2165_v11 = vsel %vm409_vm6, %v2161_v34, %v2163_v12 }
 0x4c9   :  { %v2171_v58 = vadd.f32 %v2165_v11, %v2027_v5 }
 0x4cd   :  { %v2317_v3 = vpop.permute.xlu2 %2316 }
 0x4ce   :  { %v2319_v39 = vsel %vm565_vm7, %v2315_v41, %v2317_v3 }
 0x4cf   :  { %v2293_v59 = vpop.permute.xlu1 %2292  ;;  %v2323_v40 = vsel %vm137_vm10, %v2319_v39, 0.0 }
 0x4d0   :  { %v2296_v25 = vrot.slane %v2293_v59, 7  ;;  %v3934_v32 = vadd.f32 %v2323_v40, %v2171_v58 }
 0x4d2   :  { %v2298_v43 = vsel %vm211_vm0, %v2296_v25, %v2293_v59  ;;  %v2361_v37 = vmul.f32 %v3934_v32, %v3934_v32  ;;  %v2349_v4 = vsel %vm596_vm11, %v3934_v32, 0.0 }
 0x4d4   :  { %v2363_v10 = vsel %vm596_vm11, %v2361_v37, 0.0 }
 0x4d5   :  { %v2243_v20 = vpop.permute.xlu2 %2242 }
 0x4d6   :  { %v2246_v56 = vrot.slane %v2243_v20, 7 }
 0x4d8   :  { %v2248_v49 = vsel %vm211_vm0, %v2246_v56, %v2243_v20 }
 0x4d9   :  { %v2252_v48 = vadd.f32 %v2248_v49, %v2202_v14 }
 0x4db   :  { %v2302_v38 = vadd.f32 %v2298_v43, %v2252_v48 }
 0x4dd   :  { %2328 = vst [vmem:[#allocation1] ss:$9 sm:$0xff] %v2302_v38  ;;  %v2313_v42 = vpop.permute.xlu0 %2312  ;;  %v2295_v33 = vpop.permute.xlu2 %2294 }
 0x4de   :  { %v2318_v51 = vsel %vm565_vm7, %v2313_v42, %v2315_v41  ;;  %v2297_v46 = vrot.slane %v2295_v33, 7 }
 0x4df   :  { %v2322_v54 = vsel %vm136_vm8, %v2318_v51, 0.0 }
 0x4e0   :  { %v3941_v60 = vadd.f32 %v2322_v54, %v2170_v45  ;;  %v2299_v13 = vsel %vm211_vm0, %v2297_v46, %v2295_v33 }
 0x4e2   :  { %v2348_v22 = vsel %vm596_vm11, %v3941_v60, 0.0  ;;  %v2360_v8 = vmul.f32 %v3941_v60, %v3941_v60 }
 0x4e3   :  { %v2350_v62 = vadd.f32 %v2349_v4, %v2348_v22 }
 0x4e4   :  { %v2362_v50 = vsel %vm596_vm11, %v2360_v8, 0.0 }
 0x4e5   :  { %2351 = vadd.xlane.f32.xlu0 %v2350_v62  ;;  %v2245_v7 = vpop.permute.xlu0 %2244  ;;  %v2364_v15 = vadd.f32 %v2363_v10, %v2362_v50  ;;  %v2037_v3 = vpop.permute.xlu2 %2036 }
 0x4e6   :  { %v2247_v35 = vrot.slane %v2245_v7, 7 }
 0x4e7   :  { %2365 = vadd.xlane.f32.xlu1 %v2364_v15 }
 0x4e8   :  { %v2249_v17 = vsel %vm211_vm0, %v2247_v35, %v2245_v7 }
 0x4e9   :  { %v2253_v52 = vadd.f32 %v2249_v17, %v2203_v47 }
 0x4eb   :  { %v2303_v21 = vadd.f32 %v2299_v13, %v2253_v52 }
 0x4ed   :  { %2330 = vst [vmem:[#allocation1 + $0x1] ss:$9 sm:$0xff] %v2303_v21  ;;  %s2622_s9 = spop %2621 }
 0x4ee   :  { %s3955_s10 = smul.f32 0.001953125, %s2622_s9 }
 0x4ef   :  { %s2624_s3 = spop %2623 }
 0x4f0   :  { %s1862_s25 = smul.f32 %s3955_s10, %s3955_s10 }
 0x4f1   :  { %s1861_s26 = smul.f32 0.001953125, %s2624_s3 }
 0x4f3   :  { %s1863_s27 = ssub.f32 %s1861_s26, %s1862_s25 }
 0x4f4   :  { %v2332_v18 = vld [vmem:[#allocation1 + $0x9] sm:$0xff]  ;;  %v2333_v23 = vld [vmem:[#allocation1 + $0x12] sm:$0xff]  ;;  %v2331_v16 = vld [vmem:[#allocation1] sm:$0xff]  ;;  %s2589_s26 = sld [smem:[#allocation9 + $0x7]] }
 0x4f5   :  { %s1864_s28 = sadd.f32 1e-05, %s1863_s27  ;;  %2336 = vrot.lane.b32.xlu2 %v2332_v18, %s2783_s17 }
 0x4f6   :  { %s2590_s27 = sld [smem:[#allocation10 + $0x7]] }
 0x4f7   :  { %v1865_v31 = vstv %s1864_s28 }
 0x4f8   :  { %2665 = vrsqrt.f32 %v1865_v31  ;;  %vm1872_vm3 = vweird.f32 %v1865_v31 }
 0x4f9   :  { %2184 = vrot.lane.b32.xlu0 %v3892_v0, %s2782_s13  ;;  %v2039_v0 = vpop.permute.xlu2 %2038 }
 0x4fa   :  { %v2042_v47 = vsel %vm266_vm4, %v2037_v3, %v2039_v0 }
 0x4fb   :  { %v2046_v35 = vsel %vm112_vm9, %v2042_v47, 0.0 }
 0x4fd   :  { %2338 = vrot.lane.b32.xlu2 %v2333_v23, %s2783_s17 }
 0x4fe   :  { %v2666_v55 = vpop.eup %2665 }
 0x4ff   :  { %v1867_v61 = vmul.f32 %v2666_v55, %v1865_v31  ;;  %vm1873_vm0 = vweird.f32 %v2666_v55 }
 0x500   :  { %2334 = vrot.lane.b32.xlu1 %v2331_v16, %s2783_s17  ;;  %vm1874_vm1 = vmor %vm1872_vm3, %vm1873_vm0 }
 0x501   :  { %v1868_v30 = vmul.f32 %v2666_v55, %v1867_v61  ;;  %v2041_v27 = vpop.permute.xlu2 %2040 }
 0x502   :  { %v2043_v4 = vsel %vm266_vm4, %v2039_v0, %v2041_v27 }
 0x503   :  { %v1869_v9 = vmul.f32 0.5, %v1868_v30  ;;  %v2047_v62 = vsel %vm113_vm5, %v2043_v4, 0.0 }
 0x505   :  { %v1870_v34 = vsub.f32 1.5, %v1869_v9 }
 0x507   :  { %v1871_v41 = vmul.f32 %v2666_v55, %v1870_v34 }
 0x509   :  { %v1875_v12 = vsel %vm1874_vm1, %v2666_v55, %v1871_v41  ;;  %v2181_v5 = vpop.permute.xlu2 %2180 }
 0x50a   :  { %2625 = vpush %v1875_v12 }
 0x53b   :  { %s2626_s30 = spop %2625 }
 0x53c   :  { %s1878_s5 = smul.f32 %s2626_s30, %s2567_s0 }
 0x53e   :  { %s1880_s6 = smul.f32 %s1878_s5, %s3955_s10  ;;  %v1882_v6 = vstv %s1878_s5 }
 0x53f   :  { %v1884_v59 = vmul.f32 %v1882_v6, %v3829_v1  ;;  %v1883_v14 = vmul.f32 %v1882_v6, %v3836_v26  ;;  %v2183_v1 = vpop.permute.xlu2 %2182 }
 0x540   :  { %s1881_s29 = ssub.f32 %s2568_s1, %s1880_s6  ;;  %v2186_v7 = vsel %vm409_vm6, %v2181_v5, %v2183_v1 }
 0x541   :  { %v2192_v28 = vadd.f32 %v2186_v7, %v2046_v35 }
 0x542   :  { %v1885_v63 = vstv %s1881_s29  ;;  %s2490_s29 = sshll.u32 %s4025_s4, 4  ;;  %s2491_s29 = int_to_ptr.hbm [resolvable:$true] %s2490_s29 }
 0x543   :  { %v1887_v20 = vadd.f32 %v1885_v63, %v1884_v59  ;;  %v1886_v39 = vadd.f32 %v1885_v63, %v1883_v14 }
 0x545   :  { %v1890_v25 = vrot.slane %v1887_v20, 7 }
 0x547   :  { %v1891_v56 = vsel %vm654_vm15, %v1886_v39, %v1890_v25  ;;  %v1892_v11 = vsel %vm656_vm12, %v1886_v39, %v1890_v25 }
 0x548   :  { %v1893_v49 = vrot.slane %v1892_v11, 1  ;;  %1897 = vst.msk [vmem:[#allocation12 + $0x5] ss:$8 sm:$0x3] %vm3601_vm13, %v1891_v56 }
 0x54a   :  { %1900 = vst.msk [vmem:[#allocation12 + $0x15] ss:$8 sm:$0x3] %vm3601_vm13, %v1893_v49 }
 0x54f   :  { %v2337_v42 = vpop.permute.xlu2 %2336 }
 0x557   :  { %v2339_v8 = vpop.permute.xlu2 %2338 }
 0x558   :  { %v2352_v40 = vpop.xlane.xlu0 %2351  ;;  %v2341_v10 = vsel %vm565_vm7, %v2337_v42, %v2339_v8 }
 0x559   :  { %v2353_v48 = vrot.slane %v2352_v40, 4  ;;  %v2345_v15 = vsel %vm137_vm10, %v2341_v10, 0.0 }
 0x55a   :  { %v2366_v26 = vpop.xlane.xlu1 %2365 }
 0x55b   :  { %v2354_v36 = vadd.f32 %v2353_v48, %v2352_v40  ;;  %v2367_v58 = vrot.slane %v2366_v26, 4 }
 0x55d   :  { %v2355_v43 = vrot.slane %v2354_v36, 2  ;;  %v2368_v2 = vadd.f32 %v2367_v58, %v2366_v26 }
 0x55f   :  { %v2369_v38 = vrot.slane %v2368_v2, 2  ;;  %v2356_v19 = vadd.f32 %v2355_v43, %v2354_v36 }
 0x561   :  { %v2357_v45 = vrot.slane %v2356_v19, 1  ;;  %v2370_v51 = vadd.f32 %v2369_v38, %v2368_v2 }
 0x563   :  { %v2358_v54 = vadd.f32 %v2357_v45, %v2356_v19  ;;  %v2371_v37 = vrot.slane %v2370_v51, 1 }
 0x565   :  { %2627 = vpush %v2358_v54  ;;  %v2372_v22 = vadd.f32 %v2371_v37, %v2370_v51 }
 0x567   :  { %2629 = vpush %v2372_v22 }
 0x56b   :  { %v2185_v33 = vpop.permute.xlu0 %2184 }
 0x56c   :  { %v2187_v50 = vsel %vm409_vm6, %v2183_v1, %v2185_v33 }
 0x56d   :  { %v2193_v53 = vadd.f32 %v2187_v50, %v2047_v62 }
 0x56f   :  { %v3982_v46 = vadd.f32 %v2345_v15, %v2193_v53 }
 0x571   :  { %v2429_v18 = vmul.f32 %v3982_v46, %v3982_v46  ;;  %v2417_v31 = vsel %vm596_vm11, %v3982_v46, 0.0 }
 0x572   :  { %v2335_v17 = vpop.permute.xlu1 %2334 }
 0x573   :  { %v2340_v52 = vsel %vm565_vm7, %v2335_v17, %v2337_v42  ;;  %v2431_v44 = vsel %vm596_vm11, %v2429_v18, 0.0 }
 0x574   :  { %v2344_v13 = vsel %vm136_vm8, %v2340_v52, 0.0 }
 0x575   :  { %v3989_v21 = vadd.f32 %v2344_v13, %v2192_v28 }
 0x577   :  { %v2416_v24 = vsel %vm596_vm11, %v3989_v21, 0.0  ;;  %v2428_v57 = vmul.f32 %v3989_v21, %v3989_v21 }
 0x578   :  { %v2418_v23 = vadd.f32 %v2417_v31, %v2416_v24 }
 0x579   :  { %v2430_v55 = vsel %vm596_vm11, %v2428_v57, 0.0 }
 0x57a   :  { %2419 = vadd.xlane.f32.xlu2 %v2418_v23  ;;  %v2432_v61 = vadd.f32 %v2431_v44, %v2430_v55 }
 0x57c   :  { %2433 = vadd.xlane.f32.xlu0 %v2432_v61 }
 0x596   :  { %s2628_s17 = spop %2627 }
 0x597   :  { %s2374_s7 = smul.f32 0.001953125, %s2628_s17  ;;  %s2784_s17 = smov [#allocation12]  }
 0x598   :  { %s2630_s8 = spop %2629 }
 0x599   :  { %s2376_s11 = smul.f32 %s2374_s7, %s2374_s7 }
 0x59a   :  { %s2375_s12 = smul.f32 0.001953125, %s2630_s8  ;;  %s2785_s8 = smov 256  }
 0x59c   :  { %s2377_s14 = ssub.f32 %s2375_s12, %s2376_s11 }
 0x59e   :  { %s2378_s15 = sadd.f32 1e-05, %s2377_s14 }
 0x5a0   :  { %v2379_v16 = vstv %s2378_s15 }
 0x5a1   :  { %2667 = vrsqrt.f32 %v2379_v16  ;;  %vm2386_vm5 = vweird.f32 %v2379_v16 }
 0x5a7   :  { %v2668_v30 = vpop.eup %2667 }
 0x5a8   :  { %v2381_v9 = vmul.f32 %v2668_v30, %v2379_v16  ;;  %vm2387_vm4 = vweird.f32 %v2668_v30 }
 0x5a9   :  { %vm2388_vm6 = vmor %vm2386_vm5, %vm2387_vm4 }
 0x5aa   :  { %v2382_v34 = vmul.f32 %v2668_v30, %v2381_v9 }
 0x5ac   :  { %v2383_v41 = vmul.f32 0.5, %v2382_v34 }
 0x5ae   :  { %v2384_v12 = vsub.f32 1.5, %v2383_v41 }
 0x5b0   :  { %v2385_v3 = vmul.f32 %v2668_v30, %v2384_v12 }
 0x5b2   :  { %v2389_v0 = vsel %vm2388_vm6, %v2668_v30, %v2385_v3 }
 0x5b3   :  { %2631 = vpush %v2389_v0 }
 0x5e4   :  { %s2632_s19 = spop %2631 }
 0x5e5   :  { %s2392_s20 = smul.f32 %s2632_s19, %s2587_s16 }
 0x5e7   :  { %s2394_s21 = smul.f32 %s2392_s20, %s2374_s7  ;;  %v2396_v6 = vstv %s2392_s20  ;;  %s2488_s7 = sshll.u32 %s2784_s17, 4  ;;  %s2489_s7 = int_to_ptr.vmem [resolvable:$true] %s2488_s7 }
 0x5e8   :  { %v2398_v59 = vmul.f32 %v2396_v6, %v3934_v32  ;;  %v2397_v14 = vmul.f32 %v2396_v6, %v3941_v60 }
 0x5e9   :  { %s2395_s22 = ssub.f32 %s2588_s18, %s2394_s21 }
 0x5eb   :  { %v2399_v63 = vstv %s2395_s22 }
 0x5ec   :  { %v2401_v20 = vadd.f32 %v2399_v63, %v2398_v59  ;;  %v2400_v39 = vadd.f32 %v2399_v63, %v2397_v14 }
 0x5ed   :  { %v2420_v27 = vpop.xlane.xlu2 %2419 }
 0x5ee   :  { %v2404_v25 = vrot.slane %v2401_v20, 7  ;;  %v2421_v56 = vrot.slane %v2420_v27, 4 }
 0x5ef   :  { %v2434_v11 = vpop.xlane.xlu0 %2433 }
 0x5f0   :  { %v2405_v49 = vsel %vm654_vm15, %v2400_v39, %v2404_v25  ;;  %v2406_v5 = vsel %vm656_vm12, %v2400_v39, %v2404_v25  ;;  %v2422_v1 = vadd.f32 %v2421_v56, %v2420_v27  ;;  %v2435_v40 = vrot.slane %v2434_v11, 4 }
 0x5f1   :  { %v2407_v48 = vrot.slane %v2406_v5, 1  ;;  %2411 = vst.msk [vmem:[#allocation12 + $0x6] ss:$8 sm:$0x3] %vm3601_vm13, %v2405_v49 }
 0x5f2   :  { %v2423_v32 = vrot.slane %v2422_v1, 2  ;;  %v2436_v26 = vadd.f32 %v2435_v40, %v2434_v11 }
 0x5f3   :  { %2414 = vst.msk [vmem:[#allocation12 + $0x16] ss:$8 sm:$0x3] %vm3601_vm13, %v2407_v48 }
 0x5f4   :  { %v2424_v60 = vadd.f32 %v2423_v32, %v2422_v1  ;;  %v2437_v36 = vrot.slane %v2436_v26, 2 }
 0x5f6   :  { %v2438_v58 = vadd.f32 %v2437_v36, %v2436_v26  ;;  %v2425_v43 = vrot.slane %v2424_v60, 1 }
 0x5f8   :  { %v2426_v2 = vadd.f32 %v2425_v43, %v2424_v60  ;;  %v2439_v38 = vrot.slane %v2438_v58, 1 }
 0x5fa   :  { %2633 = vpush %v2426_v2  ;;  %v2440_v19 = vadd.f32 %v2439_v38, %v2438_v58 }
 0x5fc   :  { %2635 = vpush %v2440_v19 }
 0x62b   :  { %s2634_s23 = spop %2633 }
 0x62c   :  { %s2442_s24 = smul.f32 0.001953125, %s2634_s23 }
 0x62d   :  { %s2636_s2 = spop %2635 }
 0x62e   :  { %s2444_s9 = smul.f32 %s2442_s24, %s2442_s24 }
 0x62f   :  { %s2443_s10 = smul.f32 0.001953125, %s2636_s2 }
 0x631   :  { %s2445_s3 = ssub.f32 %s2443_s10, %s2444_s9 }
 0x633   :  { %s2446_s25 = sadd.f32 1e-05, %s2445_s3 }
 0x635   :  { %v2447_v42 = vstv %s2446_s25 }
 0x636   :  { %2669 = vrsqrt.f32 %v2447_v42  ;;  %vm2454_vm8 = vweird.f32 %v2447_v42 }
 0x63c   :  { %v2670_v45 = vpop.eup %2669 }
 0x63d   :  { %v2449_v51 = vmul.f32 %v2670_v45, %v2447_v42  ;;  %vm2455_vm7 = vweird.f32 %v2670_v45 }
 0x63e   :  { %vm2456_vm9 = vmor %vm2454_vm8, %vm2455_vm7 }
 0x63f   :  { %v2450_v54 = vmul.f32 %v2670_v45, %v2449_v51 }
 0x641   :  { %v2451_v37 = vmul.f32 0.5, %v2450_v54 }
 0x643   :  { %v2452_v22 = vsub.f32 1.5, %v2451_v37 }
 0x645   :  { %v2453_v4 = vmul.f32 %v2670_v45, %v2452_v22 }
 0x647   :  { %v2457_v8 = vsel %vm2456_vm9, %v2670_v45, %v2453_v4 }
 0x648   :  { %2637 = vpush %v2457_v8 }
 0x679   :  { %s2638_s28 = spop %2637 }
 0x67a   :  { %s2460_s0 = smul.f32 %s2638_s28, %s2589_s26 }
 0x67c   :  { %s2462_s1 = smul.f32 %s2460_s0, %s2442_s24  ;;  %v2464_v33 = vstv %s2460_s0 }
 0x67d   :  { %v2466_v62 = vmul.f32 %v2464_v33, %v3982_v46  ;;  %v2465_v10 = vmul.f32 %v2464_v33, %v3989_v21 }
 0x67e   :  { %s2463_s30 = ssub.f32 %s2590_s27, %s2462_s1 }
 0x680   :  { %v2467_v50 = vstv %s2463_s30 }
 0x681   :  { %v2469_v53 = vadd.f32 %v2467_v50, %v2466_v62  ;;  %v2468_v47 = vadd.f32 %v2467_v50, %v2465_v10 }
 0x683   :  { %v2472_v7 = vrot.slane %v2469_v53, 7 }
 0x685   :  { %v2473_v15 = vsel %vm654_vm15, %v2468_v47, %v2472_v7  ;;  %v2474_v35 = vsel %vm656_vm12, %v2468_v47, %v2472_v7 }
 0x686   :  { %v2475_v17 = vrot.slane %v2474_v35, 1  ;;  %2479 = vst.msk [vmem:[#allocation12 + $0x7] ss:$8 sm:$0x3] %vm3601_vm13, %v2473_v15 }
 0x688   :  { %2482 = vst.msk [vmem:[#allocation12 + $0x17] ss:$8 sm:$0x3] %vm3601_vm13, %v2475_v17 }
 0x689   :  { %2496 = dma.vmem_to_hbm [thread:$0]  %s2489_s7, 512, %s2491_s29, [#allocation5], %s2785_s8, %s2785_s8, %s2782_s13  }
 0x68a   :  { %2768 = dma.done.wait [#allocation5], 512  }
 0x68b   :  { %2769 = vsyncadd [#allocation5], 4294966784 }
 0x68c   :  { %2501 = vsyncpa [#allocation4], 1 }
 0x68d   :  { %2502 = vsyncpa [#allocation5], 1 }
 0x68e   :  { %2503 = vsyncpa [#allocation6], 1 }
 0x68f   :  { %2504 = vsyncpa [#allocation7], 1 }
 0x690   :  { %2505 = vsyncpa [#allocation11], 1 }

</bundles_post_ra>
